<compile_context>
chip_gen: v6e
topology: v6e:2x2x1
jax: 0.10.0
libtpu: 0.0.40
codegen_flags: <defaults>
</compile_context>

<pallas_src>
import functools
import math

import jax
import jax.numpy as jnp
import numpy as np
from jax.experimental import pallas as pl
from jax.experimental.pallas import tpu as pltpu  # noqa: F401  (TPU backend)


# ----------------------------- model config -----------------------------------
class Config:
    n_embed = 64
    n_head = 4
    head_size = 16            # n_embed // n_head
    rope_n_elem = 8           # partial rotary (phi-style)
    intermediate_size = 128
    padded_vocab_size = 256
    n_layer = 2
    block_size = 16           # max_seq_length
    norm_eps = 1e-5
    rope_base = 10000.0


CFG = Config()


# ------------------------------- fused kernel ----------------------------------
def _slm_fused_kernel(idx_ref, wte_ref, cos_ref, sin_ref,
                      ln_g_ref, ln_b_ref, qkv_w_ref, qkv_b_ref,
                      proj_w_ref, proj_b_ref, fc_w_ref, fc_b_ref,
                      mlp_w_ref, mlp_b_ref, lnf_g_ref, lnf_b_ref,
                      head_w_ref, head_b_ref, logits_ref, *, B, T, cfg):
    E, H, HS = cfg.n_embed, cfg.n_head, cfg.head_size
    V, L = cfg.padded_vocab_size, cfg.n_layer
    eps = cfg.norm_eps
    scale = 1.0 / math.sqrt(HS)
    M = B * T
    f32 = jnp.float32

    # ---- embedding lookup as one-hot @ wte on the MXU (fully in-kernel) ----
    ids = idx_ref[...]                                             # (M, 1) int32
    vocab_iota = jax.lax.broadcasted_iota(jnp.int32, (M, V), 1)
    onehot = jnp.where(ids == vocab_iota, 1.0, 0.0).astype(f32)    # (M, V)
    x = jnp.dot(onehot, wte_ref[...], preferred_element_type=f32)  # (M, E)

    cos = cos_ref[...]                                             # (M, E)
    sin = sin_ref[...]

    # causal mask for one sequence block, computed once and reused everywhere
    row = jax.lax.broadcasted_iota(jnp.int32, (T, T), 0)
    col = jax.lax.broadcasted_iota(jnp.int32, (T, T), 1)
    causal = col <= row

    def layernorm(t, g, b):
        mu = jnp.mean(t, axis=-1, keepdims=True)
        var = jnp.mean((t - mu) ** 2, axis=-1, keepdims=True)
        return (t - mu) * jax.lax.rsqrt(var + eps) * g + b

    for l in range(L):                                             # static unroll (n_layer=2)
        n1 = layernorm(x, ln_g_ref[l], ln_b_ref[l])

        # fused QKV matmul; last 2*E columns are the pre-rotated q/k (RoPE folded
        # into the weights), so RoPE below is pure elementwise VPU work.
        qkv = jnp.dot(n1, qkv_w_ref[l], preferred_element_type=f32) + qkv_b_ref[l]
        q = qkv[:, 0 * E:1 * E]
        k = qkv[:, 1 * E:2 * E]
        v = qkv[:, 2 * E:3 * E]
        q_rot = qkv[:, 3 * E:4 * E]
        k_rot = qkv[:, 4 * E:5 * E]
        q = q * cos + q_rot * sin
        k = k * cos + k_rot * sin

        proj_w = proj_w_ref[l]                                     # (E, E)

        # causal attention + output projection fused; unrolled over (batch, head)
        batch_out = []
        for b in range(B):
            r0 = b * T
            acc = jnp.zeros((T, E), f32)
            for h in range(H):
                c0 = h * HS
                qh = q[r0:r0 + T, c0:c0 + HS]                      # (T, HS)
                kh = k[r0:r0 + T, c0:c0 + HS]
                vh = v[r0:r0 + T, c0:c0 + HS]
                s = jax.lax.dot_general(qh, kh, (((1,), (1,)), ((), ())),
                                        preferred_element_type=f32) * scale  # (T, T)
                s = jnp.where(causal, s, -1e30)
                s = s - jnp.max(s, axis=-1, keepdims=True)
                p = jnp.exp(s)
                p = p * pl.reciprocal(jnp.sum(p, axis=-1, keepdims=True), approx=True)
                o_h = jnp.dot(p, vh, preferred_element_type=f32)   # (T, HS)
                # head-merge + proj fused: sum_h  o_h @ proj_w[h*HS:(h+1)*HS, :]
                acc = acc + jnp.dot(o_h, proj_w[c0:c0 + HS, :],
                                    preferred_element_type=f32)
            batch_out.append(acc)
        h_attn = jnp.concatenate(batch_out, axis=0) + proj_b_ref[l]  # (M, E)

        # MLP applied to n1 (matches Block.forward), tanh-GELU fused
        ffn = jnp.dot(n1, fc_w_ref[l], preferred_element_type=f32) + fc_b_ref[l]
        c = 0.7978845608028654                                      # sqrt(2/pi)
        ffn = 0.5 * ffn * (1.0 + jnp.tanh(c * (ffn + 0.044715 * ffn * ffn * ffn)))
        ffn = jnp.dot(ffn, mlp_w_ref[l], preferred_element_type=f32) + mlp_b_ref[l]

        x = ffn + h_attn + x                                        # residual

    x = layernorm(x, lnf_g_ref[...], lnf_b_ref[...])
    logits_ref[...] = (jnp.dot(x, head_w_ref[...], preferred_element_type=f32)
                       + head_b_ref[...])


# ----------------------------- parameter setup ---------------------------------
def rope_cache(cfg):
    theta = 1.0 / cfg.rope_base ** (jnp.arange(0, cfg.rope_n_elem, 2, dtype=jnp.float32)
                                    / cfg.rope_n_elem)
    seq = jnp.arange(cfg.block_size, dtype=jnp.float32)
    idx_theta = jnp.outer(seq, theta)
    idx_theta = jnp.concatenate([idx_theta, idx_theta], axis=1)   # .repeat(1, 2)
    return jnp.cos(idx_theta), jnp.sin(idx_theta)


def rotate_half_block_diag(cfg):
    """(E, E) block-diag matrix s.t. per head (x_h @ rot)[:, :r] == cat((-x2, x1))."""
    hs, r, H = cfg.head_size, cfg.rope_n_elem, cfg.n_head
    half = r // 2
    rot = np.zeros((hs, hs), np.float32)
    for i in range(half):
        rot[i + half, i] = -1.0     # rotated[:, i]      = -x[:, i + half]
        rot[i, i + half] = 1.0      # rotated[:, i+half] =  x[:, i]
    R = np.zeros((H * hs, H * hs), np.float32)
    for h in range(H):
        R[h * hs:(h + 1) * hs, h * hs:(h + 1) * hs] = rot
    return jnp.asarray(R)


def init_params(cfg, key):
    def nrm(key, shape, scale=0.02):
        return scale * jax.random.normal(key, shape, dtype=jnp.float32)

    keys = jax.random.split(key, 4 + cfg.n_layer)
    params = {
        "wte": nrm(keys[0], (cfg.padded_vocab_size, cfg.n_embed)),
        "head_w": nrm(keys[1], (cfg.n_embed, cfg.padded_vocab_size)),
        "head_b": nrm(keys[2], (1, cfg.padded_vocab_size)),
        "ln_f_g": jnp.ones((1, cfg.n_embed), jnp.float32),
        "ln_f_b": jnp.zeros((1, cfg.n_embed), jnp.float32),
        "blocks": [],
    }
    for li in range(cfg.n_layer):
        ks = jax.random.split(keys[4 + li], 8)
        params["blocks"].append({
            "ln_g": 1.0 + nrm(ks[0], (1, cfg.n_embed)),
            "ln_b": nrm(ks[1], (1, cfg.n_embed)),
            "attn_w": nrm(ks[2], (cfg.n_embed, 3 * cfg.n_embed)),
            "attn_b": nrm(ks[3], (1, 3 * cfg.n_embed)),
            "proj_w": nrm(ks[4], (cfg.n_embed, cfg.n_embed)),
            "proj_b": nrm(ks[5], (1, cfg.n_embed)),
            "fc_w": nrm(ks[6], (cfg.n_embed, cfg.intermediate_size)),
            "fc_b": jnp.zeros((1, cfg.intermediate_size), jnp.float32),
            "mlp_proj_w": nrm(ks[7], (cfg.intermediate_size, cfg.n_embed)),
            "mlp_proj_b": jnp.zeros((1, cfg.n_embed), jnp.float32),
        })
    cos, sin = rope_cache(cfg)
    params["cos"], params["sin"] = cos, sin
    params["rot_full"] = rotate_half_block_diag(cfg)
    return params


def prepare_fused_weights(params, cfg):
    """One-time weight prep: stack layers and fold the RoPE rotation into QKV."""
    E = cfg.n_embed
    rot_full = params["rot_full"]
    qkv_w, qkv_b = [], []
    for blk in params["blocks"]:
        W, bvec = blk["attn_w"], blk["attn_b"]
        Wq, Wk = W[:, :E], W[:, E:2 * E]
        bq, bk = bvec[:, :E], bvec[:, E:2 * E]
        qkv_w.append(jnp.concatenate([W, Wq @ rot_full, Wk @ rot_full], axis=1))
        qkv_b.append(jnp.concatenate([bvec, bq @ rot_full, bk @ rot_full], axis=1))
    stack = lambda name: jnp.stack([blk[name] for blk in params["blocks"]])
    return {
        "ln_g": stack("ln_g"), "ln_b": stack("ln_b"),
        "qkv_w": jnp.stack(qkv_w), "qkv_b": jnp.stack(qkv_b),
        "proj_w": stack("proj_w"), "proj_b": stack("proj_b"),
        "fc_w": stack("fc_w"), "fc_b": stack("fc_b"),
        "mlp_w": stack("mlp_proj_w"), "mlp_b": stack("mlp_proj_b"),
    }


# ------------------------------ forward pass -----------------------------------
def slm_forward(params, fused, idx, cfg):
    """idx: (B, T) int32 token ids; returns logits (B, T, padded_vocab_size)."""
    B, T = idx.shape
    M = B * T
    E, H, HS, R = cfg.n_embed, cfg.n_head, cfg.head_size, cfg.rope_n_elem
    V = cfg.padded_vocab_size

    cos = params["cos"][:T]
    sin = params["sin"][:T]
    cos_head = jnp.concatenate([cos, jnp.ones((T, HS - R), jnp.float32)], axis=1)
    sin_head = jnp.concatenate([sin, jnp.zeros((T, HS - R), jnp.float32)], axis=1)
    cos_rows = jnp.tile(cos_head, (B, H))      # (M, E) row-major (b, t), per-head lanes
    sin_rows = jnp.tile(sin_head, (B, H))

    idx2d = idx.reshape(M, 1).astype(jnp.int32)

    kernel = functools.partial(_slm_fused_kernel, B=B, T=T, cfg=cfg)
    logits = pl.pallas_call(
        kernel,
        out_shape=jax.ShapeDtypeStruct((M, V), jnp.float32),
    )(idx2d, params["wte"], cos_rows, sin_rows,
      fused["ln_g"], fused["ln_b"], fused["qkv_w"], fused["qkv_b"],
      fused["proj_w"], fused["proj_b"], fused["fc_w"], fused["fc_b"],
      fused["mlp_w"], fused["mlp_b"],
      params["ln_f_g"], params["ln_f_b"], params["head_w"], params["head_b"])
    return logits.reshape(B, T, V)


# ---------------------------- pure-JAX reference --------------------------------
def reference_forward(params, idx, cfg):
    B, T = idx.shape
    E, H, HS, R = cfg.n_embed, cfg.n_head, cfg.head_size, cfg.rope_n_elem
    cos = params["cos"][:T]
    sin = params["sin"][:T]

    def ln(t, g, b):
        m = t.mean(-1, keepdims=True)
        v = ((t - m) ** 2).mean(-1, keepdims=True)
        return (t - m) / jnp.sqrt(v + cfg.norm_eps) * g + b

    def rope(t):  # t: (B, H, T, HS)
        tr = t[..., :R]
        x1, x2 = tr[..., :R // 2], tr[..., R // 2:]
        rot = jnp.concatenate([-x2, x1], axis=-1)
        roped = tr * cos + rot * sin
        return jnp.concatenate([roped, t[..., R:]], axis=-1)

    x = params["wte"][idx]
    for layer in params["blocks"]:
        n1 = ln(x, layer["ln_g"], layer["ln_b"])
        qkv = n1 @ layer["attn_w"] + layer["attn_b"]
        q, k, v = jnp.split(qkv, 3, axis=-1)
        heads = lambda t: t.reshape(B, T, H, HS).transpose(0, 2, 1, 3)
        q, k, v = heads(q), heads(k), heads(v)
        q, k = rope(q), rope(k)
        s = jnp.einsum("bhqd,bhkd->bhqk", q, k) / math.sqrt(HS)
        mask = jnp.tril(jnp.ones((T, T), bool))
        s = jnp.where(mask, s, -jnp.inf)
        p = jax.nn.softmax(s, axis=-1)
        y = jnp.einsum("bhqk,bhkd->bhqd", p, v)
        y = y.transpose(0, 2, 1, 3).reshape(B, T, E)
        h = y @ layer["proj_w"] + layer["proj_b"]
        ffn = jax.nn.gelu(n1 @ layer["fc_w"] + layer["fc_b"], approximate=True)
        ffn = ffn @ layer["mlp_proj_w"] + layer["mlp_proj_b"]
        x = ffn + h + x
    x = ln(x, params["ln_f_g"], params["ln_f_b"])
    return x @ params["head_w"] + params["head_b"]


# ----------------------------------- main ---------------------------------------
if __name__ == "__main__":
    key = jax.random.PRNGKey(0)
    pkey, ikey = jax.random.split(key)
    params = init_params(CFG, pkey)
    fused = prepare_fused_weights(params, CFG)

    B, T = 2, 8
    idx = jax.random.randint(ikey, (B, T), 0, CFG.padded_vocab_size, dtype=jnp.int32)

    logits = slm_forward(params, fused, idx, CFG)
    logits = jax.block_until_ready(logits)

    ref = jax.block_until_ready(reference_forward(params, idx, CFG))
    np.testing.assert_allclose(np.asarray(logits), np.asarray(ref),
                               rtol=1e-2, atol=1e-2)

    # TODO(synk): KV-cache decode path (input_pos != None) and the tensor-parallel
    # hooks are not implemented; this covers the default prefill/causal SLM.forward.
    print("KERNEL_OK")
</pallas_src>

<mosaic_0001>
module attributes {stable_mosaic.version = 11 : i64} {
  func.func @_slm_fused_kernel(%arg0: memref<16x1xi32, #tpu.memory_space<vmem>>, %arg1: memref<256x64xf32, #tpu.memory_space<vmem>>, %arg2: memref<16x64xf32, #tpu.memory_space<vmem>>, %arg3: memref<16x64xf32, #tpu.memory_space<vmem>>, %arg4: memref<2x1x64xf32, #tpu.memory_space<vmem>>, %arg5: memref<2x1x64xf32, #tpu.memory_space<vmem>>, %arg6: memref<2x64x320xf32, #tpu.memory_space<vmem>>, %arg7: memref<2x1x320xf32, #tpu.memory_space<vmem>>, %arg8: memref<2x64x64xf32, #tpu.memory_space<vmem>>, %arg9: memref<2x1x64xf32, #tpu.memory_space<vmem>>, %arg10: memref<2x64x128xf32, #tpu.memory_space<vmem>>, %arg11: memref<2x1x128xf32, #tpu.memory_space<vmem>>, %arg12: memref<2x128x64xf32, #tpu.memory_space<vmem>>, %arg13: memref<2x1x64xf32, #tpu.memory_space<vmem>>, %arg14: memref<1x64xf32, #tpu.memory_space<vmem>>, %arg15: memref<1x64xf32, #tpu.memory_space<vmem>>, %arg16: memref<64x256xf32, #tpu.memory_space<vmem>>, %arg17: memref<1x256xf32, #tpu.memory_space<vmem>>, %arg18: memref<16x256xf32, #tpu.memory_space<vmem>>) attributes {dimension_semantics = [], scalar_prefetch = 0 : i64, scratch_operands = 0 : i64, tpu.core_type = #tpu.core_type<tc>} {
    %c0 = arith.constant 0 : index
    %c0_0 = arith.constant 0 : index
    %0 = vector.load %arg0[%c0, %c0_0] : memref<16x1xi32, #tpu.memory_space<vmem>>, vector<16x1xi32>
    %1 = tpu.iota {dimensions = array<i32: 1>} : vector<16x256xi32>
    %2 = vector.broadcast %0 : vector<16x1xi32> to vector<16x256xi32>
    %3 = arith.cmpi eq, %2, %1 : vector<16x256xi32>
    %cst = arith.constant 1.000000e+00 : f32
    %cst_1 = arith.constant 0.000000e+00 : f32
    %4 = vector.broadcast %cst : f32 to vector<16x256xf32>
    %5 = vector.broadcast %cst_1 : f32 to vector<16x256xf32>
    %6 = arith.select %3, %4, %5 : vector<16x256xi1>, vector<16x256xf32>
    %c0_2 = arith.constant 0 : index
    %c0_3 = arith.constant 0 : index
    %7 = vector.load %arg1[%c0_2, %c0_3] : memref<256x64xf32, #tpu.memory_space<vmem>>, vector<256x64xf32>
    %cst_4 = arith.constant dense<0.000000e+00> : vector<16x64xf32>
    %8 = tpu.matmul %6, %7, %cst_4 {dimension_numbers = #tpu.dot_dimension_numbers<[1], [0], [0], [1], [0, 0, 1, 1], [], []>} : vector<16x256xf32>, vector<256x64xf32>, vector<16x64xf32> -> vector<16x64xf32>
    %c0_5 = arith.constant 0 : index
    %c0_6 = arith.constant 0 : index
    %9 = vector.load %arg2[%c0_5, %c0_6] : memref<16x64xf32, #tpu.memory_space<vmem>>, vector<16x64xf32>
    %c0_7 = arith.constant 0 : index
    %c0_8 = arith.constant 0 : index
    %10 = vector.load %arg3[%c0_7, %c0_8] : memref<16x64xf32, #tpu.memory_space<vmem>>, vector<16x64xf32>
    %11 = tpu.iota {dimensions = array<i32: 0>} : vector<8x8xi32>
    %12 = tpu.iota {dimensions = array<i32: 1>} : vector<8x8xi32>
    %13 = arith.cmpi sle, %12, %11 : vector<8x8xi32>
    %c0_9 = arith.constant 0 : index
    %c0_10 = arith.constant 0 : index
    %c0_11 = arith.constant 0 : index
    %14 = vector.load %arg4[%c0_9, %c0_10, %c0_11] : memref<2x1x64xf32, #tpu.memory_space<vmem>>, vector<1x1x64xf32>
    %15 = vector.shape_cast %14 : vector<1x1x64xf32> to vector<1x64xf32>
    %c0_12 = arith.constant 0 : index
    %c0_13 = arith.constant 0 : index
    %c0_14 = arith.constant 0 : index
    %16 = vector.load %arg5[%c0_12, %c0_13, %c0_14] : memref<2x1x64xf32, #tpu.memory_space<vmem>>, vector<1x1x64xf32>
    %17 = vector.shape_cast %16 : vector<1x1x64xf32> to vector<1x64xf32>
    %cst_15 = arith.constant dense<0.000000e+00> : vector<16xf32>
    %18 = vector.multi_reduction <add>, %8, %cst_15 [1] : vector<16x64xf32> to vector<16xf32>
    %19 = vector.shape_cast %18 : vector<16xf32> to vector<16x1xf32>
    %cst_16 = arith.constant 6.400000e+01 : f32
    %20 = vector.broadcast %cst_16 : f32 to vector<16x1xf32>
    %21 = arith.divf %19, %20 : vector<16x1xf32>
    %22 = vector.broadcast %21 : vector<16x1xf32> to vector<16x64xf32>
    %23 = arith.subf %8, %22 : vector<16x64xf32>
    %24 = arith.mulf %23, %23 : vector<16x64xf32>
    %cst_17 = arith.constant dense<0.000000e+00> : vector<16xf32>
    %25 = vector.multi_reduction <add>, %24, %cst_17 [1] : vector<16x64xf32> to vector<16xf32>
    %26 = vector.shape_cast %25 : vector<16xf32> to vector<16x1xf32>
    %cst_18 = arith.constant 6.400000e+01 : f32
    %27 = vector.broadcast %cst_18 : f32 to vector<16x1xf32>
    %28 = arith.divf %26, %27 : vector<16x1xf32>
    %29 = vector.broadcast %21 : vector<16x1xf32> to vector<16x64xf32>
    %30 = arith.subf %8, %29 : vector<16x64xf32>
    %cst_19 = arith.constant 9.99999974E-6 : f32
    %31 = vector.broadcast %cst_19 : f32 to vector<16x1xf32>
    %32 = arith.addf %28, %31 : vector<16x1xf32>
    %33 = math.rsqrt %32 : vector<16x1xf32>
    %34 = vector.broadcast %33 : vector<16x1xf32> to vector<16x64xf32>
    %35 = arith.mulf %30, %34 : vector<16x64xf32>
    %36 = vector.broadcast %15 : vector<1x64xf32> to vector<16x64xf32>
    %37 = arith.mulf %35, %36 : vector<16x64xf32>
    %38 = vector.broadcast %17 : vector<1x64xf32> to vector<16x64xf32>
    %39 = arith.addf %37, %38 : vector<16x64xf32>
    %c0_20 = arith.constant 0 : index
    %c0_21 = arith.constant 0 : index
    %c0_22 = arith.constant 0 : index
    %40 = vector.load %arg6[%c0_20, %c0_21, %c0_22] : memref<2x64x320xf32, #tpu.memory_space<vmem>>, vector<1x64x320xf32>
    %41 = vector.shape_cast %40 : vector<1x64x320xf32> to vector<64x320xf32>
    %cst_23 = arith.constant dense<0.000000e+00> : vector<16x320xf32>
    %42 = tpu.matmul %39, %41, %cst_23 {dimension_numbers = #tpu.dot_dimension_numbers<[1], [0], [0], [1], [0, 0, 1, 1], [], []>} : vector<16x64xf32>, vector<64x320xf32>, vector<16x320xf32> -> vector<16x320xf32>
    %c0_24 = arith.constant 0 : index
    %c0_25 = arith.constant 0 : index
    %c0_26 = arith.constant 0 : index
    %43 = vector.load %arg7[%c0_24, %c0_25, %c0_26] : memref<2x1x320xf32, #tpu.memory_space<vmem>>, vector<1x1x320xf32>
    %44 = vector.shape_cast %43 : vector<1x1x320xf32> to vector<1x320xf32>
    %45 = vector.broadcast %44 : vector<1x320xf32> to vector<16x320xf32>
    %46 = arith.addf %42, %45 : vector<16x320xf32>
    %47 = vector.extract_strided_slice %46 {offsets = [0, 0], sizes = [16, 64], strides = [1, 1]} : vector<16x320xf32> to vector<16x64xf32>
    %48 = vector.extract_strided_slice %46 {offsets = [0, 64], sizes = [16, 64], strides = [1, 1]} : vector<16x320xf32> to vector<16x64xf32>
    %49 = vector.extract_strided_slice %46 {offsets = [0, 128], sizes = [16, 64], strides = [1, 1]} : vector<16x320xf32> to vector<16x64xf32>
    %50 = vector.extract_strided_slice %46 {offsets = [0, 192], sizes = [16, 64], strides = [1, 1]} : vector<16x320xf32> to vector<16x64xf32>
    %51 = vector.extract_strided_slice %46 {offsets = [0, 256], sizes = [16, 64], strides = [1, 1]} : vector<16x320xf32> to vector<16x64xf32>
    %52 = arith.mulf %47, %9 : vector<16x64xf32>
    %53 = arith.mulf %50, %10 : vector<16x64xf32>
    %54 = arith.addf %52, %53 : vector<16x64xf32>
    %55 = arith.mulf %48, %9 : vector<16x64xf32>
    %56 = arith.mulf %51, %10 : vector<16x64xf32>
    %57 = arith.addf %55, %56 : vector<16x64xf32>
    %c0_27 = arith.constant 0 : index
    %c0_28 = arith.constant 0 : index
    %c0_29 = arith.constant 0 : index
    %58 = vector.load %arg8[%c0_27, %c0_28, %c0_29] : memref<2x64x64xf32, #tpu.memory_space<vmem>>, vector<1x64x64xf32>
    %59 = vector.shape_cast %58 : vector<1x64x64xf32> to vector<64x64xf32>
    %cst_30 = arith.constant 0.000000e+00 : f32
    %60 = vector.broadcast %cst_30 : f32 to vector<8x64xf32>
    %61 = vector.extract_strided_slice %54 {offsets = [0, 0], sizes = [8, 16], strides = [1, 1]} : vector<16x64xf32> to vector<8x16xf32>
    %62 = vector.extract_strided_slice %57 {offsets = [0, 0], sizes = [8, 16], strides = [1, 1]} : vector<16x64xf32> to vector<8x16xf32>
    %63 = vector.extract_strided_slice %49 {offsets = [0, 0], sizes = [8, 16], strides = [1, 1]} : vector<16x64xf32> to vector<8x16xf32>
    %cst_31 = arith.constant dense<0.000000e+00> : vector<8x8xf32>
    %64 = tpu.matmul %61, %62, %cst_31 {dimension_numbers = #tpu.dot_dimension_numbers<[1], [1], [0], [0], [0, 0, 1, 0], [], []>} : vector<8x16xf32>, vector<8x16xf32>, vector<8x8xf32> -> vector<8x8xf32>
    %cst_32 = arith.constant 2.500000e-01 : f32
    %65 = vector.broadcast %cst_32 : f32 to vector<8x8xf32>
    %66 = arith.mulf %64, %65 : vector<8x8xf32>
    %cst_33 = arith.constant -1.000000e+30 : f32
    %67 = vector.broadcast %cst_33 : f32 to vector<8x8xf32>
    %68 = arith.select %13, %66, %67 : vector<8x8xi1>, vector<8x8xf32>
    %cst_34 = arith.constant dense<0xFF800000> : vector<8xf32>
    %69 = vector.multi_reduction <maximumf>, %68, %cst_34 [1] : vector<8x8xf32> to vector<8xf32>
    %70 = vector.shape_cast %69 : vector<8xf32> to vector<8x1xf32>
    %71 = vector.broadcast %70 : vector<8x1xf32> to vector<8x8xf32>
    %72 = arith.subf %68, %71 : vector<8x8xf32>
    %73 = math.exp %72 : vector<8x8xf32>
    %cst_35 = arith.constant dense<0.000000e+00> : vector<8xf32>
    %74 = vector.multi_reduction <add>, %73, %cst_35 [1] : vector<8x8xf32> to vector<8xf32>
    %75 = vector.shape_cast %74 : vector<8xf32> to vector<8x1xf32>
    %76 = tpu.reciprocal %75 {approx = true} : vector<8x1xf32> -> vector<8x1xf32>
    %77 = vector.broadcast %76 : vector<8x1xf32> to vector<8x8xf32>
    %78 = arith.mulf %73, %77 : vector<8x8xf32>
    %cst_36 = arith.constant dense<0.000000e+00> : vector<8x16xf32>
    %79 = tpu.matmul %78, %63, %cst_36 {dimension_numbers = #tpu.dot_dimension_numbers<[1], [0], [0], [1], [0, 0, 1, 1], [], []>} : vector<8x8xf32>, vector<8x16xf32>, vector<8x16xf32> -> vector<8x16xf32>
    %80 = vector.extract_strided_slice %59 {offsets = [0, 0], sizes = [16, 64], strides = [1, 1]} : vector<64x64xf32> to vector<16x64xf32>
    %cst_37 = arith.constant dense<0.000000e+00> : vector<8x64xf32>
    %81 = tpu.matmul %79, %80, %cst_37 {dimension_numbers = #tpu.dot_dimension_numbers<[1], [0], [0], [1], [0, 0, 1, 1], [], []>} : vector<8x16xf32>, vector<16x64xf32>, vector<8x64xf32> -> vector<8x64xf32>
    %82 = arith.addf %60, %81 : vector<8x64xf32>
    %83 = vector.extract_strided_slice %54 {offsets = [0, 16], sizes = [8, 16], strides = [1, 1]} : vector<16x64xf32> to vector<8x16xf32>
    %84 = vector.extract_strided_slice %57 {offsets = [0, 16], sizes = [8, 16], strides = [1, 1]} : vector<16x64xf32> to vector<8x16xf32>
    %85 = vector.extract_strided_slice %49 {offsets = [0, 16], sizes = [8, 16], strides = [1, 1]} : vector<16x64xf32> to vector<8x16xf32>
    %cst_38 = arith.constant dense<0.000000e+00> : vector<8x8xf32>
    %86 = tpu.matmul %83, %84, %cst_38 {dimension_numbers = #tpu.dot_dimension_numbers<[1], [1], [0], [0], [0, 0, 1, 0], [], []>} : vector<8x16xf32>, vector<8x16xf32>, vector<8x8xf32> -> vector<8x8xf32>
    %cst_39 = arith.constant 2.500000e-01 : f32
    %87 = vector.broadcast %cst_39 : f32 to vector<8x8xf32>
    %88 = arith.mulf %86, %87 : vector<8x8xf32>
    %cst_40 = arith.constant -1.000000e+30 : f32
    %89 = vector.broadcast %cst_40 : f32 to vector<8x8xf32>
    %90 = arith.select %13, %88, %89 : vector<8x8xi1>, vector<8x8xf32>
    %cst_41 = arith.constant dense<0xFF800000> : vector<8xf32>
    %91 = vector.multi_reduction <maximumf>, %90, %cst_41 [1] : vector<8x8xf32> to vector<8xf32>
    %92 = vector.shape_cast %91 : vector<8xf32> to vector<8x1xf32>
    %93 = vector.broadcast %92 : vector<8x1xf32> to vector<8x8xf32>
    %94 = arith.subf %90, %93 : vector<8x8xf32>
    %95 = math.exp %94 : vector<8x8xf32>
    %cst_42 = arith.constant dense<0.000000e+00> : vector<8xf32>
    %96 = vector.multi_reduction <add>, %95, %cst_42 [1] : vector<8x8xf32> to vector<8xf32>
    %97 = vector.shape_cast %96 : vector<8xf32> to vector<8x1xf32>
    %98 = tpu.reciprocal %97 {approx = true} : vector<8x1xf32> -> vector<8x1xf32>
    %99 = vector.broadcast %98 : vector<8x1xf32> to vector<8x8xf32>
    %100 = arith.mulf %95, %99 : vector<8x8xf32>
    %cst_43 = arith.constant dense<0.000000e+00> : vector<8x16xf32>
    %101 = tpu.matmul %100, %85, %cst_43 {dimension_numbers = #tpu.dot_dimension_numbers<[1], [0], [0], [1], [0, 0, 1, 1], [], []>} : vector<8x8xf32>, vector<8x16xf32>, vector<8x16xf32> -> vector<8x16xf32>
    %102 = vector.extract_strided_slice %59 {offsets = [16, 0], sizes = [16, 64], strides = [1, 1]} : vector<64x64xf32> to vector<16x64xf32>
    %cst_44 = arith.constant dense<0.000000e+00> : vector<8x64xf32>
    %103 = tpu.matmul %101, %102, %cst_44 {dimension_numbers = #tpu.dot_dimension_numbers<[1], [0], [0], [1], [0, 0, 1, 1], [], []>} : vector<8x16xf32>, vector<16x64xf32>, vector<8x64xf32> -> vector<8x64xf32>
    %104 = arith.addf %82, %103 : vector<8x64xf32>
    %105 = vector.extract_strided_slice %54 {offsets = [0, 32], sizes = [8, 16], strides = [1, 1]} : vector<16x64xf32> to vector<8x16xf32>
    %106 = vector.extract_strided_slice %57 {offsets = [0, 32], sizes = [8, 16], strides = [1, 1]} : vector<16x64xf32> to vector<8x16xf32>
    %107 = vector.extract_strided_slice %49 {offsets = [0, 32], sizes = [8, 16], strides = [1, 1]} : vector<16x64xf32> to vector<8x16xf32>
    %cst_45 = arith.constant dense<0.000000e+00> : vector<8x8xf32>
    %108 = tpu.matmul %105, %106, %cst_45 {dimension_numbers = #tpu.dot_dimension_numbers<[1], [1], [0], [0], [0, 0, 1, 0], [], []>} : vector<8x16xf32>, vector<8x16xf32>, vector<8x8xf32> -> vector<8x8xf32>
    %cst_46 = arith.constant 2.500000e-01 : f32
    %109 = vector.broadcast %cst_46 : f32 to vector<8x8xf32>
    %110 = arith.mulf %108, %109 : vector<8x8xf32>
    %cst_47 = arith.constant -1.000000e+30 : f32
    %111 = vector.broadcast %cst_47 : f32 to vector<8x8xf32>
    %112 = arith.select %13, %110, %111 : vector<8x8xi1>, vector<8x8xf32>
    %cst_48 = arith.constant dense<0xFF800000> : vector<8xf32>
    %113 = vector.multi_reduction <maximumf>, %112, %cst_48 [1] : vector<8x8xf32> to vector<8xf32>
    %114 = vector.shape_cast %113 : vector<8xf32> to vector<8x1xf32>
    %115 = vector.broadcast %114 : vector<8x1xf32> to vector<8x8xf32>
    %116 = arith.subf %112, %115 : vector<8x8xf32>
    %117 = math.exp %116 : vector<8x8xf32>
    %cst_49 = arith.constant dense<0.000000e+00> : vector<8xf32>
    %118 = vector.multi_reduction <add>, %117, %cst_49 [1] : vector<8x8xf32> to vector<8xf32>
    %119 = vector.shape_cast %118 : vector<8xf32> to vector<8x1xf32>
    %120 = tpu.reciprocal %119 {approx = true} : vector<8x1xf32> -> vector<8x1xf32>
    %121 = vector.broadcast %120 : vector<8x1xf32> to vector<8x8xf32>
    %122 = arith.mulf %117, %121 : vector<8x8xf32>
    %cst_50 = arith.constant dense<0.000000e+00> : vector<8x16xf32>
    %123 = tpu.matmul %122, %107, %cst_50 {dimension_numbers = #tpu.dot_dimension_numbers<[1], [0], [0], [1], [0, 0, 1, 1], [], []>} : vector<8x8xf32>, vector<8x16xf32>, vector<8x16xf32> -> vector<8x16xf32>
    %124 = vector.extract_strided_slice %59 {offsets = [32, 0], sizes = [16, 64], strides = [1, 1]} : vector<64x64xf32> to vector<16x64xf32>
    %cst_51 = arith.constant dense<0.000000e+00> : vector<8x64xf32>
    %125 = tpu.matmul %123, %124, %cst_51 {dimension_numbers = #tpu.dot_dimension_numbers<[1], [0], [0], [1], [0, 0, 1, 1], [], []>} : vector<8x16xf32>, vector<16x64xf32>, vector<8x64xf32> -> vector<8x64xf32>
    %126 = arith.addf %104, %125 : vector<8x64xf32>
    %127 = vector.extract_strided_slice %54 {offsets = [0, 48], sizes = [8, 16], strides = [1, 1]} : vector<16x64xf32> to vector<8x16xf32>
    %128 = vector.extract_strided_slice %57 {offsets = [0, 48], sizes = [8, 16], strides = [1, 1]} : vector<16x64xf32> to vector<8x16xf32>
    %129 = vector.extract_strided_slice %49 {offsets = [0, 48], sizes = [8, 16], strides = [1, 1]} : vector<16x64xf32> to vector<8x16xf32>
    %cst_52 = arith.constant dense<0.000000e+00> : vector<8x8xf32>
    %130 = tpu.matmul %127, %128, %cst_52 {dimension_numbers = #tpu.dot_dimension_numbers<[1], [1], [0], [0], [0, 0, 1, 0], [], []>} : vector<8x16xf32>, vector<8x16xf32>, vector<8x8xf32> -> vector<8x8xf32>
    %cst_53 = arith.constant 2.500000e-01 : f32
    %131 = vector.broadcast %cst_53 : f32 to vector<8x8xf32>
    %132 = arith.mulf %130, %131 : vector<8x8xf32>
    %cst_54 = arith.constant -1.000000e+30 : f32
    %133 = vector.broadcast %cst_54 : f32 to vector<8x8xf32>
    %134 = arith.select %13, %132, %133 : vector<8x8xi1>, vector<8x8xf32>
    %cst_55 = arith.constant dense<0xFF800000> : vector<8xf32>
    %135 = vector.multi_reduction <maximumf>, %134, %cst_55 [1] : vector<8x8xf32> to vector<8xf32>
    %136 = vector.shape_cast %135 : vector<8xf32> to vector<8x1xf32>
    %137 = vector.broadcast %136 : vector<8x1xf32> to vector<8x8xf32>
    %138 = arith.subf %134, %137 : vector<8x8xf32>
    %139 = math.exp %138 : vector<8x8xf32>
    %cst_56 = arith.constant dense<0.000000e+00> : vector<8xf32>
    %140 = vector.multi_reduction <add>, %139, %cst_56 [1] : vector<8x8xf32> to vector<8xf32>
    %141 = vector.shape_cast %140 : vector<8xf32> to vector<8x1xf32>
    %142 = tpu.reciprocal %141 {approx = true} : vector<8x1xf32> -> vector<8x1xf32>
    %143 = vector.broadcast %142 : vector<8x1xf32> to vector<8x8xf32>
    %144 = arith.mulf %139, %143 : vector<8x8xf32>
    %cst_57 = arith.constant dense<0.000000e+00> : vector<8x16xf32>
    %145 = tpu.matmul %144, %129, %cst_57 {dimension_numbers = #tpu.dot_dimension_numbers<[1], [0], [0], [1], [0, 0, 1, 1], [], []>} : vector<8x8xf32>, vector<8x16xf32>, vector<8x16xf32> -> vector<8x16xf32>
    %146 = vector.extract_strided_slice %59 {offsets = [48, 0], sizes = [16, 64], strides = [1, 1]} : vector<64x64xf32> to vector<16x64xf32>
    %cst_58 = arith.constant dense<0.000000e+00> : vector<8x64xf32>
    %147 = tpu.matmul %145, %146, %cst_58 {dimension_numbers = #tpu.dot_dimension_numbers<[1], [0], [0], [1], [0, 0, 1, 1], [], []>} : vector<8x16xf32>, vector<16x64xf32>, vector<8x64xf32> -> vector<8x64xf32>
    %148 = arith.addf %126, %147 : vector<8x64xf32>
    %cst_59 = arith.constant 0.000000e+00 : f32
    %149 = vector.broadcast %cst_59 : f32 to vector<8x64xf32>
    %150 = vector.extract_strided_slice %54 {offsets = [8, 0], sizes = [8, 16], strides = [1, 1]} : vector<16x64xf32> to vector<8x16xf32>
    %151 = vector.extract_strided_slice %57 {offsets = [8, 0], sizes = [8, 16], strides = [1, 1]} : vector<16x64xf32> to vector<8x16xf32>
    %152 = vector.extract_strided_slice %49 {offsets = [8, 0], sizes = [8, 16], strides = [1, 1]} : vector<16x64xf32> to vector<8x16xf32>
    %cst_60 = arith.constant dense<0.000000e+00> : vector<8x8xf32>
    %153 = tpu.matmul %150, %151, %cst_60 {dimension_numbers = #tpu.dot_dimension_numbers<[1], [1], [0], [0], [0, 0, 1, 0], [], []>} : vector<8x16xf32>, vector<8x16xf32>, vector<8x8xf32> -> vector<8x8xf32>
    %cst_61 = arith.constant 2.500000e-01 : f32
    %154 = vector.broadcast %cst_61 : f32 to vector<8x8xf32>
    %155 = arith.mulf %153, %154 : vector<8x8xf32>
    %cst_62 = arith.constant -1.000000e+30 : f32
    %156 = vector.broadcast %cst_62 : f32 to vector<8x8xf32>
    %157 = arith.select %13, %155, %156 : vector<8x8xi1>, vector<8x8xf32>
    %cst_63 = arith.constant dense<0xFF800000> : vector<8xf32>
    %158 = vector.multi_reduction <maximumf>, %157, %cst_63 [1] : vector<8x8xf32> to vector<8xf32>
    %159 = vector.shape_cast %158 : vector<8xf32> to vector<8x1xf32>
    %160 = vector.broadcast %159 : vector<8x1xf32> to vector<8x8xf32>
    %161 = arith.subf %157, %160 : vector<8x8xf32>
    %162 = math.exp %161 : vector<8x8xf32>
    %cst_64 = arith.constant dense<0.000000e+00> : vector<8xf32>
    %163 = vector.multi_reduction <add>, %162, %cst_64 [1] : vector<8x8xf32> to vector<8xf32>
    %164 = vector.shape_cast %163 : vector<8xf32> to vector<8x1xf32>
    %165 = tpu.reciprocal %164 {approx = true} : vector<8x1xf32> -> vector<8x1xf32>
    %166 = vector.broadcast %165 : vector<8x1xf32> to vector<8x8xf32>
    %167 = arith.mulf %162, %166 : vector<8x8xf32>
    %cst_65 = arith.constant dense<0.000000e+00> : vector<8x16xf32>
    %168 = tpu.matmul %167, %152, %cst_65 {dimension_numbers = #tpu.dot_dimension_numbers<[1], [0], [0], [1], [0, 0, 1, 1], [], []>} : vector<8x8xf32>, vector<8x16xf32>, vector<8x16xf32> -> vector<8x16xf32>
    %169 = vector.extract_strided_slice %59 {offsets = [0, 0], sizes = [16, 64], strides = [1, 1]} : vector<64x64xf32> to vector<16x64xf32>
    %cst_66 = arith.constant dense<0.000000e+00> : vector<8x64xf32>
    %170 = tpu.matmul %168, %169, %cst_66 {dimension_numbers = #tpu.dot_dimension_numbers<[1], [0], [0], [1], [0, 0, 1, 1], [], []>} : vector<8x16xf32>, vector<16x64xf32>, vector<8x64xf32> -> vector<8x64xf32>
    %171 = arith.addf %149, %170 : vector<8x64xf32>
    %172 = vector.extract_strided_slice %54 {offsets = [8, 16], sizes = [8, 16], strides = [1, 1]} : vector<16x64xf32> to vector<8x16xf32>
    %173 = vector.extract_strided_slice %57 {offsets = [8, 16], sizes = [8, 16], strides = [1, 1]} : vector<16x64xf32> to vector<8x16xf32>
    %174 = vector.extract_strided_slice %49 {offsets = [8, 16], sizes = [8, 16], strides = [1, 1]} : vector<16x64xf32> to vector<8x16xf32>
    %cst_67 = arith.constant dense<0.000000e+00> : vector<8x8xf32>
    %175 = tpu.matmul %172, %173, %cst_67 {dimension_numbers = #tpu.dot_dimension_numbers<[1], [1], [0], [0], [0, 0, 1, 0], [], []>} : vector<8x16xf32>, vector<8x16xf32>, vector<8x8xf32> -> vector<8x8xf32>
    %cst_68 = arith.constant 2.500000e-01 : f32
    %176 = vector.broadcast %cst_68 : f32 to vector<8x8xf32>
    %177 = arith.mulf %175, %176 : vector<8x8xf32>
    %cst_69 = arith.constant -1.000000e+30 : f32
    %178 = vector.broadcast %cst_69 : f32 to vector<8x8xf32>
    %179 = arith.select %13, %177, %178 : vector<8x8xi1>, vector<8x8xf32>
    %cst_70 = arith.constant dense<0xFF800000> : vector<8xf32>
    %180 = vector.multi_reduction <maximumf>, %179, %cst_70 [1] : vector<8x8xf32> to vector<8xf32>
    %181 = vector.shape_cast %180 : vector<8xf32> to vector<8x1xf32>
    %182 = vector.broadcast %181 : vector<8x1xf32> to vector<8x8xf32>
    %183 = arith.subf %179, %182 : vector<8x8xf32>
    %184 = math.exp %183 : vector<8x8xf32>
    %cst_71 = arith.constant dense<0.000000e+00> : vector<8xf32>
    %185 = vector.multi_reduction <add>, %184, %cst_71 [1] : vector<8x8xf32> to vector<8xf32>
    %186 = vector.shape_cast %185 : vector<8xf32> to vector<8x1xf32>
    %187 = tpu.reciprocal %186 {approx = true} : vector<8x1xf32> -> vector<8x1xf32>
    %188 = vector.broadcast %187 : vector<8x1xf32> to vector<8x8xf32>
    %189 = arith.mulf %184, %188 : vector<8x8xf32>
    %cst_72 = arith.constant dense<0.000000e+00> : vector<8x16xf32>
    %190 = tpu.matmul %189, %174, %cst_72 {dimension_numbers = #tpu.dot_dimension_numbers<[1], [0], [0], [1], [0, 0, 1, 1], [], []>} : vector<8x8xf32>, vector<8x16xf32>, vector<8x16xf32> -> vector<8x16xf32>
    %191 = vector.extract_strided_slice %59 {offsets = [16, 0], sizes = [16, 64], strides = [1, 1]} : vector<64x64xf32> to vector<16x64xf32>
    %cst_73 = arith.constant dense<0.000000e+00> : vector<8x64xf32>
    %192 = tpu.matmul %190, %191, %cst_73 {dimension_numbers = #tpu.dot_dimension_numbers<[1], [0], [0], [1], [0, 0, 1, 1], [], []>} : vector<8x16xf32>, vector<16x64xf32>, vector<8x64xf32> -> vector<8x64xf32>
    %193 = arith.addf %171, %192 : vector<8x64xf32>
    %194 = vector.extract_strided_slice %54 {offsets = [8, 32], sizes = [8, 16], strides = [1, 1]} : vector<16x64xf32> to vector<8x16xf32>
    %195 = vector.extract_strided_slice %57 {offsets = [8, 32], sizes = [8, 16], strides = [1, 1]} : vector<16x64xf32> to vector<8x16xf32>
    %196 = vector.extract_strided_slice %49 {offsets = [8, 32], sizes = [8, 16], strides = [1, 1]} : vector<16x64xf32> to vector<8x16xf32>
    %cst_74 = arith.constant dense<0.000000e+00> : vector<8x8xf32>
    %197 = tpu.matmul %194, %195, %cst_74 {dimension_numbers = #tpu.dot_dimension_numbers<[1], [1], [0], [0], [0, 0, 1, 0], [], []>} : vector<8x16xf32>, vector<8x16xf32>, vector<8x8xf32> -> vector<8x8xf32>
    %cst_75 = arith.constant 2.500000e-01 : f32
    %198 = vector.broadcast %cst_75 : f32 to vector<8x8xf32>
    %199 = arith.mulf %197, %198 : vector<8x8xf32>
    %cst_76 = arith.constant -1.000000e+30 : f32
    %200 = vector.broadcast %cst_76 : f32 to vector<8x8xf32>
    %201 = arith.select %13, %199, %200 : vector<8x8xi1>, vector<8x8xf32>
    %cst_77 = arith.constant dense<0xFF800000> : vector<8xf32>
    %202 = vector.multi_reduction <maximumf>, %201, %cst_77 [1] : vector<8x8xf32> to vector<8xf32>
    %203 = vector.shape_cast %202 : vector<8xf32> to vector<8x1xf32>
    %204 = vector.broadcast %203 : vector<8x1xf32> to vector<8x8xf32>
    %205 = arith.subf %201, %204 : vector<8x8xf32>
    %206 = math.exp %205 : vector<8x8xf32>
    %cst_78 = arith.constant dense<0.000000e+00> : vector<8xf32>
    %207 = vector.multi_reduction <add>, %206, %cst_78 [1] : vector<8x8xf32> to vector<8xf32>
    %208 = vector.shape_cast %207 : vector<8xf32> to vector<8x1xf32>
    %209 = tpu.reciprocal %208 {approx = true} : vector<8x1xf32> -> vector<8x1xf32>
    %210 = vector.broadcast %209 : vector<8x1xf32> to vector<8x8xf32>
    %211 = arith.mulf %206, %210 : vector<8x8xf32>
    %cst_79 = arith.constant dense<0.000000e+00> : vector<8x16xf32>
    %212 = tpu.matmul %211, %196, %cst_79 {dimension_numbers = #tpu.dot_dimension_numbers<[1], [0], [0], [1], [0, 0, 1, 1], [], []>} : vector<8x8xf32>, vector<8x16xf32>, vector<8x16xf32> -> vector<8x16xf32>
    %213 = vector.extract_strided_slice %59 {offsets = [32, 0], sizes = [16, 64], strides = [1, 1]} : vector<64x64xf32> to vector<16x64xf32>
    %cst_80 = arith.constant dense<0.000000e+00> : vector<8x64xf32>
    %214 = tpu.matmul %212, %213, %cst_80 {dimension_numbers = #tpu.dot_dimension_numbers<[1], [0], [0], [1], [0, 0, 1, 1], [], []>} : vector<8x16xf32>, vector<16x64xf32>, vector<8x64xf32> -> vector<8x64xf32>
    %215 = arith.addf %193, %214 : vector<8x64xf32>
    %216 = vector.extract_strided_slice %54 {offsets = [8, 48], sizes = [8, 16], strides = [1, 1]} : vector<16x64xf32> to vector<8x16xf32>
    %217 = vector.extract_strided_slice %57 {offsets = [8, 48], sizes = [8, 16], strides = [1, 1]} : vector<16x64xf32> to vector<8x16xf32>
    %218 = vector.extract_strided_slice %49 {offsets = [8, 48], sizes = [8, 16], strides = [1, 1]} : vector<16x64xf32> to vector<8x16xf32>
    %cst_81 = arith.constant dense<0.000000e+00> : vector<8x8xf32>
    %219 = tpu.matmul %216, %217, %cst_81 {dimension_numbers = #tpu.dot_dimension_numbers<[1], [1], [0], [0], [0, 0, 1, 0], [], []>} : vector<8x16xf32>, vector<8x16xf32>, vector<8x8xf32> -> vector<8x8xf32>
    %cst_82 = arith.constant 2.500000e-01 : f32
    %220 = vector.broadcast %cst_82 : f32 to vector<8x8xf32>
    %221 = arith.mulf %219, %220 : vector<8x8xf32>
    %cst_83 = arith.constant -1.000000e+30 : f32
    %222 = vector.broadcast %cst_83 : f32 to vector<8x8xf32>
    %223 = arith.select %13, %221, %222 : vector<8x8xi1>, vector<8x8xf32>
    %cst_84 = arith.constant dense<0xFF800000> : vector<8xf32>
    %224 = vector.multi_reduction <maximumf>, %223, %cst_84 [1] : vector<8x8xf32> to vector<8xf32>
    %225 = vector.shape_cast %224 : vector<8xf32> to vector<8x1xf32>
    %226 = vector.broadcast %225 : vector<8x1xf32> to vector<8x8xf32>
    %227 = arith.subf %223, %226 : vector<8x8xf32>
    %228 = math.exp %227 : vector<8x8xf32>
    %cst_85 = arith.constant dense<0.000000e+00> : vector<8xf32>
    %229 = vector.multi_reduction <add>, %228, %cst_85 [1] : vector<8x8xf32> to vector<8xf32>
    %230 = vector.shape_cast %229 : vector<8xf32> to vector<8x1xf32>
    %231 = tpu.reciprocal %230 {approx = true} : vector<8x1xf32> -> vector<8x1xf32>
    %232 = vector.broadcast %231 : vector<8x1xf32> to vector<8x8xf32>
    %233 = arith.mulf %228, %232 : vector<8x8xf32>
    %cst_86 = arith.constant dense<0.000000e+00> : vector<8x16xf32>
    %234 = tpu.matmul %233, %218, %cst_86 {dimension_numbers = #tpu.dot_dimension_numbers<[1], [0], [0], [1], [0, 0, 1, 1], [], []>} : vector<8x8xf32>, vector<8x16xf32>, vector<8x16xf32> -> vector<8x16xf32>
    %235 = vector.extract_strided_slice %59 {offsets = [48, 0], sizes = [16, 64], strides = [1, 1]} : vector<64x64xf32> to vector<16x64xf32>
    %cst_87 = arith.constant dense<0.000000e+00> : vector<8x64xf32>
    %236 = tpu.matmul %234, %235, %cst_87 {dimension_numbers = #tpu.dot_dimension_numbers<[1], [0], [0], [1], [0, 0, 1, 1], [], []>} : vector<8x16xf32>, vector<16x64xf32>, vector<8x64xf32> -> vector<8x64xf32>
    %237 = arith.addf %215, %236 : vector<8x64xf32>
    %238 = tpu.concatenate %148, %237 in 0 : vector<8x64xf32>, vector<8x64xf32> -> vector<16x64xf32>
    %c0_88 = arith.constant 0 : index
    %c0_89 = arith.constant 0 : index
    %c0_90 = arith.constant 0 : index
    %239 = vector.load %arg9[%c0_88, %c0_89, %c0_90] : memref<2x1x64xf32, #tpu.memory_space<vmem>>, vector<1x1x64xf32>
    %240 = vector.shape_cast %239 : vector<1x1x64xf32> to vector<1x64xf32>
    %241 = vector.broadcast %240 : vector<1x64xf32> to vector<16x64xf32>
    %242 = arith.addf %238, %241 : vector<16x64xf32>
    %c0_91 = arith.constant 0 : index
    %c0_92 = arith.constant 0 : index
    %c0_93 = arith.constant 0 : index
    %243 = vector.load %arg10[%c0_91, %c0_92, %c0_93] : memref<2x64x128xf32, #tpu.memory_space<vmem>>, vector<1x64x128xf32>
    %244 = vector.shape_cast %243 : vector<1x64x128xf32> to vector<64x128xf32>
    %cst_94 = arith.constant dense<0.000000e+00> : vector<16x128xf32>
    %245 = tpu.matmul %39, %244, %cst_94 {dimension_numbers = #tpu.dot_dimension_numbers<[1], [0], [0], [1], [0, 0, 1, 1], [], []>} : vector<16x64xf32>, vector<64x128xf32>, vector<16x128xf32> -> vector<16x128xf32>
    %c0_95 = arith.constant 0 : index
    %c0_96 = arith.constant 0 : index
    %c0_97 = arith.constant 0 : index
    %246 = vector.load %arg11[%c0_95, %c0_96, %c0_97] : memref<2x1x128xf32, #tpu.memory_space<vmem>>, vector<1x1x128xf32>
    %247 = vector.shape_cast %246 : vector<1x1x128xf32> to vector<1x128xf32>
    %248 = vector.broadcast %247 : vector<1x128xf32> to vector<16x128xf32>
    %249 = arith.addf %245, %248 : vector<16x128xf32>
    %cst_98 = arith.constant 5.000000e-01 : f32
    %250 = vector.broadcast %cst_98 : f32 to vector<16x128xf32>
    %251 = arith.mulf %250, %249 : vector<16x128xf32>
    %cst_99 = arith.constant 4.471500e-02 : f32
    %252 = vector.broadcast %cst_99 : f32 to vector<16x128xf32>
    %253 = arith.mulf %252, %249 : vector<16x128xf32>
    %254 = arith.mulf %253, %249 : vector<16x128xf32>
    %255 = arith.mulf %254, %249 : vector<16x128xf32>
    %256 = arith.addf %249, %255 : vector<16x128xf32>
    %cst_100 = arith.constant 0.797884583 : f32
    %257 = vector.broadcast %cst_100 : f32 to vector<16x128xf32>
    %258 = arith.mulf %257, %256 : vector<16x128xf32>
    %259 = math.tanh %258 : vector<16x128xf32>
    %cst_101 = arith.constant 1.000000e+00 : f32
    %260 = vector.broadcast %cst_101 : f32 to vector<16x128xf32>
    %261 = arith.addf %260, %259 : vector<16x128xf32>
    %262 = arith.mulf %251, %261 : vector<16x128xf32>
    %c0_102 = arith.constant 0 : index
    %c0_103 = arith.constant 0 : index
    %c0_104 = arith.constant 0 : index
    %263 = vector.load %arg12[%c0_102, %c0_103, %c0_104] : memref<2x128x64xf32, #tpu.memory_space<vmem>>, vector<1x128x64xf32>
    %264 = vector.shape_cast %263 : vector<1x128x64xf32> to vector<128x64xf32>
    %cst_105 = arith.constant dense<0.000000e+00> : vector<16x64xf32>
    %265 = tpu.matmul %262, %264, %cst_105 {dimension_numbers = #tpu.dot_dimension_numbers<[1], [0], [0], [1], [0, 0, 1, 1], [], []>} : vector<16x128xf32>, vector<128x64xf32>, vector<16x64xf32> -> vector<16x64xf32>
    %c0_106 = arith.constant 0 : index
    %c0_107 = arith.constant 0 : index
    %c0_108 = arith.constant 0 : index
    %266 = vector.load %arg13[%c0_106, %c0_107, %c0_108] : memref<2x1x64xf32, #tpu.memory_space<vmem>>, vector<1x1x64xf32>
    %267 = vector.shape_cast %266 : vector<1x1x64xf32> to vector<1x64xf32>
    %268 = vector.broadcast %267 : vector<1x64xf32> to vector<16x64xf32>
    %269 = arith.addf %265, %268 : vector<16x64xf32>
    %270 = arith.addf %269, %242 : vector<16x64xf32>
    %271 = arith.addf %270, %8 : vector<16x64xf32>
    %c1 = arith.constant 1 : index
    %c0_109 = arith.constant 0 : index
    %c0_110 = arith.constant 0 : index
    %272 = vector.load %arg4[%c1, %c0_109, %c0_110] : memref<2x1x64xf32, #tpu.memory_space<vmem>>, vector<1x1x64xf32>
    %273 = vector.shape_cast %272 : vector<1x1x64xf32> to vector<1x64xf32>
    %c1_111 = arith.constant 1 : index
    %c0_112 = arith.constant 0 : index
    %c0_113 = arith.constant 0 : index
    %274 = vector.load %arg5[%c1_111, %c0_112, %c0_113] : memref<2x1x64xf32, #tpu.memory_space<vmem>>, vector<1x1x64xf32>
    %275 = vector.shape_cast %274 : vector<1x1x64xf32> to vector<1x64xf32>
    %cst_114 = arith.constant dense<0.000000e+00> : vector<16xf32>
    %276 = vector.multi_reduction <add>, %271, %cst_114 [1] : vector<16x64xf32> to vector<16xf32>
    %277 = vector.shape_cast %276 : vector<16xf32> to vector<16x1xf32>
    %cst_115 = arith.constant 6.400000e+01 : f32
    %278 = vector.broadcast %cst_115 : f32 to vector<16x1xf32>
    %279 = arith.divf %277, %278 : vector<16x1xf32>
    %280 = vector.broadcast %279 : vector<16x1xf32> to vector<16x64xf32>
    %281 = arith.subf %271, %280 : vector<16x64xf32>
    %282 = arith.mulf %281, %281 : vector<16x64xf32>
    %cst_116 = arith.constant dense<0.000000e+00> : vector<16xf32>
    %283 = vector.multi_reduction <add>, %282, %cst_116 [1] : vector<16x64xf32> to vector<16xf32>
    %284 = vector.shape_cast %283 : vector<16xf32> to vector<16x1xf32>
    %cst_117 = arith.constant 6.400000e+01 : f32
    %285 = vector.broadcast %cst_117 : f32 to vector<16x1xf32>
    %286 = arith.divf %284, %285 : vector<16x1xf32>
    %287 = vector.broadcast %279 : vector<16x1xf32> to vector<16x64xf32>
    %288 = arith.subf %271, %287 : vector<16x64xf32>
    %cst_118 = arith.constant 9.99999974E-6 : f32
    %289 = vector.broadcast %cst_118 : f32 to vector<16x1xf32>
    %290 = arith.addf %286, %289 : vector<16x1xf32>
    %291 = math.rsqrt %290 : vector<16x1xf32>
    %292 = vector.broadcast %291 : vector<16x1xf32> to vector<16x64xf32>
    %293 = arith.mulf %288, %292 : vector<16x64xf32>
    %294 = vector.broadcast %273 : vector<1x64xf32> to vector<16x64xf32>
    %295 = arith.mulf %293, %294 : vector<16x64xf32>
    %296 = vector.broadcast %275 : vector<1x64xf32> to vector<16x64xf32>
    %297 = arith.addf %295, %296 : vector<16x64xf32>
    %c1_119 = arith.constant 1 : index
    %c0_120 = arith.constant 0 : index
    %c0_121 = arith.constant 0 : index
    %298 = vector.load %arg6[%c1_119, %c0_120, %c0_121] : memref<2x64x320xf32, #tpu.memory_space<vmem>>, vector<1x64x320xf32>
    %299 = vector.shape_cast %298 : vector<1x64x320xf32> to vector<64x320xf32>
    %cst_122 = arith.constant dense<0.000000e+00> : vector<16x320xf32>
    %300 = tpu.matmul %297, %299, %cst_122 {dimension_numbers = #tpu.dot_dimension_numbers<[1], [0], [0], [1], [0, 0, 1, 1], [], []>} : vector<16x64xf32>, vector<64x320xf32>, vector<16x320xf32> -> vector<16x320xf32>
    %c1_123 = arith.constant 1 : index
    %c0_124 = arith.constant 0 : index
    %c0_125 = arith.constant 0 : index
    %301 = vector.load %arg7[%c1_123, %c0_124, %c0_125] : memref<2x1x320xf32, #tpu.memory_space<vmem>>, vector<1x1x320xf32>
    %302 = vector.shape_cast %301 : vector<1x1x320xf32> to vector<1x320xf32>
    %303 = vector.broadcast %302 : vector<1x320xf32> to vector<16x320xf32>
    %304 = arith.addf %300, %303 : vector<16x320xf32>
    %305 = vector.extract_strided_slice %304 {offsets = [0, 0], sizes = [16, 64], strides = [1, 1]} : vector<16x320xf32> to vector<16x64xf32>
    %306 = vector.extract_strided_slice %304 {offsets = [0, 64], sizes = [16, 64], strides = [1, 1]} : vector<16x320xf32> to vector<16x64xf32>
    %307 = vector.extract_strided_slice %304 {offsets = [0, 128], sizes = [16, 64], strides = [1, 1]} : vector<16x320xf32> to vector<16x64xf32>
    %308 = vector.extract_strided_slice %304 {offsets = [0, 192], sizes = [16, 64], strides = [1, 1]} : vector<16x320xf32> to vector<16x64xf32>
    %309 = vector.extract_strided_slice %304 {offsets = [0, 256], sizes = [16, 64], strides = [1, 1]} : vector<16x320xf32> to vector<16x64xf32>
    %310 = arith.mulf %305, %9 : vector<16x64xf32>
    %311 = arith.mulf %308, %10 : vector<16x64xf32>
    %312 = arith.addf %310, %311 : vector<16x64xf32>
    %313 = arith.mulf %306, %9 : vector<16x64xf32>
    %314 = arith.mulf %309, %10 : vector<16x64xf32>
    %315 = arith.addf %313, %314 : vector<16x64xf32>
    %c1_126 = arith.constant 1 : index
    %c0_127 = arith.constant 0 : index
    %c0_128 = arith.constant 0 : index
    %316 = vector.load %arg8[%c1_126, %c0_127, %c0_128] : memref<2x64x64xf32, #tpu.memory_space<vmem>>, vector<1x64x64xf32>
    %317 = vector.shape_cast %316 : vector<1x64x64xf32> to vector<64x64xf32>
    %cst_129 = arith.constant 0.000000e+00 : f32
    %318 = vector.broadcast %cst_129 : f32 to vector<8x64xf32>
    %319 = vector.extract_strided_slice %312 {offsets = [0, 0], sizes = [8, 16], strides = [1, 1]} : vector<16x64xf32> to vector<8x16xf32>
    %320 = vector.extract_strided_slice %315 {offsets = [0, 0], sizes = [8, 16], strides = [1, 1]} : vector<16x64xf32> to vector<8x16xf32>
    %321 = vector.extract_strided_slice %307 {offsets = [0, 0], sizes = [8, 16], strides = [1, 1]} : vector<16x64xf32> to vector<8x16xf32>
    %cst_130 = arith.constant dense<0.000000e+00> : vector<8x8xf32>
    %322 = tpu.matmul %319, %320, %cst_130 {dimension_numbers = #tpu.dot_dimension_numbers<[1], [1], [0], [0], [0, 0, 1, 0], [], []>} : vector<8x16xf32>, vector<8x16xf32>, vector<8x8xf32> -> vector<8x8xf32>
    %cst_131 = arith.constant 2.500000e-01 : f32
    %323 = vector.broadcast %cst_131 : f32 to vector<8x8xf32>
    %324 = arith.mulf %322, %323 : vector<8x8xf32>
    %cst_132 = arith.constant -1.000000e+30 : f32
    %325 = vector.broadcast %cst_132 : f32 to vector<8x8xf32>
    %326 = arith.select %13, %324, %325 : vector<8x8xi1>, vector<8x8xf32>
    %cst_133 = arith.constant dense<0xFF800000> : vector<8xf32>
    %327 = vector.multi_reduction <maximumf>, %326, %cst_133 [1] : vector<8x8xf32> to vector<8xf32>
    %328 = vector.shape_cast %327 : vector<8xf32> to vector<8x1xf32>
    %329 = vector.broadcast %328 : vector<8x1xf32> to vector<8x8xf32>
    %330 = arith.subf %326, %329 : vector<8x8xf32>
    %331 = math.exp %330 : vector<8x8xf32>
    %cst_134 = arith.constant dense<0.000000e+00> : vector<8xf32>
    %332 = vector.multi_reduction <add>, %331, %cst_134 [1] : vector<8x8xf32> to vector<8xf32>
    %333 = vector.shape_cast %332 : vector<8xf32> to vector<8x1xf32>
    %334 = tpu.reciprocal %333 {approx = true} : vector<8x1xf32> -> vector<8x1xf32>
    %335 = vector.broadcast %334 : vector<8x1xf32> to vector<8x8xf32>
    %336 = arith.mulf %331, %335 : vector<8x8xf32>
    %cst_135 = arith.constant dense<0.000000e+00> : vector<8x16xf32>
    %337 = tpu.matmul %336, %321, %cst_135 {dimension_numbers = #tpu.dot_dimension_numbers<[1], [0], [0], [1], [0, 0, 1, 1], [], []>} : vector<8x8xf32>, vector<8x16xf32>, vector<8x16xf32> -> vector<8x16xf32>
    %338 = vector.extract_strided_slice %317 {offsets = [0, 0], sizes = [16, 64], strides = [1, 1]} : vector<64x64xf32> to vector<16x64xf32>
    %cst_136 = arith.constant dense<0.000000e+00> : vector<8x64xf32>
    %339 = tpu.matmul %337, %338, %cst_136 {dimension_numbers = #tpu.dot_dimension_numbers<[1], [0], [0], [1], [0, 0, 1, 1], [], []>} : vector<8x16xf32>, vector<16x64xf32>, vector<8x64xf32> -> vector<8x64xf32>
    %340 = arith.addf %318, %339 : vector<8x64xf32>
    %341 = vector.extract_strided_slice %312 {offsets = [0, 16], sizes = [8, 16], strides = [1, 1]} : vector<16x64xf32> to vector<8x16xf32>
    %342 = vector.extract_strided_slice %315 {offsets = [0, 16], sizes = [8, 16], strides = [1, 1]} : vector<16x64xf32> to vector<8x16xf32>
    %343 = vector.extract_strided_slice %307 {offsets = [0, 16], sizes = [8, 16], strides = [1, 1]} : vector<16x64xf32> to vector<8x16xf32>
    %cst_137 = arith.constant dense<0.000000e+00> : vector<8x8xf32>
    %344 = tpu.matmul %341, %342, %cst_137 {dimension_numbers = #tpu.dot_dimension_numbers<[1], [1], [0], [0], [0, 0, 1, 0], [], []>} : vector<8x16xf32>, vector<8x16xf32>, vector<8x8xf32> -> vector<8x8xf32>
    %cst_138 = arith.constant 2.500000e-01 : f32
    %345 = vector.broadcast %cst_138 : f32 to vector<8x8xf32>
    %346 = arith.mulf %344, %345 : vector<8x8xf32>
    %cst_139 = arith.constant -1.000000e+30 : f32
    %347 = vector.broadcast %cst_139 : f32 to vector<8x8xf32>
    %348 = arith.select %13, %346, %347 : vector<8x8xi1>, vector<8x8xf32>
    %cst_140 = arith.constant dense<0xFF800000> : vector<8xf32>
    %349 = vector.multi_reduction <maximumf>, %348, %cst_140 [1] : vector<8x8xf32> to vector<8xf32>
    %350 = vector.shape_cast %349 : vector<8xf32> to vector<8x1xf32>
    %351 = vector.broadcast %350 : vector<8x1xf32> to vector<8x8xf32>
    %352 = arith.subf %348, %351 : vector<8x8xf32>
    %353 = math.exp %352 : vector<8x8xf32>
    %cst_141 = arith.constant dense<0.000000e+00> : vector<8xf32>
    %354 = vector.multi_reduction <add>, %353, %cst_141 [1] : vector<8x8xf32> to vector<8xf32>
    %355 = vector.shape_cast %354 : vector<8xf32> to vector<8x1xf32>
    %356 = tpu.reciprocal %355 {approx = true} : vector<8x1xf32> -> vector<8x1xf32>
    %357 = vector.broadcast %356 : vector<8x1xf32> to vector<8x8xf32>
    %358 = arith.mulf %353, %357 : vector<8x8xf32>
    %cst_142 = arith.constant dense<0.000000e+00> : vector<8x16xf32>
    %359 = tpu.matmul %358, %343, %cst_142 {dimension_numbers = #tpu.dot_dimension_numbers<[1], [0], [0], [1], [0, 0, 1, 1], [], []>} : vector<8x8xf32>, vector<8x16xf32>, vector<8x16xf32> -> vector<8x16xf32>
    %360 = vector.extract_strided_slice %317 {offsets = [16, 0], sizes = [16, 64], strides = [1, 1]} : vector<64x64xf32> to vector<16x64xf32>
    %cst_143 = arith.constant dense<0.000000e+00> : vector<8x64xf32>
    %361 = tpu.matmul %359, %360, %cst_143 {dimension_numbers = #tpu.dot_dimension_numbers<[1], [0], [0], [1], [0, 0, 1, 1], [], []>} : vector<8x16xf32>, vector<16x64xf32>, vector<8x64xf32> -> vector<8x64xf32>
    %362 = arith.addf %340, %361 : vector<8x64xf32>
    %363 = vector.extract_strided_slice %312 {offsets = [0, 32], sizes = [8, 16], strides = [1, 1]} : vector<16x64xf32> to vector<8x16xf32>
    %364 = vector.extract_strided_slice %315 {offsets = [0, 32], sizes = [8, 16], strides = [1, 1]} : vector<16x64xf32> to vector<8x16xf32>
    %365 = vector.extract_strided_slice %307 {offsets = [0, 32], sizes = [8, 16], strides = [1, 1]} : vector<16x64xf32> to vector<8x16xf32>
    %cst_144 = arith.constant dense<0.000000e+00> : vector<8x8xf32>
    %366 = tpu.matmul %363, %364, %cst_144 {dimension_numbers = #tpu.dot_dimension_numbers<[1], [1], [0], [0], [0, 0, 1, 0], [], []>} : vector<8x16xf32>, vector<8x16xf32>, vector<8x8xf32> -> vector<8x8xf32>
    %cst_145 = arith.constant 2.500000e-01 : f32
    %367 = vector.broadcast %cst_145 : f32 to vector<8x8xf32>
    %368 = arith.mulf %366, %367 : vector<8x8xf32>
    %cst_146 = arith.constant -1.000000e+30 : f32
    %369 = vector.broadcast %cst_146 : f32 to vector<8x8xf32>
    %370 = arith.select %13, %368, %369 : vector<8x8xi1>, vector<8x8xf32>
    %cst_147 = arith.constant dense<0xFF800000> : vector<8xf32>
    %371 = vector.multi_reduction <maximumf>, %370, %cst_147 [1] : vector<8x8xf32> to vector<8xf32>
    %372 = vector.shape_cast %371 : vector<8xf32> to vector<8x1xf32>
    %373 = vector.broadcast %372 : vector<8x1xf32> to vector<8x8xf32>
    %374 = arith.subf %370, %373 : vector<8x8xf32>
    %375 = math.exp %374 : vector<8x8xf32>
    %cst_148 = arith.constant dense<0.000000e+00> : vector<8xf32>
    %376 = vector.multi_reduction <add>, %375, %cst_148 [1] : vector<8x8xf32> to vector<8xf32>
    %377 = vector.shape_cast %376 : vector<8xf32> to vector<8x1xf32>
    %378 = tpu.reciprocal %377 {approx = true} : vector<8x1xf32> -> vector<8x1xf32>
    %379 = vector.broadcast %378 : vector<8x1xf32> to vector<8x8xf32>
    %380 = arith.mulf %375, %379 : vector<8x8xf32>
    %cst_149 = arith.constant dense<0.000000e+00> : vector<8x16xf32>
    %381 = tpu.matmul %380, %365, %cst_149 {dimension_numbers = #tpu.dot_dimension_numbers<[1], [0], [0], [1], [0, 0, 1, 1], [], []>} : vector<8x8xf32>, vector<8x16xf32>, vector<8x16xf32> -> vector<8x16xf32>
    %382 = vector.extract_strided_slice %317 {offsets = [32, 0], sizes = [16, 64], strides = [1, 1]} : vector<64x64xf32> to vector<16x64xf32>
    %cst_150 = arith.constant dense<0.000000e+00> : vector<8x64xf32>
    %383 = tpu.matmul %381, %382, %cst_150 {dimension_numbers = #tpu.dot_dimension_numbers<[1], [0], [0], [1], [0, 0, 1, 1], [], []>} : vector<8x16xf32>, vector<16x64xf32>, vector<8x64xf32> -> vector<8x64xf32>
    %384 = arith.addf %362, %383 : vector<8x64xf32>
    %385 = vector.extract_strided_slice %312 {offsets = [0, 48], sizes = [8, 16], strides = [1, 1]} : vector<16x64xf32> to vector<8x16xf32>
    %386 = vector.extract_strided_slice %315 {offsets = [0, 48], sizes = [8, 16], strides = [1, 1]} : vector<16x64xf32> to vector<8x16xf32>
    %387 = vector.extract_strided_slice %307 {offsets = [0, 48], sizes = [8, 16], strides = [1, 1]} : vector<16x64xf32> to vector<8x16xf32>
    %cst_151 = arith.constant dense<0.000000e+00> : vector<8x8xf32>
    %388 = tpu.matmul %385, %386, %cst_151 {dimension_numbers = #tpu.dot_dimension_numbers<[1], [1], [0], [0], [0, 0, 1, 0], [], []>} : vector<8x16xf32>, vector<8x16xf32>, vector<8x8xf32> -> vector<8x8xf32>
    %cst_152 = arith.constant 2.500000e-01 : f32
    %389 = vector.broadcast %cst_152 : f32 to vector<8x8xf32>
    %390 = arith.mulf %388, %389 : vector<8x8xf32>
    %cst_153 = arith.constant -1.000000e+30 : f32
    %391 = vector.broadcast %cst_153 : f32 to vector<8x8xf32>
    %392 = arith.select %13, %390, %391 : vector<8x8xi1>, vector<8x8xf32>
    %cst_154 = arith.constant dense<0xFF800000> : vector<8xf32>
    %393 = vector.multi_reduction <maximumf>, %392, %cst_154 [1] : vector<8x8xf32> to vector<8xf32>
    %394 = vector.shape_cast %393 : vector<8xf32> to vector<8x1xf32>
    %395 = vector.broadcast %394 : vector<8x1xf32> to vector<8x8xf32>
    %396 = arith.subf %392, %395 : vector<8x8xf32>
    %397 = math.exp %396 : vector<8x8xf32>
    %cst_155 = arith.constant dense<0.000000e+00> : vector<8xf32>
    %398 = vector.multi_reduction <add>, %397, %cst_155 [1] : vector<8x8xf32> to vector<8xf32>
    %399 = vector.shape_cast %398 : vector<8xf32> to vector<8x1xf32>
    %400 = tpu.reciprocal %399 {approx = true} : vector<8x1xf32> -> vector<8x1xf32>
    %401 = vector.broadcast %400 : vector<8x1xf32> to vector<8x8xf32>
    %402 = arith.mulf %397, %401 : vector<8x8xf32>
    %cst_156 = arith.constant dense<0.000000e+00> : vector<8x16xf32>
    %403 = tpu.matmul %402, %387, %cst_156 {dimension_numbers = #tpu.dot_dimension_numbers<[1], [0], [0], [1], [0, 0, 1, 1], [], []>} : vector<8x8xf32>, vector<8x16xf32>, vector<8x16xf32> -> vector<8x16xf32>
    %404 = vector.extract_strided_slice %317 {offsets = [48, 0], sizes = [16, 64], strides = [1, 1]} : vector<64x64xf32> to vector<16x64xf32>
    %cst_157 = arith.constant dense<0.000000e+00> : vector<8x64xf32>
    %405 = tpu.matmul %403, %404, %cst_157 {dimension_numbers = #tpu.dot_dimension_numbers<[1], [0], [0], [1], [0, 0, 1, 1], [], []>} : vector<8x16xf32>, vector<16x64xf32>, vector<8x64xf32> -> vector<8x64xf32>
    %406 = arith.addf %384, %405 : vector<8x64xf32>
    %cst_158 = arith.constant 0.000000e+00 : f32
    %407 = vector.broadcast %cst_158 : f32 to vector<8x64xf32>
    %408 = vector.extract_strided_slice %312 {offsets = [8, 0], sizes = [8, 16], strides = [1, 1]} : vector<16x64xf32> to vector<8x16xf32>
    %409 = vector.extract_strided_slice %315 {offsets = [8, 0], sizes = [8, 16], strides = [1, 1]} : vector<16x64xf32> to vector<8x16xf32>
    %410 = vector.extract_strided_slice %307 {offsets = [8, 0], sizes = [8, 16], strides = [1, 1]} : vector<16x64xf32> to vector<8x16xf32>
    %cst_159 = arith.constant dense<0.000000e+00> : vector<8x8xf32>
    %411 = tpu.matmul %408, %409, %cst_159 {dimension_numbers = #tpu.dot_dimension_numbers<[1], [1], [0], [0], [0, 0, 1, 0], [], []>} : vector<8x16xf32>, vector<8x16xf32>, vector<8x8xf32> -> vector<8x8xf32>
    %cst_160 = arith.constant 2.500000e-01 : f32
    %412 = vector.broadcast %cst_160 : f32 to vector<8x8xf32>
    %413 = arith.mulf %411, %412 : vector<8x8xf32>
    %cst_161 = arith.constant -1.000000e+30 : f32
    %414 = vector.broadcast %cst_161 : f32 to vector<8x8xf32>
    %415 = arith.select %13, %413, %414 : vector<8x8xi1>, vector<8x8xf32>
    %cst_162 = arith.constant dense<0xFF800000> : vector<8xf32>
    %416 = vector.multi_reduction <maximumf>, %415, %cst_162 [1] : vector<8x8xf32> to vector<8xf32>
    %417 = vector.shape_cast %416 : vector<8xf32> to vector<8x1xf32>
    %418 = vector.broadcast %417 : vector<8x1xf32> to vector<8x8xf32>
    %419 = arith.subf %415, %418 : vector<8x8xf32>
    %420 = math.exp %419 : vector<8x8xf32>
    %cst_163 = arith.constant dense<0.000000e+00> : vector<8xf32>
    %421 = vector.multi_reduction <add>, %420, %cst_163 [1] : vector<8x8xf32> to vector<8xf32>
    %422 = vector.shape_cast %421 : vector<8xf32> to vector<8x1xf32>
    %423 = tpu.reciprocal %422 {approx = true} : vector<8x1xf32> -> vector<8x1xf32>
    %424 = vector.broadcast %423 : vector<8x1xf32> to vector<8x8xf32>
    %425 = arith.mulf %420, %424 : vector<8x8xf32>
    %cst_164 = arith.constant dense<0.000000e+00> : vector<8x16xf32>
    %426 = tpu.matmul %425, %410, %cst_164 {dimension_numbers = #tpu.dot_dimension_numbers<[1], [0], [0], [1], [0, 0, 1, 1], [], []>} : vector<8x8xf32>, vector<8x16xf32>, vector<8x16xf32> -> vector<8x16xf32>
    %427 = vector.extract_strided_slice %317 {offsets = [0, 0], sizes = [16, 64], strides = [1, 1]} : vector<64x64xf32> to vector<16x64xf32>
    %cst_165 = arith.constant dense<0.000000e+00> : vector<8x64xf32>
    %428 = tpu.matmul %426, %427, %cst_165 {dimension_numbers = #tpu.dot_dimension_numbers<[1], [0], [0], [1], [0, 0, 1, 1], [], []>} : vector<8x16xf32>, vector<16x64xf32>, vector<8x64xf32> -> vector<8x64xf32>
    %429 = arith.addf %407, %428 : vector<8x64xf32>
    %430 = vector.extract_strided_slice %312 {offsets = [8, 16], sizes = [8, 16], strides = [1, 1]} : vector<16x64xf32> to vector<8x16xf32>
    %431 = vector.extract_strided_slice %315 {offsets = [8, 16], sizes = [8, 16], strides = [1, 1]} : vector<16x64xf32> to vector<8x16xf32>
    %432 = vector.extract_strided_slice %307 {offsets = [8, 16], sizes = [8, 16], strides = [1, 1]} : vector<16x64xf32> to vector<8x16xf32>
    %cst_166 = arith.constant dense<0.000000e+00> : vector<8x8xf32>
    %433 = tpu.matmul %430, %431, %cst_166 {dimension_numbers = #tpu.dot_dimension_numbers<[1], [1], [0], [0], [0, 0, 1, 0], [], []>} : vector<8x16xf32>, vector<8x16xf32>, vector<8x8xf32> -> vector<8x8xf32>
    %cst_167 = arith.constant 2.500000e-01 : f32
    %434 = vector.broadcast %cst_167 : f32 to vector<8x8xf32>
    %435 = arith.mulf %433, %434 : vector<8x8xf32>
    %cst_168 = arith.constant -1.000000e+30 : f32
    %436 = vector.broadcast %cst_168 : f32 to vector<8x8xf32>
    %437 = arith.select %13, %435, %436 : vector<8x8xi1>, vector<8x8xf32>
    %cst_169 = arith.constant dense<0xFF800000> : vector<8xf32>
    %438 = vector.multi_reduction <maximumf>, %437, %cst_169 [1] : vector<8x8xf32> to vector<8xf32>
    %439 = vector.shape_cast %438 : vector<8xf32> to vector<8x1xf32>
    %440 = vector.broadcast %439 : vector<8x1xf32> to vector<8x8xf32>
    %441 = arith.subf %437, %440 : vector<8x8xf32>
    %442 = math.exp %441 : vector<8x8xf32>
    %cst_170 = arith.constant dense<0.000000e+00> : vector<8xf32>
    %443 = vector.multi_reduction <add>, %442, %cst_170 [1] : vector<8x8xf32> to vector<8xf32>
    %444 = vector.shape_cast %443 : vector<8xf32> to vector<8x1xf32>
    %445 = tpu.reciprocal %444 {approx = true} : vector<8x1xf32> -> vector<8x1xf32>
    %446 = vector.broadcast %445 : vector<8x1xf32> to vector<8x8xf32>
    %447 = arith.mulf %442, %446 : vector<8x8xf32>
    %cst_171 = arith.constant dense<0.000000e+00> : vector<8x16xf32>
    %448 = tpu.matmul %447, %432, %cst_171 {dimension_numbers = #tpu.dot_dimension_numbers<[1], [0], [0], [1], [0, 0, 1, 1], [], []>} : vector<8x8xf32>, vector<8x16xf32>, vector<8x16xf32> -> vector<8x16xf32>
    %449 = vector.extract_strided_slice %317 {offsets = [16, 0], sizes = [16, 64], strides = [1, 1]} : vector<64x64xf32> to vector<16x64xf32>
    %cst_172 = arith.constant dense<0.000000e+00> : vector<8x64xf32>
    %450 = tpu.matmul %448, %449, %cst_172 {dimension_numbers = #tpu.dot_dimension_numbers<[1], [0], [0], [1], [0, 0, 1, 1], [], []>} : vector<8x16xf32>, vector<16x64xf32>, vector<8x64xf32> -> vector<8x64xf32>
    %451 = arith.addf %429, %450 : vector<8x64xf32>
    %452 = vector.extract_strided_slice %312 {offsets = [8, 32], sizes = [8, 16], strides = [1, 1]} : vector<16x64xf32> to vector<8x16xf32>
    %453 = vector.extract_strided_slice %315 {offsets = [8, 32], sizes = [8, 16], strides = [1, 1]} : vector<16x64xf32> to vector<8x16xf32>
    %454 = vector.extract_strided_slice %307 {offsets = [8, 32], sizes = [8, 16], strides = [1, 1]} : vector<16x64xf32> to vector<8x16xf32>
    %cst_173 = arith.constant dense<0.000000e+00> : vector<8x8xf32>
    %455 = tpu.matmul %452, %453, %cst_173 {dimension_numbers = #tpu.dot_dimension_numbers<[1], [1], [0], [0], [0, 0, 1, 0], [], []>} : vector<8x16xf32>, vector<8x16xf32>, vector<8x8xf32> -> vector<8x8xf32>
    %cst_174 = arith.constant 2.500000e-01 : f32
    %456 = vector.broadcast %cst_174 : f32 to vector<8x8xf32>
    %457 = arith.mulf %455, %456 : vector<8x8xf32>
    %cst_175 = arith.constant -1.000000e+30 : f32
    %458 = vector.broadcast %cst_175 : f32 to vector<8x8xf32>
    %459 = arith.select %13, %457, %458 : vector<8x8xi1>, vector<8x8xf32>
    %cst_176 = arith.constant dense<0xFF800000> : vector<8xf32>
    %460 = vector.multi_reduction <maximumf>, %459, %cst_176 [1] : vector<8x8xf32> to vector<8xf32>
    %461 = vector.shape_cast %460 : vector<8xf32> to vector<8x1xf32>
    %462 = vector.broadcast %461 : vector<8x1xf32> to vector<8x8xf32>
    %463 = arith.subf %459, %462 : vector<8x8xf32>
    %464 = math.exp %463 : vector<8x8xf32>
    %cst_177 = arith.constant dense<0.000000e+00> : vector<8xf32>
    %465 = vector.multi_reduction <add>, %464, %cst_177 [1] : vector<8x8xf32> to vector<8xf32>
    %466 = vector.shape_cast %465 : vector<8xf32> to vector<8x1xf32>
    %467 = tpu.reciprocal %466 {approx = true} : vector<8x1xf32> -> vector<8x1xf32>
    %468 = vector.broadcast %467 : vector<8x1xf32> to vector<8x8xf32>
    %469 = arith.mulf %464, %468 : vector<8x8xf32>
    %cst_178 = arith.constant dense<0.000000e+00> : vector<8x16xf32>
    %470 = tpu.matmul %469, %454, %cst_178 {dimension_numbers = #tpu.dot_dimension_numbers<[1], [0], [0], [1], [0, 0, 1, 1], [], []>} : vector<8x8xf32>, vector<8x16xf32>, vector<8x16xf32> -> vector<8x16xf32>
    %471 = vector.extract_strided_slice %317 {offsets = [32, 0], sizes = [16, 64], strides = [1, 1]} : vector<64x64xf32> to vector<16x64xf32>
    %cst_179 = arith.constant dense<0.000000e+00> : vector<8x64xf32>
    %472 = tpu.matmul %470, %471, %cst_179 {dimension_numbers = #tpu.dot_dimension_numbers<[1], [0], [0], [1], [0, 0, 1, 1], [], []>} : vector<8x16xf32>, vector<16x64xf32>, vector<8x64xf32> -> vector<8x64xf32>
    %473 = arith.addf %451, %472 : vector<8x64xf32>
    %474 = vector.extract_strided_slice %312 {offsets = [8, 48], sizes = [8, 16], strides = [1, 1]} : vector<16x64xf32> to vector<8x16xf32>
    %475 = vector.extract_strided_slice %315 {offsets = [8, 48], sizes = [8, 16], strides = [1, 1]} : vector<16x64xf32> to vector<8x16xf32>
    %476 = vector.extract_strided_slice %307 {offsets = [8, 48], sizes = [8, 16], strides = [1, 1]} : vector<16x64xf32> to vector<8x16xf32>
    %cst_180 = arith.constant dense<0.000000e+00> : vector<8x8xf32>
    %477 = tpu.matmul %474, %475, %cst_180 {dimension_numbers = #tpu.dot_dimension_numbers<[1], [1], [0], [0], [0, 0, 1, 0], [], []>} : vector<8x16xf32>, vector<8x16xf32>, vector<8x8xf32> -> vector<8x8xf32>
    %cst_181 = arith.constant 2.500000e-01 : f32
    %478 = vector.broadcast %cst_181 : f32 to vector<8x8xf32>
    %479 = arith.mulf %477, %478 : vector<8x8xf32>
    %cst_182 = arith.constant -1.000000e+30 : f32
    %480 = vector.broadcast %cst_182 : f32 to vector<8x8xf32>
    %481 = arith.select %13, %479, %480 : vector<8x8xi1>, vector<8x8xf32>
    %cst_183 = arith.constant dense<0xFF800000> : vector<8xf32>
    %482 = vector.multi_reduction <maximumf>, %481, %cst_183 [1] : vector<8x8xf32> to vector<8xf32>
    %483 = vector.shape_cast %482 : vector<8xf32> to vector<8x1xf32>
    %484 = vector.broadcast %483 : vector<8x1xf32> to vector<8x8xf32>
    %485 = arith.subf %481, %484 : vector<8x8xf32>
    %486 = math.exp %485 : vector<8x8xf32>
    %cst_184 = arith.constant dense<0.000000e+00> : vector<8xf32>
    %487 = vector.multi_reduction <add>, %486, %cst_184 [1] : vector<8x8xf32> to vector<8xf32>
    %488 = vector.shape_cast %487 : vector<8xf32> to vector<8x1xf32>
    %489 = tpu.reciprocal %488 {approx = true} : vector<8x1xf32> -> vector<8x1xf32>
    %490 = vector.broadcast %489 : vector<8x1xf32> to vector<8x8xf32>
    %491 = arith.mulf %486, %490 : vector<8x8xf32>
    %cst_185 = arith.constant dense<0.000000e+00> : vector<8x16xf32>
    %492 = tpu.matmul %491, %476, %cst_185 {dimension_numbers = #tpu.dot_dimension_numbers<[1], [0], [0], [1], [0, 0, 1, 1], [], []>} : vector<8x8xf32>, vector<8x16xf32>, vector<8x16xf32> -> vector<8x16xf32>
    %493 = vector.extract_strided_slice %317 {offsets = [48, 0], sizes = [16, 64], strides = [1, 1]} : vector<64x64xf32> to vector<16x64xf32>
    %cst_186 = arith.constant dense<0.000000e+00> : vector<8x64xf32>
    %494 = tpu.matmul %492, %493, %cst_186 {dimension_numbers = #tpu.dot_dimension_numbers<[1], [0], [0], [1], [0, 0, 1, 1], [], []>} : vector<8x16xf32>, vector<16x64xf32>, vector<8x64xf32> -> vector<8x64xf32>
    %495 = arith.addf %473, %494 : vector<8x64xf32>
    %496 = tpu.concatenate %406, %495 in 0 : vector<8x64xf32>, vector<8x64xf32> -> vector<16x64xf32>
    %c1_187 = arith.constant 1 : index
    %c0_188 = arith.constant 0 : index
    %c0_189 = arith.constant 0 : index
    %497 = vector.load %arg9[%c1_187, %c0_188, %c0_189] : memref<2x1x64xf32, #tpu.memory_space<vmem>>, vector<1x1x64xf32>
    %498 = vector.shape_cast %497 : vector<1x1x64xf32> to vector<1x64xf32>
    %499 = vector.broadcast %498 : vector<1x64xf32> to vector<16x64xf32>
    %500 = arith.addf %496, %499 : vector<16x64xf32>
    %c1_190 = arith.constant 1 : index
    %c0_191 = arith.constant 0 : index
    %c0_192 = arith.constant 0 : index
    %501 = vector.load %arg10[%c1_190, %c0_191, %c0_192] : memref<2x64x128xf32, #tpu.memory_space<vmem>>, vector<1x64x128xf32>
    %502 = vector.shape_cast %501 : vector<1x64x128xf32> to vector<64x128xf32>
    %cst_193 = arith.constant dense<0.000000e+00> : vector<16x128xf32>
    %503 = tpu.matmul %297, %502, %cst_193 {dimension_numbers = #tpu.dot_dimension_numbers<[1], [0], [0], [1], [0, 0, 1, 1], [], []>} : vector<16x64xf32>, vector<64x128xf32>, vector<16x128xf32> -> vector<16x128xf32>
    %c1_194 = arith.constant 1 : index
    %c0_195 = arith.constant 0 : index
    %c0_196 = arith.constant 0 : index
    %504 = vector.load %arg11[%c1_194, %c0_195, %c0_196] : memref<2x1x128xf32, #tpu.memory_space<vmem>>, vector<1x1x128xf32>
    %505 = vector.shape_cast %504 : vector<1x1x128xf32> to vector<1x128xf32>
    %506 = vector.broadcast %505 : vector<1x128xf32> to vector<16x128xf32>
    %507 = arith.addf %503, %506 : vector<16x128xf32>
    %cst_197 = arith.constant 5.000000e-01 : f32
    %508 = vector.broadcast %cst_197 : f32 to vector<16x128xf32>
    %509 = arith.mulf %508, %507 : vector<16x128xf32>
    %cst_198 = arith.constant 4.471500e-02 : f32
    %510 = vector.broadcast %cst_198 : f32 to vector<16x128xf32>
    %511 = arith.mulf %510, %507 : vector<16x128xf32>
    %512 = arith.mulf %511, %507 : vector<16x128xf32>
    %513 = arith.mulf %512, %507 : vector<16x128xf32>
    %514 = arith.addf %507, %513 : vector<16x128xf32>
    %cst_199 = arith.constant 0.797884583 : f32
    %515 = vector.broadcast %cst_199 : f32 to vector<16x128xf32>
    %516 = arith.mulf %515, %514 : vector<16x128xf32>
    %517 = math.tanh %516 : vector<16x128xf32>
    %cst_200 = arith.constant 1.000000e+00 : f32
    %518 = vector.broadcast %cst_200 : f32 to vector<16x128xf32>
    %519 = arith.addf %518, %517 : vector<16x128xf32>
    %520 = arith.mulf %509, %519 : vector<16x128xf32>
    %c1_201 = arith.constant 1 : index
    %c0_202 = arith.constant 0 : index
    %c0_203 = arith.constant 0 : index
    %521 = vector.load %arg12[%c1_201, %c0_202, %c0_203] : memref<2x128x64xf32, #tpu.memory_space<vmem>>, vector<1x128x64xf32>
    %522 = vector.shape_cast %521 : vector<1x128x64xf32> to vector<128x64xf32>
    %cst_204 = arith.constant dense<0.000000e+00> : vector<16x64xf32>
    %523 = tpu.matmul %520, %522, %cst_204 {dimension_numbers = #tpu.dot_dimension_numbers<[1], [0], [0], [1], [0, 0, 1, 1], [], []>} : vector<16x128xf32>, vector<128x64xf32>, vector<16x64xf32> -> vector<16x64xf32>
    %c1_205 = arith.constant 1 : index
    %c0_206 = arith.constant 0 : index
    %c0_207 = arith.constant 0 : index
    %524 = vector.load %arg13[%c1_205, %c0_206, %c0_207] : memref<2x1x64xf32, #tpu.memory_space<vmem>>, vector<1x1x64xf32>
    %525 = vector.shape_cast %524 : vector<1x1x64xf32> to vector<1x64xf32>
    %526 = vector.broadcast %525 : vector<1x64xf32> to vector<16x64xf32>
    %527 = arith.addf %523, %526 : vector<16x64xf32>
    %528 = arith.addf %527, %500 : vector<16x64xf32>
    %529 = arith.addf %528, %271 : vector<16x64xf32>
    %c0_208 = arith.constant 0 : index
    %c0_209 = arith.constant 0 : index
    %530 = vector.load %arg14[%c0_208, %c0_209] : memref<1x64xf32, #tpu.memory_space<vmem>>, vector<1x64xf32>
    %c0_210 = arith.constant 0 : index
    %c0_211 = arith.constant 0 : index
    %531 = vector.load %arg15[%c0_210, %c0_211] : memref<1x64xf32, #tpu.memory_space<vmem>>, vector<1x64xf32>
    %cst_212 = arith.constant dense<0.000000e+00> : vector<16xf32>
    %532 = vector.multi_reduction <add>, %529, %cst_212 [1] : vector<16x64xf32> to vector<16xf32>
    %533 = vector.shape_cast %532 : vector<16xf32> to vector<16x1xf32>
    %cst_213 = arith.constant 6.400000e+01 : f32
    %534 = vector.broadcast %cst_213 : f32 to vector<16x1xf32>
    %535 = arith.divf %533, %534 : vector<16x1xf32>
    %536 = vector.broadcast %535 : vector<16x1xf32> to vector<16x64xf32>
    %537 = arith.subf %529, %536 : vector<16x64xf32>
    %538 = arith.mulf %537, %537 : vector<16x64xf32>
    %cst_214 = arith.constant dense<0.000000e+00> : vector<16xf32>
    %539 = vector.multi_reduction <add>, %538, %cst_214 [1] : vector<16x64xf32> to vector<16xf32>
    %540 = vector.shape_cast %539 : vector<16xf32> to vector<16x1xf32>
    %cst_215 = arith.constant 6.400000e+01 : f32
    %541 = vector.broadcast %cst_215 : f32 to vector<16x1xf32>
    %542 = arith.divf %540, %541 : vector<16x1xf32>
    %543 = vector.broadcast %535 : vector<16x1xf32> to vector<16x64xf32>
    %544 = arith.subf %529, %543 : vector<16x64xf32>
    %cst_216 = arith.constant 9.99999974E-6 : f32
    %545 = vector.broadcast %cst_216 : f32 to vector<16x1xf32>
    %546 = arith.addf %542, %545 : vector<16x1xf32>
    %547 = math.rsqrt %546 : vector<16x1xf32>
    %548 = vector.broadcast %547 : vector<16x1xf32> to vector<16x64xf32>
    %549 = arith.mulf %544, %548 : vector<16x64xf32>
    %550 = vector.broadcast %530 : vector<1x64xf32> to vector<16x64xf32>
    %551 = arith.mulf %549, %550 : vector<16x64xf32>
    %552 = vector.broadcast %531 : vector<1x64xf32> to vector<16x64xf32>
    %553 = arith.addf %551, %552 : vector<16x64xf32>
    %c0_217 = arith.constant 0 : index
    %c0_218 = arith.constant 0 : index
    %554 = vector.load %arg16[%c0_217, %c0_218] : memref<64x256xf32, #tpu.memory_space<vmem>>, vector<64x256xf32>
    %cst_219 = arith.constant dense<0.000000e+00> : vector<16x256xf32>
    %555 = tpu.matmul %553, %554, %cst_219 {dimension_numbers = #tpu.dot_dimension_numbers<[1], [0], [0], [1], [0, 0, 1, 1], [], []>} : vector<16x64xf32>, vector<64x256xf32>, vector<16x256xf32> -> vector<16x256xf32>
    %c0_220 = arith.constant 0 : index
    %c0_221 = arith.constant 0 : index
    %556 = vector.load %arg17[%c0_220, %c0_221] : memref<1x256xf32, #tpu.memory_space<vmem>>, vector<1x256xf32>
    %557 = vector.broadcast %556 : vector<1x256xf32> to vector<16x256xf32>
    %558 = arith.addf %555, %557 : vector<16x256xf32>
    %c0_222 = arith.constant 0 : index
    %c0_223 = arith.constant 0 : index
    %559 = vector.load %arg18[%c0_222, %c0_223] : memref<16x256xf32, #tpu.memory_space<vmem>>, vector<16x256xf32>
    tpu.vector_store %arg18[%c0_222, %c0_223], %558 {strides = array<i32>} : memref<16x256xf32, #tpu.memory_space<vmem>>, vector<16x256xf32>,
    return
  }
}

</mosaic_0001>

<bundles_post_ra>
// kernel: tpu_custom_call.1
= control target key start
LH: loop header
LB: loop body
LE: loop exit
PB: predicated region body
PF: predicated region fallthrough
CT: control target
= control target key end

     0   :  { %s7552_s0 = inlined_call_operand.vmem [shape: s32[16,1], index: 0, kind: input, shape index: {}]   ;;  %s7553_s1 = inlined_call_operand.vmem [shape: f32[256,64], index: 1, kind: input, shape index: {}]   ;;  %s7554_s2 = inlined_call_operand.vmem [shape: f32[16,64], index: 2, kind: input, shape index: {}]   ;;  %s7555_s3 = inlined_call_operand.hbm [shape: f32[16,64], index: 3, kind: input, shape index: {}]   ;;  %s7556_s4 = inlined_call_operand.hbm [shape: f32[2,1,64], index: 4, kind: input, shape index: {}]   ;;  %s7557_s5 = inlined_call_operand.vmem [shape: f32[2,1,64], index: 5, kind: input, shape index: {}]   ;;  %s7558_s6 = inlined_call_operand.vmem [shape: f32[2,64,320], index: 6, kind: input, shape index: {}]   ;;  %s7559_s7 = inlined_call_operand.vmem [shape: f32[2,1,320], index: 7, kind: input, shape index: {}]   ;;  %s7560_s8 = inlined_call_operand.vmem [shape: f32[2,64,64], index: 8, kind: input, shape index: {}]   ;;  %s7561_s9 = inlined_call_operand.vmem [shape: f32[2,1,64], index: 9, kind: input, shape index: {}]   ;;  %s7562_s10 = inlined_call_operand.vmem [shape: f32[2,64,128], index: 10, kind: input, shape index: {}]   ;;  %s7563_s11 = inlined_call_operand.vmem [shape: f32[2,1,128], index: 11, kind: input, shape index: {}]   ;;  %s7564_s12 = inlined_call_operand.vmem [shape: f32[2,128,64], index: 12, kind: input, shape index: {}]   ;;  %s7565_s13 = inlined_call_operand.vmem [shape: f32[2,1,64], index: 13, kind: input, shape index: {}]   ;;  %s7566_s14 = inlined_call_operand.vmem [shape: f32[1,64], index: 14, kind: input, shape index: {}]   ;;  %s7567_s15 = inlined_call_operand.vmem [shape: f32[1,64], index: 15, kind: input, shape index: {}]   ;;  %s7568_s16 = inlined_call_operand.vmem [shape: f32[64,256], index: 16, kind: input, shape index: {}]   ;;  %s7569_s17 = inlined_call_operand.vmem [shape: f32[1,256], index: 17, kind: input, shape index: {}]   ;;  %s7570_s18 = inlined_call_operand.hbm [shape: f32[16,256], index: 18, kind: output, shape index: {}]  }
   0x1   :  { %7576 = sst [smem:[#allocation11_spill]] %s7552_s0 }
   0x2   :  { %7577 = sst [smem:[#allocation12_spill]] %s7553_s1 }
   0x3   :  { %7578 = sst [smem:[#allocation13_spill]] %s7554_s2 }
   0x4   :  { %23 = vsyncpa [#allocation3], 0 }
   0x5   :  { %24 = vsyncpa [#allocation6], 0 }
   0x6   :  { %25 = vsyncpa [#allocation4], 0  ;;  %s6236_s27 = smov [#allocation2]  }
   0x7   :  { %s37_s28 = sshll.u32 %s6236_s27, 4  ;;  %s38_s28 = int_to_ptr.vmem [resolvable:$true] %s37_s28 }
   0x8   :  { %s6178_s29 = scalar_lea.vmem %s38_s28, 256  ;;  %p6183_p1 = scmp.lt.s32.totalorder %s38_s28, %s38_s28 }
   0x9   :  { %p6179_p0 = scmp.ne.s32.totalorder %s38_s28, %s6178_s29  ;;  %p6184_p2 = scmp.lt.s32.totalorder %s6178_s29, %s6178_s29 }
   0xb   :  { %p6185_p3 = por %p6184_p2, %p6183_p1 }
   0xd   :  { %p6186_p4 = pnand %p6185_p3, %p6179_p0 }
   0xf   :  { %6189 = shalt.err (!%p6186_p4)
}
  0x10   :  { %s6237_s30 = smov 128   ;;  %s6238_s0 = smov 8  }
  0x11   :  { %43 = dma.hbm_to_vmem [thread:$0]  %s7555_s3, 256, %s38_s28, [#allocation3], %s6237_s30, %s6237_s30, %s6238_s0  }
  0x12   :  { %s6239_s20 = smov [#allocation5]  }
  0x13   :  { %s49_s21 = sshll.u32 %s6239_s20, 4  ;;  %s50_s21 = int_to_ptr.vmem [resolvable:$true] %s49_s21 }
  0x14   :  { %s6198_s22 = scalar_lea.vmem %s50_s21, 32  ;;  %p6203_p6 = scmp.lt.s32.totalorder %s50_s21, %s50_s21 }
  0x15   :  { %p6199_p5 = scmp.ne.s32.totalorder %s50_s21, %s6198_s22  ;;  %p6204_p7 = scmp.lt.s32.totalorder %s6198_s22, %s6198_s22 }
  0x17   :  { %p6205_p8 = por %p6204_p7, %p6203_p6 }
  0x19   :  { %p6206_p9 = pnand %p6205_p8, %p6199_p5 }
  0x1b   :  { %6209 = shalt.err (!%p6206_p9)
}
  0x1c   :  { %s7574_s2 = smov 16   ;;  %s6241_s23 = smov 1  }
  0x1d   :  { %55 = dma.hbm_to_vmem [thread:$0]  %s7556_s4, 32, %s50_s21, [#allocation6], %s7574_s2, %s7574_s2, %s6241_s23  }
  0x1e   :  { %6230 = dma.done.wait [#allocation3], 256  }
  0x1f   :  { %6231 = vsyncadd [#allocation3], 4294967040 }
  0x20   :  { %6232 = dma.done.wait [#allocation6], 32  }
  0x21   :  { %6233 = vsyncadd [#allocation6], 4294967264  ;;  %v6242_v0 = vmov 0   ;;  %s7579_s27 = sld [smem:[#allocation11_spill]]  ;;  %v90_v35 = vlaneseq  ;;  %v6243_v39 = vmov 1.0   ;;  %vm223_vm4 = vcmask 523264  }
  0x22   :  { %6081 = vset.pattern.permute.xlu0 %v6242_v0  ;;  %s7580_s30 = sld [smem:[#allocation12_spill]]  ;;  %v289_v59 = vld [vmem:[%s7558_s6 + $0xb0] sm:$0xff]  ;;  %v288_v60 = vld [vmem:[%s7558_s6 + $0xa8] sm:$0xff]  ;;  %v286_v61 = vld [vmem:[%s7558_s6 + $0x98] sm:$0xff]  ;;  %s6245_s21 = smov 64   ;;  %vm6246_vm5 = vmmov 0  }
  0x23   :  { %v6460_v36 = vand.u32 127, %v90_v35  ;;  %330 = vmatprep.subr.mxu1 %v289_v59  ;;  %v285_v62 = vld [vmem:[%s7558_s6 + $0x90] sm:$0xff]  ;;  %v283_v63 = vld [vmem:[%s7558_s6 + $0x80] sm:$0xff]  ;;  %v282_v0 = vld [vmem:[%s7558_s6 + $0x78] sm:$0xff]  ;;  %s7581_s24 = sld [smem:[#allocation13_spill]]  ;;  %s6247_s29 = smov 48  }
  0x24   :  { %331 = vmatpush1.msra.mxu1 %v288_v60  ;;  %s6248_s0 = smov 112   ;;  %vm521_vm6 = vcmask 130048   ;;  %vm599_vm8 = vcmask 64512   ;;  %s6249_s19 = smov 32  }
  0x25   :  { %v92_v37 = vadd.s32 128, %v6460_v36  ;;  %332 = vmatprep.subr.mxu1 %v286_v61  ;;  %s6251_s26 = smov 80  }
  0x26   :  { %333 = vmatpush1.msra.mxu1 %v285_v62 }
  0x27   :  { %v88_v1 = vld [vmem:[%s7579_s27] sm:$0xff]  ;;  %v89_v6 = vld [vmem:[%s7579_s27 + $0x8] sm:$0xff]  ;;  %334 = vmatprep.subr.mxu1 %v283_v63  ;;  %s6250_s27 = smov 96  }
  0x28   :  { %v138_v2 = vld [vmem:[%s7580_s30 + $0xf8] sm:$0xff]  ;;  %94 = vperm.xlu0 %6081, %v88_v1   ;;  %v137_v4 = vld [vmem:[%s7580_s30 + $0xf0] sm:$0xff]  ;;  %v136_v7 = vld [vmem:[%s7580_s30 + $0xe8] sm:$0xff]  ;;  %v6244_v1 = vmov 0.0   ;;  %335 = vmatpush1.msra.mxu1 %v282_v0 }
  0x29   :  { %5419 = vmatprep.subr.mxu0 %v138_v2  ;;  %v122_v3 = vld [vmem:[%s7580_s30 + $0x78] sm:$0xff]  ;;  %v121_v5 = vld [vmem:[%s7580_s30 + $0x70] sm:$0xff]  ;;  %v120_v8 = vld [vmem:[%s7580_s30 + $0x68] sm:$0xff]  ;;  %378 = vmatprep.mubr.f32.mxu1 %v6244_v1 }
  0x2a   :  { %5420 = vmatpush3.msra.mxu0 %v122_v3  ;;  %v135_v9 = vld [vmem:[%s7580_s30 + $0xe0] sm:$0xff]  ;;  %v134_v11 = vld [vmem:[%s7580_s30 + $0xd8] sm:$0xff]  ;;  %v133_v13 = vld [vmem:[%s7580_s30 + $0xd0] sm:$0xff] }
  0x2b   :  { %5421 = vmatprep.subr.mxu0 %v137_v4  ;;  %v119_v10 = vld [vmem:[%s7580_s30 + $0x60] sm:$0xff]  ;;  %v118_v12 = vld [vmem:[%s7580_s30 + $0x58] sm:$0xff]  ;;  %v117_v14 = vld [vmem:[%s7580_s30 + $0x50] sm:$0xff] }
  0x2c   :  { %5422 = vmatpush3.msra.mxu0 %v121_v5  ;;  %97 = vperm.xlu0 %6081, %v89_v6   ;;  %v132_v15 = vld [vmem:[%s7580_s30 + $0xc8] sm:$0xff]  ;;  %v131_v17 = vld [vmem:[%s7580_s30 + $0xc0] sm:$0xff]  ;;  %v130_v19 = vld [vmem:[%s7580_s30 + $0xb8] sm:$0xff] }
  0x2d   :  { %5423 = vmatprep.subr.mxu0 %v136_v7  ;;  %v116_v16 = vld [vmem:[%s7580_s30 + $0x48] sm:$0xff]  ;;  %v115_v18 = vld [vmem:[%s7580_s30 + $0x40] sm:$0xff]  ;;  %v114_v20 = vld [vmem:[%s7580_s30 + $0x38] sm:$0xff] }
  0x2e   :  { %5424 = vmatpush3.msra.mxu0 %v120_v8  ;;  %v129_v21 = vld [vmem:[%s7580_s30 + $0xb0] sm:$0xff]  ;;  %v128_v23 = vld [vmem:[%s7580_s30 + $0xa8] sm:$0xff]  ;;  %v127_v25 = vld [vmem:[%s7580_s30 + $0xa0] sm:$0xff] }
  0x2f   :  { %5425 = vmatprep.subr.mxu0 %v135_v9  ;;  %v113_v22 = vld [vmem:[%s7580_s30 + $0x30] sm:$0xff]  ;;  %v112_v24 = vld [vmem:[%s7580_s30 + $0x28] sm:$0xff]  ;;  %v111_v26 = vld [vmem:[%s7580_s30 + $0x20] sm:$0xff] }
  0x30   :  { %5426 = vmatpush3.msra.mxu0 %v119_v10  ;;  %v126_v27 = vld [vmem:[%s7580_s30 + $0x98] sm:$0xff]  ;;  %v125_v29 = vld [vmem:[%s7580_s30 + $0x90] sm:$0xff]  ;;  %v124_v31 = vld [vmem:[%s7580_s30 + $0x88] sm:$0xff] }
  0x31   :  { %5427 = vmatprep.subr.mxu0 %v134_v11  ;;  %v110_v28 = vld [vmem:[%s7580_s30 + $0x18] sm:$0xff]  ;;  %v109_v30 = vld [vmem:[%s7580_s30 + $0x10] sm:$0xff]  ;;  %v108_v32 = vld [vmem:[%s7580_s30 + $0x8] sm:$0xff] }
  0x32   :  { %5428 = vmatpush3.msra.mxu0 %v118_v12  ;;  %v123_v33 = vld [vmem:[%s7580_s30 + $0x80] sm:$0xff]  ;;  %v280_v2 = vld [vmem:[%s7558_s6 + $0x68] sm:$0xff]  ;;  %v277_v4 = vld [vmem:[%s7558_s6 + $0x50] sm:$0xff] }
  0x33   :  { %5429 = vmatprep.subr.mxu0 %v133_v13  ;;  %v107_v34 = vld [vmem:[%s7580_s30] sm:$0xff]  ;;  %336 = vmatprep.subr.mxu1 %v280_v2  ;;  %v276_v5 = vld [vmem:[%s7558_s6 + $0x48] sm:$0xff]  ;;  %v274_v6 = vld [vmem:[%s7558_s6 + $0x38] sm:$0xff] }
  0x34   :  { %5430 = vmatpush3.msra.mxu0 %v117_v14  ;;  %v279_v3 = vld [vmem:[%s7558_s6 + $0x60] sm:$0xff]  ;;  %v273_v7 = vld [vmem:[%s7558_s6 + $0x30] sm:$0xff]  ;;  %v270_v9 = vld [vmem:[%s7558_s6 + $0x18] sm:$0xff] }
  0x35   :  { %5431 = vmatprep.subr.mxu0 %v132_v15  ;;  %337 = vmatpush1.msra.mxu1 %v279_v3  ;;  %v271_v8 = vld [vmem:[%s7558_s6 + $0x20] sm:$0xff]  ;;  %v268_v10 = vld [vmem:[%s7558_s6 + $0x8] sm:$0xff]  ;;  %v290_v12 = vld [vmem:[%s7558_s6 + $0xb8] sm:$0xff] }
  0x36   :  { %5432 = vmatpush3.msra.mxu0 %v116_v16  ;;  %338 = vmatprep.subr.mxu1 %v277_v4  ;;  %v267_v11 = vld [vmem:[%s7558_s6] sm:$0xff] }
  0x37   :  { %5433 = vmatprep.subr.mxu0 %v131_v17  ;;  %339 = vmatpush1.msra.mxu1 %v276_v5  ;;  %v6534_v13 = vld [vmem:[#allocation2] sm:$0xff] }
  0x38   :  { %5434 = vmatpush3.msra.mxu0 %v115_v18  ;;  %340 = vmatprep.subr.mxu1 %v274_v6  ;;  %v6541_v14 = vld [vmem:[%s7581_s24] sm:$0xff] }
  0x39   :  { %5435 = vmatprep.subr.mxu0 %v130_v19  ;;  %341 = vmatpush1.msra.mxu1 %v273_v7 }
  0x3a   :  { %5436 = vmatpush3.msra.mxu0 %v114_v20  ;;  %342 = vmatprep.subr.mxu1 %v271_v8 }
  0x3b   :  { %5437 = vmatprep.subr.mxu0 %v129_v21  ;;  %343 = vmatpush1.msra.mxu1 %v270_v9 }
  0x3c   :  { %5438 = vmatpush3.msra.mxu0 %v113_v22  ;;  %344 = vmatprep.subr.mxu1 %v268_v10  ;;  %v5268_v22 = vld [vmem:[#allocation5] ss:$0 sm:$0xff] }
  0x3d   :  { %5439 = vmatprep.subr.mxu0 %v128_v23  ;;  %345 = vmatpush1.msra.mxu1 %v267_v11 }
  0x3e   :  { %5440 = vmatpush3.msra.mxu0 %v112_v24  ;;  %5645 = vmatprep.subr.mxu1 %v290_v12  ;;  %v5269_v24 = vld [vmem:[%s7557_s5] ss:$0 sm:$0xff] }
  0x3f   :  { %5441 = vmatprep.subr.mxu0 %v127_v25 }
  0x40   :  { %5442 = vmatpush3.msra.mxu0 %v111_v26 }
  0x41   :  { %5443 = vmatprep.subr.mxu0 %v126_v27 }
  0x42   :  { %5444 = vmatpush3.msra.mxu0 %v110_v28 }
  0x43   :  { %5445 = vmatprep.subr.mxu0 %v125_v29  ;;  %v287_v29 = vld [vmem:[%s7558_s6 + $0xa0] sm:$0xff] }
  0x44   :  { %5446 = vmatpush3.msra.mxu0 %v109_v30 }
  0x45   :  { %5447 = vmatprep.subr.mxu0 %v124_v31  ;;  %v284_v31 = vld [vmem:[%s7558_s6 + $0x88] sm:$0xff] }
  0x46   :  { %5448 = vmatpush3.msra.mxu0 %v108_v32 }
  0x47   :  { %5449 = vmatprep.subr.mxu0 %v123_v33  ;;  %v281_v33 = vld [vmem:[%s7558_s6 + $0x70] sm:$0xff] }
  0x48   :  { %5450 = vmatpush3.msra.mxu0 %v107_v34  ;;  %v278_v34 = vld [vmem:[%s7558_s6 + $0x58] sm:$0xff] }
  0x49   :  { %5669 = vmatprep.subr.mxu0 %v6244_v1 }
  0xa3   :  { %v95_v38 = vpop.permute.xlu0 %94 }
  0xa4   :  { %vm99_vm0 = vcmp.eq.s32.totalorder %v95_v38, %v6460_v36  ;;  %vm100_vm1 = vcmp.eq.s32.totalorder %v95_v38, %v92_v37  ;;  %v272_v38 = vld [vmem:[%s7558_s6 + $0x28] sm:$0xff] }
  0xa5   :  { %5264 = vmatprep.mubr.msk.f32.mxu0 %vm100_vm1, %v6243_v39 }
  0xa6   :  { %5265 = vmatmul.mubr.msk.f32.vlgmr.msra.gmra.mxu0 %vm99_vm0, %v6243_v39 }
  0xa7   :  { %v98_v40 = vpop.permute.xlu0 %97 }
  0xa8   :  { %vm101_vm2 = vcmp.eq.s32.totalorder %v98_v40, %v6460_v36  ;;  %vm102_vm3 = vcmp.eq.s32.totalorder %v98_v40, %v92_v37  ;;  %v275_v37 = vld [vmem:[%s7558_s6 + $0x40] sm:$0xff]  ;;  %v6585_v40 = vshrl.u32 %v90_v35, 7 }
  0xa9   :  { %5266 = vmatprep.mubr.msk.f32.mxu0 %vm102_vm3, %v6243_v39 }
  0xaa   :  { %5267 = vmatmul.mubr.msk.f32.gmra.mxu0 %vm101_vm2, %v6243_v39  ;;  %v269_v39 = vld [vmem:[%s7558_s6 + $0x10] sm:$0xff]  ;;  %vm6649_vm7 = vcmp.le.s32.totalorder %v6460_v36, %v6585_v40 }
  0xab   :  { %5671 = vmatprep.mubr.msk.f32.mxu0 %vm6246_vm5, %v6244_v1 }
 0x166   :  { %v5451_v41 = vpop.f32.mrf.mxu0 }
 0x168   :  { %v5452_v42 = vpop.f32.mrf.mxu0 }
 0x169   :  { %v6465_v43 = vadd.f32 %v5452_v42, %v5451_v41  ;;  %v6588_v41 = vsub.s32 1, %v6585_v40  ;;  %v291_v42 = vld [vmem:[%s7559_s7] sm:$0x7] }
 0x16a   :  { %v5454_v44 = vpop.f32.mrf.mxu0 }
 0x16b   :  { %v224_v45 = vsel %vm223_vm4, %v6465_v43, 0.0 }
 0x16c   :  { %225 = vadd.xlane.f32.xlu1 %v224_v45  ;;  %v5455_v46 = vpop.f32.mrf.mxu0  ;;  %v300_v45 = vrot.slane %v291_v42, %v6588_v41 }
 0x16d   :  { %v6469_v47 = vadd.f32 %v5455_v46, %v5454_v44  ;;  %v6594_v44 = vsub.s32 0, %v6585_v40 }
 0x16f   :  { %v227_v48 = vsel %vm223_vm4, %v6469_v47, 0.0 }
 0x170   :  { %228 = vadd.xlane.f32.xlu1 %v227_v48 }
 0x1f5   :  { %v226_v49 = vpop.xlane.xlu1 %225 }
 0x1f6   :  { %v231_v50 = vmul.f32 0.015625, %v226_v49  ;;  %v296_v49 = vrot.slane %v291_v42, %v6594_v44 }
 0x1f8   :  { %v233_v51 = vsub.f32 %v6465_v43, %v231_v50 }
 0x1f9   :  { %v229_v52 = vpop.xlane.xlu1 %228 }
 0x1fa   :  { %v232_v53 = vmul.f32 0.015625, %v229_v52  ;;  %v235_v54 = vmul.f32 %v233_v51, %v233_v51 }
 0x1fc   :  { %v6475_v55 = vsub.f32 %v6469_v47, %v232_v53  ;;  %v237_v56 = vsel %vm223_vm4, %v235_v54, 0.0  ;;  %v303_v54 = vsub.s32 2, %v6585_v40 }
 0x1fd   :  { %238 = vadd.xlane.f32.xlu0 %v237_v56 }
 0x1fe   :  { %v236_v57 = vmul.f32 %v6475_v55, %v6475_v55 }
 0x200   :  { %v240_v58 = vsel %vm223_vm4, %v236_v57, 0.0 }
 0x201   :  { %241 = vadd.xlane.f32.xlu1 %v240_v58 }
 0x212   :  { %470 = vrot.lane.b32.xlu1 %v6534_v13, %s6245_s21 }
 0x216   :  { %490 = vrot.lane.b32.xlu1 %v6541_v14, %s6245_s21 }
 0x286   :  { %v239_v15 = vpop.xlane.xlu0 %238 }
 0x287   :  { %v243_v16 = vmul.f32 0.015625, %v239_v15 }
 0x289   :  { %v245_v17 = vadd.f32 1e-05, %v243_v16 }
 0x28a   :  { %v242_v18 = vpop.xlane.xlu1 %241 }
 0x28b   :  { %6082 = vrsqrt.f32 %v245_v17  ;;  %v244_v19 = vmul.f32 0.015625, %v242_v18 }
 0x28d   :  { %v246_v20 = vadd.f32 1e-05, %v244_v19 }
 0x28e   :  { %v6613_v61 = vpop.permute.xlu1 %470 }
 0x28f   :  { %6084 = vrsqrt.f32 %v246_v20 }
 0x292   :  { %v6622_v0 = vpop.permute.xlu1 %490 }
 0x298   :  { %v6083_v21 = vpop.eup %6082 }
 0x299   :  { %v249_v23 = vmul.f32 %v6083_v21, %v233_v51 }
 0x29b   :  { %v257_v25 = vmul.f32 %v5268_v22, %v249_v23 }
 0x29c   :  { %v6085_v26 = vpop.eup %6084 }
 0x29d   :  { %v6548_v27 = vadd.f32 %v5269_v24, %v257_v25  ;;  %v250_v28 = vmul.f32 %v6085_v26, %v6475_v55  ;;  %v304_v55 = vrot.slane %v291_v42, %v303_v54 }
 0x29f   :  { %5270 = vmatmul.mubr.msk.f32.vlgmr.msra.gmra.mxu1 %vm223_vm4, %v6548_v27  ;;  %v258_v30 = vmul.f32 %v5268_v22, %v250_v28 }
 0x2a0   :  { %5646 = vmatpush3.msra.mxu1 %v290_v12  ;;  %384 = vmatprep.mubr.f32.mxu1 %v6244_v1 }
 0x2a1   :  { %5647 = vmatprep.subr.mxu1 %v287_v29  ;;  %v6560_v32 = vadd.f32 %v5269_v24, %v258_v30 }
 0x2a2   :  { %5648 = vmatpush3.msra.mxu1 %v287_v29 }
 0x2a3   :  { %5649 = vmatprep.subr.mxu1 %v284_v31  ;;  %5271 = vmatmul.mubr.msk.f32.gmra.mxu1 %vm223_vm4, %v6560_v32 }
 0x2a4   :  { %5650 = vmatpush3.msra.mxu1 %v284_v31  ;;  %5661 = vmatprep.mubr.msk.f32.mxu1 %vm223_vm4, %v6548_v27 }
 0x2a5   :  { %5651 = vmatprep.subr.mxu1 %v281_v33 }
 0x2a6   :  { %5652 = vmatpush3.msra.mxu1 %v281_v33 }
 0x2a7   :  { %5653 = vmatprep.subr.mxu1 %v278_v34 }
 0x2a8   :  { %5654 = vmatpush3.msra.mxu1 %v278_v34 }
 0x2a9   :  { %5655 = vmatprep.subr.mxu1 %v275_v37 }
 0x2aa   :  { %5656 = vmatpush3.msra.mxu1 %v275_v37 }
 0x2ab   :  { %5657 = vmatprep.subr.mxu1 %v272_v38 }
 0x2ac   :  { %5658 = vmatpush3.msra.mxu1 %v272_v38 }
 0x2ad   :  { %5659 = vmatprep.subr.mxu1 %v269_v39 }
 0x2ae   :  { %5660 = vmatpush3.msra.mxu1 %v269_v39 }
 0x2af   :  { %5662 = vmatmul.mubr.msk.f32.vlgmr.msra.gmra.mxu1 %vm223_vm4, %v6560_v32  ;;  %5664 = vmatprep.subr.mxu1 %v6244_v1 }
 0x2b0   :  { %5666 = vmatprep.mubr.msk.f32.mxu1 %vm6246_vm5, %v6244_v1 }
 0x35f   :  { %v380_v46 = vpop.f32.mrf.mxu1 }
 0x360   :  { %v381_v63 = vadd.f32 %v380_v46, %v296_v49  ;;  %v6674_v46 = vld [vmem:[%s7560_s8 + $0x8] sm:$0xff] }
 0x361   :  { %v382_v48 = vpop.f32.mrf.mxu1 }
 0x362   :  { %v6598_v50 = vadd.f32 %v382_v48, %v300_v45  ;;  %v496_v2 = vmul.f32 %v6622_v0, %v381_v63  ;;  %v466_v5 = vmul.f32 %v381_v63, %v6541_v14  ;;  %v6684_v48 = vld [vmem:[%s7560_s8] sm:$0xff] }
 0x363   :  { %v386_v35 = vpop.f32.mrf.mxu1 }
 0x364   :  { %v6600_v51 = vadd.f32 %v386_v35, %v296_v49  ;;  %5670 = vmatpush3.msra.mxu0 %v6598_v50  ;;  %v476_v62 = vmul.f32 %v6613_v61, %v6598_v50  ;;  %v6689_v49 = vld [vmem:[%s7560_s8 + $0x18] sm:$0xff]  ;;  %v6697_v35 = vld [vmem:[%s7560_s8 + $0x10] sm:$0xff] }
 0x365   :  { %v388_v52 = vpop.f32.mrf.mxu1  ;;  %5679 = vmatprep.subr.mxu0 %v6244_v1 }
 0x366   :  { %v6604_v53 = vadd.f32 %v388_v52, %v300_v45 }
 0x36f   :  { %v5663_v56 = vpop.f32.mrf.mxu1 }
 0x370   :  { %v6609_v57 = vadd.f32 %v5663_v56, %v304_v55 }
 0x371   :  { %v457_v58 = vpop.f32.mrf.mxu1 }
 0x372   :  { %v458_v59 = vadd.f32 %v457_v58, %v304_v55 }
 0x374   :  { %v498_v60 = vmul.f32 %v458_v59, %v6534_v13 }
 0x376   :  { %502 = vrot.lane.b32.xlu1 %v498_v60, %s6245_s21 }
 0x37a   :  { %480 = vrot.lane.b32.xlu1 %v476_v62, %s6245_s21 }
 0x3e8   :  { %v503_v3 = vpop.permute.xlu1 %502 }
 0x3e9   :  { %v6625_v4 = vadd.f32 %v503_v3, %v496_v2 }
 0x3eb   :  { %686 = vrot.lane.b32.xlu1 %v6625_v4, %s6247_s29  ;;  %519 = vrot.lane.b32.xlu0 %v6625_v4, %s6245_s21 }
 0x3ec   :  { %v481_v6 = vpop.permute.xlu1 %480 }
 0x3ed   :  { %v6632_v7 = vadd.f32 %v481_v6, %v466_v5 }
 0x3ef   :  { %684 = vrot.lane.b32.xlu1 %v6632_v7, %s6248_s0 }
 0x45d   :  { %v520_v8 = vpop.permute.xlu0 %519  ;;  %v687_v9 = vpop.permute.xlu1 %686 }
 0x45e   :  { %5665 = vmatpush3.xpose.msk.msra.mxu1 %vm521_vm6, %v520_v8 }
 0x45f   :  { %5674 = vmatprep.subr.mxu1 %v6244_v1 }
 0x461   :  { %5667 = vmatmul.mubr.msk.f32.vlgmr.msra.gmra.mxu1 %vm521_vm6, %v6632_v7  ;;  %v685_v10 = vpop.permute.xlu1 %684 }
 0x462   :  { %5675 = vmatpush3.xpose.msk.msra.mxu1 %vm521_vm6, %v687_v9  ;;  %5676 = vmatprep.mubr.msk.f32.mxu1 %vm6246_vm5, %v6244_v1 }
 0x463   :  { %5684 = vmatprep.subr.mxu1 %v6244_v1 }
 0x465   :  { %5677 = vmatmul.mubr.msk.f32.vlgmr.msra.gmra.mxu1 %vm521_vm6, %v685_v10 }
 0x466   :  { %5688 = vmatprep.mubr.msk.f32.mxu1 %vm6246_vm5, %v6244_v1  ;;  %5685 = vmatpush3.msra.mxu1 %v6689_v49 }
 0x467   :  { %5686 = vmatprep.subr.mxu1 %v6244_v1 }
 0x468   :  { %5687 = vmatpush3.msra.mxu1 %v6697_v35 }
 0x469   :  { %5698 = vmatprep.subr.mxu1 %v6244_v1 }
 0x521   :  { %v593_v12 = vpop.f32.mrf.mxu1 }
 0x522   :  { %v597_v13 = vmul.f32 0.25, %v593_v12 }
 0x523   :  { %v5668_v14 = vpop.f32.mrf.mxu1 }
 0x524   :  { %v598_v15 = vsel %vm6649_vm7, %v597_v13, -1e+30  ;;  %v217_v13 = vld [vmem:[#allocation2 + $0x8] sm:$0xff] }
 0x525   :  { %v758_v16 = vpop.f32.mrf.mxu1  ;;  %v600_v17 = vsel %vm599_vm8, %v598_v15, -inf  ;;  %v215_v14 = vld [vmem:[%s7581_s24 + $0x8] sm:$0xff] }
 0x526   :  { %v762_v18 = vmul.f32 0.25, %v758_v16  ;;  %601 = vmax.xlane.f32.xlu1 %v600_v17 }
 0x527   :  { %v5678_v19 = vpop.f32.mrf.mxu1 }
 0x528   :  { %v763_v20 = vsel %vm6649_vm7, %v762_v18, -1e+30 }
 0x529   :  { %v764_v36 = vsel %vm599_vm8, %v763_v20, -inf }
 0x52a   :  { %765 = vmax.xlane.f32.xlu0 %v764_v36 }
 0x540   :  { %776 = vrot.lane.b32.xlu0 %v6598_v50, %s6248_s0 }
 0x5af   :  { %v602_v21 = vpop.xlane.xlu1 %601 }
 0x5b0   :  { %v603_v22 = vsub.f32 %v598_v15, %v602_v21  ;;  %v499_v15 = vmul.f32 %v6609_v57, %v217_v13 }
 0x5b2   :  { %v604_v23 = vmul.f32 1.442695, %v603_v22  ;;  %v6741_v22 = vld [vmem:[%s7560_s8 + $0x28] sm:$0xff] }
 0x5b3   :  { %v766_v24 = vpop.xlane.xlu0 %765 }
 0x5b4   :  { %6086 = vpow2.f32 %v604_v23  ;;  %v767_v25 = vsub.f32 %v763_v20, %v766_v24 }
 0x5b6   :  { %v768_v26 = vmul.f32 1.442695, %v767_v25 }
 0x5b7   :  { %v777_v39 = vpop.permute.xlu0 %776 }
 0x5b8   :  { %6088 = vpow2.f32 %v768_v26 }
 0x5c1   :  { %v6087_v28 = vpop.eup %6086 }
 0x5c2   :  { %v606_v29 = vsel %vm599_vm8, %v6087_v28, 0.0 }
 0x5c3   :  { %607 = vadd.xlane.f32.xlu1 %v606_v29 }
 0x5c5   :  { %v6089_v30 = vpop.eup %6088 }
 0x5c6   :  { %v770_v31 = vsel %vm599_vm8, %v6089_v30, 0.0 }
 0x5c7   :  { %771 = vadd.xlane.f32.xlu1 %v770_v31 }
 0x5d8   :  { %1000 = vrot.lane.b32.xlu1 %v6625_v4, %s6249_s19 }
 0x5dc   :  { %998 = vrot.lane.b32.xlu1 %v6632_v7, %s6250_s27 }
 0x64c   :  { %v608_v33 = vpop.xlane.xlu1 %607 }
 0x64d   :  { %6090 = vrcp.f32 %v608_v33 }
 0x650   :  { %v772_v34 = vpop.xlane.xlu1 %771 }
 0x651   :  { %6092 = vrcp.f32 %v772_v34 }
 0x654   :  { %v1001_v55 = vpop.permute.xlu1 %1000 }
 0x658   :  { %v999_v60 = vpop.permute.xlu1 %998 }
 0x65a   :  { %v6091_v37 = vpop.eup %6090 }
 0x65b   :  { %v610_v38 = vmul.f32 %v6091_v37, %v6087_v28 }
 0x65d   :  { %5672 = vmatmul.mubr.msk.f32.vlgmr.msra.gmra.mxu0 %vm599_vm8, %v610_v38 }
 0x65e   :  { %v6093_v42 = vpop.eup %6092  ;;  %5680 = vmatpush3.msra.mxu0 %v777_v39  ;;  %5681 = vmatprep.mubr.msk.f32.mxu0 %vm6246_vm5, %v6244_v1 }
 0x65f   :  { %v774_v45 = vmul.f32 %v6093_v42, %v6089_v30  ;;  %5691 = vmatprep.subr.mxu0 %v6244_v1 }
 0x661   :  { %5682 = vmatmul.mubr.msk.f32.vlgmr.msra.gmra.mxu0 %vm599_vm8, %v774_v45 }
 0x662   :  { %5692 = vmatpush3.msra.mxu0 %v6674_v46  ;;  %5695 = vmatprep.mubr.msk.f32.mxu0 %vm6246_vm5, %v6244_v1 }
 0x663   :  { %5693 = vmatprep.subr.mxu0 %v6244_v1 }
 0x664   :  { %5694 = vmatpush3.msra.mxu0 %v6684_v48 }
 0x665   :  { %5703 = vmatprep.subr.mxu0 %v6244_v1 }
 0x71d   :  { %v680_v52 = vpop.f32.mrf.mxu0 }
 0x71e   :  { %5696 = vmatmul.mubr.msk.f32.vlgmr.msra.gmra.mxu0 %vm521_vm6, %v680_v52 }
 0x71f   :  { %v5673_v56 = vpop.f32.mrf.mxu0  ;;  %5705 = vmatprep.mubr.msk.f32.mxu0 %vm6246_vm5, %v6244_v1 }
 0x721   :  { %v848_v58 = vpop.f32.mrf.mxu0 }
 0x722   :  { %5689 = vmatmul.mubr.msk.f32.vlgmr.msra.gmra.mxu1 %vm521_vm6, %v848_v58 }
 0x723   :  { %5699 = vmatpush3.xpose.msk.msra.mxu1 %vm521_vm6, %v1001_v55  ;;  %v5683_v59 = vpop.f32.mrf.mxu0  ;;  %5700 = vmatprep.mubr.msk.f32.mxu1 %vm6246_vm5, %v6244_v1  ;;  %v467_v55 = vmul.f32 %v6600_v51, %v215_v14 }
 0x724   :  { %5708 = vmatprep.subr.mxu1 %v6244_v1 }
 0x726   :  { %5701 = vmatmul.mubr.msk.f32.vlgmr.msra.gmra.mxu1 %vm521_vm6, %v999_v60 }
 0x727   :  { %5712 = vmatprep.mubr.msk.f32.mxu1 %vm6246_vm5, %v6244_v1  ;;  %5709 = vmatpush3.msra.mxu1 %v6741_v22 }
 0x728   :  { %5710 = vmatprep.subr.mxu1 %v6244_v1 }
 0x7de   :  { %v994_v62 = vpop.f32.mrf.mxu0 }
 0x7e0   :  { %v5697_v63 = vpop.f32.mrf.mxu0 }
 0x7e2   :  { %v921_v2 = vpop.f32.mrf.mxu1 }
 0x7e3   :  { %v6713_v3 = vadd.f32 %v994_v62, %v921_v2 }
 0x7e4   :  { %v5690_v5 = vpop.f32.mrf.mxu1 }
 0x7e6   :  { %v1072_v6 = vpop.f32.mrf.mxu1 }
 0x7e7   :  { %v1076_v8 = vmul.f32 0.25, %v1072_v6  ;;  %v6791_v6 = vld [vmem:[%s7560_s8 + $0x38] sm:$0xff] }
 0x7e8   :  { %v5702_v9 = vpop.f32.mrf.mxu1 }
 0x7e9   :  { %v1077_v10 = vsel %vm6649_vm7, %v1076_v8, -1e+30  ;;  %v6796_v8 = vld [vmem:[%s7560_s8 + $0x30] sm:$0xff] }
 0x7ea   :  { %v1078_v12 = vsel %vm599_vm8, %v1077_v10, -inf }
 0x7eb   :  { %1079 = vmax.xlane.f32.xlu0 %v1078_v12 }
 0x801   :  { %1089 = vrot.lane.b32.xlu0 %v6598_v50, %s6250_s27 }
 0x805   :  { %1239 = vrot.lane.b32.xlu0 %v6632_v7, %s6251_s26 }
 0x809   :  { %472 = vrot.lane.b32.xlu0 %v217_v13, %s6245_s21 }
 0x80d   :  { %492 = vrot.lane.b32.xlu0 %v215_v14, %s6245_s21 }
 0x811   :  { %504 = vrot.lane.b32.xlu0 %v499_v15, %s6245_s21 }
 0x874   :  { %v1080_v16 = vpop.xlane.xlu0 %1079 }
 0x875   :  { %v1081_v17 = vsub.f32 %v1077_v10, %v1080_v16 }
 0x877   :  { %v1082_v18 = vmul.f32 1.442695, %v1081_v17 }
 0x878   :  { %v1090_v19 = vpop.permute.xlu0 %1089 }
 0x879   :  { %6094 = vpow2.f32 %v1082_v18  ;;  %5704 = vmatpush3.msra.mxu0 %v1090_v19 }
 0x87a   :  { %5715 = vmatprep.subr.mxu0 %v6244_v1 }
 0x87c   :  { %v1240_v7 = vpop.permute.xlu0 %1239 }
 0x880   :  { %v6730_v20 = vpop.permute.xlu0 %472 }
 0x881   :  { %v477_v36 = vmul.f32 %v6730_v20, %v6604_v53 }
 0x883   :  { %482 = vrot.lane.b32.xlu0 %v477_v36, %s6245_s21 }
 0x884   :  { %v6766_v38 = vpop.permute.xlu0 %492 }
 0x885   :  { %v497_v42 = vmul.f32 %v6766_v38, %v6600_v51 }
 0x886   :  { %v6095_v21 = vpop.eup %6094 }
 0x887   :  { %v1084_v57 = vsel %vm599_vm8, %v6095_v21, 0.0 }
 0x888   :  { %1085 = vadd.xlane.f32.xlu1 %v1084_v57  ;;  %v505_v39 = vpop.permute.xlu0 %504 }
 0x889   :  { %v6772_v45 = vadd.f32 %v505_v39, %v497_v42 }
 0x899   :  { %1241 = vrot.lane.b32.xlu1 %v6625_v4, %s7574_s2  ;;  %v6756_v4 = vld [vmem:[%s7560_s8 + $0x20] sm:$0xff] }
 0x89a   :  { %5711 = vmatpush3.msra.mxu1 %v6756_v4 }
 0x89b   :  { %5720 = vmatprep.subr.mxu1 %v6244_v1 }
 0x8f5   :  { %v483_v52 = vpop.permute.xlu0 %482 }
 0x8f6   :  { %v6777_v56 = vadd.f32 %v483_v52, %v467_v55 }
 0x911   :  { %v1086_v23 = vpop.xlane.xlu1 %1085 }
 0x912   :  { %6096 = vrcp.f32 %v1086_v23 }
 0x915   :  { %v1242_v26 = vpop.permute.xlu1 %1241 }
 0x91f   :  { %v6097_v24 = vpop.eup %6096 }
 0x920   :  { %v1088_v25 = vmul.f32 %v6097_v24, %v6095_v21 }
 0x922   :  { %5706 = vmatmul.mubr.msk.f32.vlgmr.msra.gmra.mxu0 %vm599_vm8, %v1088_v25 }
 0x923   :  { %5716 = vmatpush3.xpose.msk.msra.mxu0 %vm521_vm6, %v1242_v26  ;;  %5717 = vmatprep.mubr.msk.f32.mxu0 %vm6246_vm5, %v6244_v1 }
 0x924   :  { %5725 = vmatprep.subr.mxu0 %v6244_v1 }
 0x926   :  { %5718 = vmatmul.mubr.msk.f32.vlgmr.msra.gmra.mxu0 %vm521_vm6, %v1240_v7 }
 0x927   :  { %5729 = vmatprep.mubr.msk.f32.mxu0 %vm6246_vm5, %v6244_v1  ;;  %5726 = vmatpush3.msra.mxu0 %v6791_v6 }
 0x928   :  { %5727 = vmatprep.subr.mxu0 %v6244_v1 }
 0x929   :  { %5728 = vmatpush3.msra.mxu0 %v6796_v8 }
 0x92a   :  { %5737 = vmatprep.subr.mxu0 %v6244_v1 }
 0x9e2   :  { %v1161_v28 = vpop.f32.mrf.mxu0 }
 0x9e3   :  { %5713 = vmatmul.mubr.msk.f32.vlgmr.msra.gmra.mxu1 %vm521_vm6, %v1161_v28 }
 0x9e4   :  { %v5707_v29 = vpop.f32.mrf.mxu0  ;;  %5722 = vmatprep.mubr.msk.f32.mxu1 %vm6246_vm5, %v6244_v1 }
 0x9e6   :  { %v1313_v30 = vpop.f32.mrf.mxu0 }
 0x9e7   :  { %v1317_v31 = vmul.f32 0.25, %v1313_v30 }
 0x9e8   :  { %v5719_v33 = vpop.f32.mrf.mxu0 }
 0x9e9   :  { %v1318_v34 = vsel %vm6649_vm7, %v1317_v31, -1e+30 }
 0x9ea   :  { %v1319_v37 = vsel %vm599_vm8, %v1318_v34, -inf }
 0x9eb   :  { %1320 = vmax.xlane.f32.xlu1 %v1319_v37 }
 0x9fc   :  { %1330 = vrot.lane.b32.xlu1 %v6598_v50, %s6251_s26 }
 0xa00   :  { %1646 = vrot.lane.b32.xlu1 %v6772_v45, %s6247_s29 }
 0xa04   :  { %1644 = vrot.lane.b32.xlu1 %v6777_v56, %s6248_s0 }
 0xa74   :  { %v1321_v58 = vpop.xlane.xlu1 %1320 }
 0xa75   :  { %v1322_v59 = vsub.f32 %v1318_v34, %v1321_v58 }
 0xa77   :  { %v1323_v60 = vmul.f32 1.442695, %v1322_v59 }
 0xa78   :  { %v1331_v62 = vpop.permute.xlu1 %1330 }
 0xa79   :  { %6098 = vpow2.f32 %v1323_v60  ;;  %5721 = vmatpush3.msra.mxu1 %v1331_v62 }
 0xa7a   :  { %5732 = vmatprep.subr.mxu1 %v6244_v1 }
 0xa7c   :  { %v1647_v13 = vpop.permute.xlu1 %1646 }
 0xa80   :  { %v1645_v14 = vpop.permute.xlu1 %1644 }
 0xa86   :  { %v6099_v50 = vpop.eup %6098 }
 0xa87   :  { %v1325_v63 = vsel %vm599_vm8, %v6099_v50, 0.0 }
 0xa88   :  { %1326 = vadd.xlane.f32.xlu0 %v1325_v63 }
 0xa9e   :  { %1481 = vrot.lane.b32.xlu0 %v6772_v45, %s6245_s21 }
 0xaa3   :  { %v1234_v51 = vpop.f32.mrf.mxu1 }
 0xaa4   :  { %v6786_v2 = vadd.f32 %v1234_v51, %v6713_v3 }
 0xaa5   :  { %v5714_v5 = vpop.f32.mrf.mxu1 }
 0xb11   :  { %v1327_v3 = vpop.xlane.xlu0 %1326 }
 0xb12   :  { %6100 = vrcp.f32 %v1327_v3 }
 0xb15   :  { %v1482_v12 = vpop.permute.xlu0 %1481 }
 0xb1f   :  { %v6101_v9 = vpop.eup %6100 }
 0xb20   :  { %v1329_v10 = vmul.f32 %v6101_v9, %v6099_v50 }
 0xb22   :  { %5723 = vmatmul.mubr.msk.f32.vlgmr.msra.gmra.mxu1 %vm599_vm8, %v1329_v10 }
 0xb23   :  { %5733 = vmatpush3.xpose.msk.msra.mxu1 %vm521_vm6, %v1482_v12  ;;  %5734 = vmatprep.mubr.msk.f32.mxu1 %vm6246_vm5, %v6244_v1 }
 0xb24   :  { %5742 = vmatprep.subr.mxu1 %v6244_v1 }
 0xb26   :  { %5735 = vmatmul.mubr.msk.f32.vlgmr.msra.gmra.mxu1 %vm521_vm6, %v6777_v56 }
 0xb27   :  { %5743 = vmatpush3.xpose.msk.msra.mxu1 %vm521_vm6, %v1647_v13  ;;  %5744 = vmatprep.mubr.msk.f32.mxu1 %vm6246_vm5, %v6244_v1 }
 0xb28   :  { %5752 = vmatprep.subr.mxu1 %v6244_v1 }
 0xb2a   :  { %5745 = vmatmul.mubr.msk.f32.vlgmr.msra.gmra.mxu1 %vm521_vm6, %v1645_v14 }
 0xb2b   :  { %5753 = vmatpush3.msra.mxu1 %v6689_v49  ;;  %5756 = vmatprep.mubr.msk.f32.mxu1 %vm6246_vm5, %v6244_v1 }
 0xb2c   :  { %5754 = vmatprep.subr.mxu1 %v6244_v1 }
 0xb2d   :  { %5755 = vmatpush3.msra.mxu1 %v6697_v35 }
 0xb2e   :  { %5766 = vmatprep.subr.mxu1 %v6244_v1 }
 0xbe2   :  { %v1402_v15 = vpop.f32.mrf.mxu1 }
 0xbe3   :  { %5730 = vmatmul.mubr.msk.f32.vlgmr.msra.gmra.mxu0 %vm521_vm6, %v1402_v15 }
 0xbe4   :  { %5738 = vmatpush3.msra.mxu0 %v6604_v53  ;;  %v5724_v16 = vpop.f32.mrf.mxu1  ;;  %5739 = vmatprep.mubr.msk.f32.mxu0 %vm6246_vm5, %v6244_v1 }
 0xbe5   :  { %5747 = vmatprep.subr.mxu0 %v6244_v1 }
 0xbe6   :  { %v1554_v49 = vpop.f32.mrf.mxu1 }
 0xbe7   :  { %v1558_v17 = vmul.f32 0.25, %v1554_v49 }
 0xbe8   :  { %v5736_v18 = vpop.f32.mrf.mxu1 }
 0xbe9   :  { %v1559_v19 = vsel %vm6649_vm7, %v1558_v17, -1e+30 }
 0xbea   :  { %v1718_v35 = vpop.f32.mrf.mxu1  ;;  %v1560_v7 = vsel %vm599_vm8, %v1559_v19, -inf }
 0xbeb   :  { %v1722_v36 = vmul.f32 0.25, %v1718_v35  ;;  %1561 = vmax.xlane.f32.xlu1 %v1560_v7 }
 0xbec   :  { %v5746_v21 = vpop.f32.mrf.mxu1 }
 0xbed   :  { %v1723_v57 = vsel %vm6649_vm7, %v1722_v36, -1e+30 }
 0xbee   :  { %v1724_v23 = vsel %vm599_vm8, %v1723_v57, -inf }
 0xbef   :  { %1725 = vmax.xlane.f32.xlu0 %v1724_v23 }
 0xc05   :  { %1736 = vrot.lane.b32.xlu0 %v6604_v53, %s6248_s0 }
 0xc74   :  { %v1562_v24 = vpop.xlane.xlu1 %1561 }
 0xc75   :  { %v1563_v25 = vsub.f32 %v1559_v19, %v1562_v24 }
 0xc77   :  { %v1564_v26 = vmul.f32 1.442695, %v1563_v25 }
 0xc78   :  { %v1726_v28 = vpop.xlane.xlu0 %1725 }
 0xc79   :  { %6102 = vpow2.f32 %v1564_v26  ;;  %v1727_v29 = vsub.f32 %v1723_v57, %v1726_v28 }
 0xc7b   :  { %v1728_v30 = vmul.f32 1.442695, %v1727_v29 }
 0xc7c   :  { %v1737_v62 = vpop.permute.xlu0 %1736 }
 0xc7d   :  { %6104 = vpow2.f32 %v1728_v30 }
 0xc86   :  { %v6103_v31 = vpop.eup %6102 }
 0xc87   :  { %v1566_v33 = vsel %vm599_vm8, %v6103_v31, 0.0 }
 0xc88   :  { %1567 = vadd.xlane.f32.xlu1 %v1566_v33 }
 0xc8a   :  { %v6105_v34 = vpop.eup %6104 }
 0xc8b   :  { %v1730_v37 = vsel %vm599_vm8, %v6105_v34, 0.0 }
 0xc8c   :  { %1731 = vadd.xlane.f32.xlu1 %v1730_v37 }
 0xc9d   :  { %1960 = vrot.lane.b32.xlu1 %v6772_v45, %s6249_s19 }
 0xca1   :  { %1958 = vrot.lane.b32.xlu1 %v6777_v56, %s6250_s27 }
 0xca3   :  { %v1475_v39 = vpop.f32.mrf.mxu0 }
 0xca4   :  { %v6840_v42 = vadd.f32 %v1475_v39, %v6786_v2 }
 0xca5   :  { %v5731_v52 = vpop.f32.mrf.mxu0 }
 0xd11   :  { %v1568_v55 = vpop.xlane.xlu1 %1567 }
 0xd12   :  { %6106 = vrcp.f32 %v1568_v55 }
 0xd15   :  { %v1732_v58 = vpop.xlane.xlu1 %1731 }
 0xd16   :  { %6108 = vrcp.f32 %v1732_v58 }
 0xd19   :  { %v1961_v2 = vpop.permute.xlu1 %1960 }
 0xd1f   :  { %v6107_v59 = vpop.eup %6106 }
 0xd20   :  { %v1570_v60 = vmul.f32 %v6107_v59, %v6103_v31  ;;  %v2456_v59 = vld [vmem:[%s7562_s10 + $0x38] sm:$0xff] }
 0xd22   :  { %5740 = vmatmul.mubr.msk.f32.vlgmr.msra.gmra.mxu0 %vm599_vm8, %v1570_v60 }
 0xd23   :  { %v6109_v50 = vpop.eup %6108  ;;  %5748 = vmatpush3.msra.mxu0 %v1737_v62  ;;  %5749 = vmatprep.mubr.msk.f32.mxu0 %vm6246_vm5, %v6244_v1 }
 0xd24   :  { %v1734_v63 = vmul.f32 %v6109_v50, %v6105_v34  ;;  %5759 = vmatprep.subr.mxu0 %v6244_v1 }
 0xd26   :  { %5750 = vmatmul.mubr.msk.f32.vlgmr.msra.gmra.mxu0 %vm599_vm8, %v1734_v63  ;;  %v2455_v63 = vld [vmem:[%s7562_s10 + $0x30] sm:$0xff] }
 0xd27   :  { %5760 = vmatpush3.msra.mxu0 %v6674_v46  ;;  %5763 = vmatprep.mubr.msk.f32.mxu0 %vm6246_vm5, %v6244_v1 }
 0xd28   :  { %5761 = vmatprep.subr.mxu0 %v6244_v1 }
 0xd29   :  { %5762 = vmatpush3.msra.mxu0 %v6684_v48  ;;  %v1959_v48 = vpop.permute.xlu1 %1958 }
 0xd2a   :  { %5771 = vmatprep.subr.mxu0 %v6244_v1 }
 0xde2   :  { %v1640_v51 = vpop.f32.mrf.mxu0 }
 0xde3   :  { %5764 = vmatmul.mubr.msk.f32.vlgmr.msra.gmra.mxu0 %vm521_vm6, %v1640_v51  ;;  %v2453_v51 = vld [vmem:[%s7562_s10 + $0x20] sm:$0xff] }
 0xde4   :  { %v5741_v5 = vpop.f32.mrf.mxu0  ;;  %5773 = vmatprep.mubr.msk.f32.mxu0 %vm6246_vm5, %v6244_v1 }
 0xde5   :  { %v2450_v5 = vld [vmem:[%s7562_s10 + $0x8] sm:$0xff] }
 0xde6   :  { %v1808_v3 = vpop.f32.mrf.mxu0 }
 0xde7   :  { %5757 = vmatmul.mubr.msk.f32.vlgmr.msra.gmra.mxu1 %vm521_vm6, %v1808_v3  ;;  %v2449_v3 = vld [vmem:[%s7562_s10] sm:$0xff] }
 0xde8   :  { %5767 = vmatpush3.xpose.msk.msra.mxu1 %vm521_vm6, %v1961_v2  ;;  %v5751_v46 = vpop.f32.mrf.mxu0  ;;  %5768 = vmatprep.mubr.msk.f32.mxu1 %vm6246_vm5, %v6244_v1  ;;  %v2452_v2 = vld [vmem:[%s7562_s10 + $0x18] sm:$0xff] }
 0xde9   :  { %5776 = vmatprep.subr.mxu1 %v6244_v1  ;;  %v2572_v46 = vld [vmem:[%s7564_s12 + $0x78] sm:$0xff] }
 0xdeb   :  { %5769 = vmatmul.mubr.msk.f32.vlgmr.msra.gmra.mxu1 %vm521_vm6, %v1959_v48 }
 0xdec   :  { %5777 = vmatpush3.msra.mxu1 %v6741_v22  ;;  %5780 = vmatprep.mubr.msk.f32.mxu1 %vm6246_vm5, %v6244_v1 }
 0xded   :  { %5778 = vmatprep.subr.mxu1 %v6244_v1 }
 0xdee   :  { %5779 = vmatpush3.msra.mxu1 %v6756_v4 }
 0xdef   :  { %5788 = vmatprep.subr.mxu1 %v6244_v1 }
 0xea3   :  { %v1954_v9 = vpop.f32.mrf.mxu0 }
 0xea5   :  { %v5765_v10 = vpop.f32.mrf.mxu0 }
 0xea7   :  { %v1881_v12 = vpop.f32.mrf.mxu1 }
 0xea8   :  { %v1955_v13 = vadd.f32 %v1954_v9, %v1881_v12  ;;  %v2571_v9 = vld [vmem:[%s7564_s12 + $0x70] sm:$0xff]  ;;  %v2569_v12 = vld [vmem:[%s7564_s12 + $0x60] sm:$0xff] }
 0xea9   :  { %v5758_v14 = vpop.f32.mrf.mxu1 }
 0xeaa   :  { %v2567_v14 = vld [vmem:[%s7564_s12 + $0x50] sm:$0xff] }
 0xeab   :  { %v2032_v15 = vpop.f32.mrf.mxu1 }
 0xeac   :  { %v2036_v16 = vmul.f32 0.25, %v2032_v15  ;;  %v2566_v15 = vld [vmem:[%s7564_s12 + $0x48] sm:$0xff] }
 0xead   :  { %v5770_v49 = vpop.f32.mrf.mxu1 }
 0xeae   :  { %v2037_v22 = vsel %vm6649_vm7, %v2036_v16, -1e+30  ;;  %v2565_v16 = vld [vmem:[%s7564_s12 + $0x40] sm:$0xff] }
 0xeaf   :  { %v2038_v17 = vsel %vm599_vm8, %v2037_v22, -inf  ;;  %v5307_v49 = vld [vmem:[%s7563_s11] ss:$0 sm:$0xff] }
 0xeb0   :  { %2039 = vmax.xlane.f32.xlu0 %v2038_v17 }
 0xec6   :  { %2049 = vrot.lane.b32.xlu0 %v6604_v53, %s6250_s27 }
 0xeca   :  { %2199 = vrot.lane.b32.xlu0 %v6777_v56, %s6251_s26 }
 0xf39   :  { %v2040_v4 = vpop.xlane.xlu0 %2039 }
 0xf3a   :  { %v2041_v18 = vsub.f32 %v2037_v22, %v2040_v4  ;;  %v2564_v22 = vld [vmem:[%s7564_s12 + $0x38] sm:$0xff]  ;;  %v2563_v4 = vld [vmem:[%s7564_s12 + $0x30] sm:$0xff] }
 0xf3c   :  { %v2042_v19 = vmul.f32 1.442695, %v2041_v18 }
 0xf3d   :  { %v2050_v35 = vpop.permute.xlu0 %2049 }
 0xf3e   :  { %6110 = vpow2.f32 %v2042_v19  ;;  %5772 = vmatpush3.msra.mxu0 %v2050_v35  ;;  %v2562_v35 = vld [vmem:[%s7564_s12 + $0x28] sm:$0xff] }
 0xf3f   :  { %5783 = vmatprep.subr.mxu0 %v6244_v1 }
 0xf41   :  { %v2200_v24 = vpop.permute.xlu0 %2199 }
 0xf4b   :  { %v6111_v7 = vpop.eup %6110 }
 0xf4c   :  { %v2044_v36 = vsel %vm599_vm8, %v6111_v7, 0.0 }
 0xf4d   :  { %2045 = vadd.xlane.f32.xlu1 %v2044_v36 }
 0xf5e   :  { %2201 = vrot.lane.b32.xlu1 %v6772_v45, %s7574_s2  ;;  %s7584_s2 = smov 16  }
 0xfd6   :  { %v2046_v21 = vpop.xlane.xlu1 %2045 }
 0xfd7   :  { %6112 = vrcp.f32 %v2046_v21  ;;  %v2561_v21 = vld [vmem:[%s7564_s12 + $0x20] sm:$0xff] }
 0xfda   :  { %v2202_v56 = vpop.permute.xlu1 %2201 }
 0xfe4   :  { %v6113_v57 = vpop.eup %6112 }
 0xfe5   :  { %v2048_v23 = vmul.f32 %v6113_v57, %v6111_v7 }
 0xfe7   :  { %5774 = vmatmul.mubr.msk.f32.vlgmr.msra.gmra.mxu0 %vm599_vm8, %v2048_v23 }
 0xfe8   :  { %5784 = vmatpush3.xpose.msk.msra.mxu0 %vm521_vm6, %v2202_v56  ;;  %5785 = vmatprep.mubr.msk.f32.mxu0 %vm6246_vm5, %v6244_v1  ;;  %v2560_v56 = vld [vmem:[%s7564_s12 + $0x18] sm:$0xff] }
 0xfe9   :  { %5793 = vmatprep.subr.mxu0 %v6244_v1 }
 0xfeb   :  { %5786 = vmatmul.mubr.msk.f32.vlgmr.msra.gmra.mxu0 %vm521_vm6, %v2200_v24 }
 0xfec   :  { %5794 = vmatpush3.msra.mxu0 %v6791_v6  ;;  %5797 = vmatprep.mubr.msk.f32.mxu0 %vm6246_vm5, %v6244_v1 }
 0xfed   :  { %5795 = vmatprep.subr.mxu0 %v6244_v1 }
 0xfee   :  { %5796 = vmatpush3.msra.mxu0 %v6796_v8 }
 0xfef   :  { %5819 = vmatprep.subr.mxu0 %v2572_v46 }
0x10a7   :  { %v2121_v45 = vpop.f32.mrf.mxu0 }
0x10a8   :  { %5781 = vmatmul.mubr.msk.f32.vlgmr.msra.gmra.mxu1 %vm521_vm6, %v2121_v45 }
0x10a9   :  { %v5775_v25 = vpop.f32.mrf.mxu0  ;;  %5790 = vmatprep.mubr.msk.f32.mxu1 %vm6246_vm5, %v6244_v1 }
0x10aa   :  { %v2559_v25 = vld [vmem:[%s7564_s12 + $0x10] sm:$0xff] }
0x10ab   :  { %v2273_v26 = vpop.f32.mrf.mxu0 }
0x10ac   :  { %v2277_v28 = vmul.f32 0.25, %v2273_v26 }
0x10ad   :  { %v5787_v29 = vpop.f32.mrf.mxu0 }
0x10ae   :  { %v2278_v6 = vsel %vm6649_vm7, %v2277_v28, -1e+30  ;;  %v2558_v29 = vld [vmem:[%s7564_s12 + $0x8] sm:$0xff] }
0x10af   :  { %v2279_v30 = vsel %vm599_vm8, %v2278_v6, -inf }
0x10b0   :  { %2280 = vmax.xlane.f32.xlu1 %v2279_v30 }
0x1139   :  { %v2281_v31 = vpop.xlane.xlu1 %2280 }
0x113a   :  { %v2282_v33 = vsub.f32 %v2278_v6, %v2281_v31  ;;  %v2557_v31 = vld [vmem:[%s7564_s12] sm:$0xff] }
0x113c   :  { %v2283_v34 = vmul.f32 1.442695, %v2282_v33 }
0x113e   :  { %6114 = vpow2.f32 %v2283_v34 }
0x114b   :  { %v6115_v8 = vpop.eup %6114 }
0x114c   :  { %v2285_v37 = vsel %vm599_vm8, %v6115_v8, 0.0 }
0x114d   :  { %2286 = vadd.xlane.f32.xlu0 %v2285_v37 }
0x1163   :  { %2290 = vrot.lane.b32.xlu0 %v6604_v53, %s6251_s26  ;;  %v2454_v53 = vld [vmem:[%s7562_s10 + $0x28] sm:$0xff] }
0x1168   :  { %v2194_v39 = vpop.f32.mrf.mxu1 }
0x1169   :  { %v6899_v52 = vadd.f32 %v2194_v39, %v1955_v13  ;;  %v2568_v13 = vld [vmem:[%s7564_s12 + $0x58] sm:$0xff] }
0x116a   :  { %v5782_v55 = vpop.f32.mrf.mxu1 }
0x11d6   :  { %v2287_v58 = vpop.xlane.xlu0 %2286 }
0x11d7   :  { %6116 = vrcp.f32 %v2287_v58 }
0x11da   :  { %v2291_v60 = vpop.permute.xlu0 %2290 }
0x11db   :  { %5789 = vmatpush3.msra.mxu1 %v2291_v60 }
0x11dc   :  { %5800 = vmatprep.subr.mxu1 %v2456_v59 }
0x11e4   :  { %v6117_v62 = vpop.eup %6116 }
0x11e5   :  { %v2289_v50 = vmul.f32 %v6117_v62, %v6115_v8 }
0x11e7   :  { %5791 = vmatmul.mubr.msk.f32.vlgmr.msra.gmra.mxu1 %vm599_vm8, %v2289_v50 }
0x11e8   :  { %5801 = vmatpush3.msra.mxu1 %v2456_v59  ;;  %5816 = vmatprep.mubr.msk.f32.mxu1 %vm223_vm4, %v6548_v27  ;;  %v2451_v27 = vld [vmem:[%s7562_s10 + $0x10] sm:$0xff] }
0x11e9   :  { %5802 = vmatprep.subr.mxu1 %v2455_v63 }
0x11ea   :  { %5803 = vmatpush3.msra.mxu1 %v2455_v63  ;;  %v5310_v63 = vld [vmem:[%s7565_s13] ss:$0 sm:$0xff] }
0x11eb   :  { %5804 = vmatprep.subr.mxu1 %v2454_v53 }
0x11ec   :  { %5805 = vmatpush3.msra.mxu1 %v2454_v53 }
0x11ed   :  { %5806 = vmatprep.subr.mxu1 %v2453_v51 }
0x11ee   :  { %5807 = vmatpush3.msra.mxu1 %v2453_v51  ;;  %v5306_v51 = vld [vmem:[%s7561_s9] ss:$0 sm:$0xff] }
0x11ef   :  { %5808 = vmatprep.subr.mxu1 %v2452_v2 }
0x11f0   :  { %5809 = vmatpush3.msra.mxu1 %v2452_v2 }
0x11f1   :  { %5810 = vmatprep.subr.mxu1 %v2451_v27 }
0x11f2   :  { %5811 = vmatpush3.msra.mxu1 %v2451_v27 }
0x11f3   :  { %5812 = vmatprep.subr.mxu1 %v2450_v5 }
0x11f4   :  { %5813 = vmatpush3.msra.mxu1 %v2450_v5 }
0x11f5   :  { %5814 = vmatprep.subr.mxu1 %v2449_v3 }
0x11f6   :  { %5815 = vmatpush3.msra.mxu1 %v2449_v3  ;;  %v2447_v3 = vadd.f32 %v5306_v51, %v6840_v42 }
0x11f7   :  { %5817 = vmatmul.mubr.msk.f32.vlgmr.msra.gmra.mxu1 %vm223_vm4, %v6560_v32  ;;  %v2570_v32 = vld [vmem:[%s7564_s12 + $0x68] sm:$0xff] }
0x11f8   :  { %2818 = vmatprep.mubr.f32.mxu1 %v6244_v1 }
0x12a7   :  { %v2362_v48 = vpop.f32.mrf.mxu1 }
0x12a8   :  { %5798 = vmatmul.mubr.msk.f32.vlgmr.msra.gmra.mxu0 %vm521_vm6, %v2362_v48 }
0x12a9   :  { %v5792_v10 = vpop.f32.mrf.mxu1  ;;  %5820 = vmatpush3.msra.mxu0 %v2572_v46 }
0x12aa   :  { %5821 = vmatprep.subr.mxu0 %v2571_v9 }
0x12ab   :  { %5822 = vmatpush3.msra.mxu0 %v2571_v9 }
0x12ac   :  { %5823 = vmatprep.subr.mxu0 %v2570_v32 }
0x12ad   :  { %5824 = vmatpush3.msra.mxu0 %v2570_v32 }
0x12ae   :  { %5825 = vmatprep.subr.mxu0 %v2569_v12 }
0x12af   :  { %5826 = vmatpush3.msra.mxu0 %v2569_v12 }
0x12b0   :  { %5827 = vmatprep.subr.mxu0 %v2568_v13 }
0x12b1   :  { %5828 = vmatpush3.msra.mxu0 %v2568_v13 }
0x12b2   :  { %5829 = vmatprep.subr.mxu0 %v2567_v14 }
0x12b3   :  { %5830 = vmatpush3.msra.mxu0 %v2567_v14 }
0x12b4   :  { %5831 = vmatprep.subr.mxu0 %v2566_v15 }
0x12b5   :  { %5832 = vmatpush3.msra.mxu0 %v2566_v15 }
0x12b6   :  { %5833 = vmatprep.subr.mxu0 %v2565_v16 }
0x12b7   :  { %v5818_v17 = vpop.f32.mrf.mxu1  ;;  %5834 = vmatpush3.msra.mxu0 %v2565_v16 }
0x12b8   :  { %v2536_v18 = vadd.f32 %v5818_v17, %v5307_v49  ;;  %5835 = vmatprep.subr.mxu0 %v2564_v22 }
0x12b9   :  { %v2530_v19 = vpop.f32.mrf.mxu1  ;;  %5836 = vmatpush3.msra.mxu0 %v2564_v22 }
0x12ba   :  { %v2542_v7 = vmul.f32 0.044715, %v2536_v18  ;;  %v2531_v36 = vadd.f32 %v5307_v49, %v2530_v19  ;;  %5837 = vmatprep.subr.mxu0 %v2563_v4  ;;  %v2540_v58 = vmul.f32 0.5, %v2536_v18  ;;  %v5335_v19 = vld [vmem:[%s7558_s6 + $0x168] sm:$0xff] }
0x12bb   :  { %5838 = vmatpush3.msra.mxu0 %v2563_v4 }
0x12bc   :  { %v2544_v57 = vmul.f32 %v2542_v7, %v2536_v18  ;;  %v2541_v23 = vmul.f32 0.044715, %v2531_v36  ;;  %5839 = vmatprep.subr.mxu0 %v2562_v35  ;;  %v2539_v39 = vmul.f32 0.5, %v2531_v36  ;;  %v5332_v7 = vld [vmem:[%s7558_s6 + $0x150] sm:$0xff] }
0x12bd   :  { %5840 = vmatpush3.msra.mxu0 %v2562_v35  ;;  %v5333_v35 = vld [vmem:[%s7558_s6 + $0x158] sm:$0xff] }
0x12be   :  { %v2546_v24 = vmul.f32 %v2544_v57, %v2536_v18  ;;  %v2543_v45 = vmul.f32 %v2541_v23, %v2531_v36  ;;  %5841 = vmatprep.subr.mxu0 %v2561_v21  ;;  %v5327_v57 = vld [vmem:[%s7558_s6 + $0x128] sm:$0xff]  ;;  %v5326_v23 = vld [vmem:[%s7558_s6 + $0x120] sm:$0xff] }
0x12bf   :  { %5842 = vmatpush3.msra.mxu0 %v2561_v21  ;;  %v5329_v21 = vld [vmem:[%s7558_s6 + $0x138] sm:$0xff] }
0x12c0   :  { %v2548_v26 = vadd.f32 %v2546_v24, %v2536_v18  ;;  %5843 = vmatprep.subr.mxu0 %v2560_v56  ;;  %v2545_v28 = vmul.f32 %v2543_v45, %v2531_v36  ;;  %v5336_v18 = vld [vmem:[%s7558_s6 + $0x170] sm:$0xff]  ;;  %v5323_v24 = vld [vmem:[%s7558_s6 + $0x108] sm:$0xff]  ;;  %v5321_v45 = vld [vmem:[%s7558_s6 + $0xf8] sm:$0xff] }
0x12c1   :  { %5844 = vmatpush3.msra.mxu0 %v2560_v56  ;;  %2770 = vmatprep.subr.mxu1 %v5336_v18  ;;  %v5324_v56 = vld [vmem:[%s7558_s6 + $0x110] sm:$0xff] }
0x12c2   :  { %5845 = vmatprep.subr.mxu0 %v2559_v25  ;;  %v2547_v6 = vadd.f32 %v2545_v28, %v2531_v36  ;;  %v2550_v30 = vmul.f32 0.7978846, %v2548_v26  ;;  %2771 = vmatpush1.msra.mxu1 %v5335_v19  ;;  %v5330_v36 = vld [vmem:[%s7558_s6 + $0x140] sm:$0xff]  ;;  %v5317_v28 = vld [vmem:[%s7558_s6 + $0xd8] sm:$0xff] }
0x12c3   :  { %5846 = vmatpush3.msra.mxu0 %v2559_v25  ;;  %2772 = vmatprep.subr.mxu1 %v5333_v35  ;;  %v5320_v25 = vld [vmem:[%s7558_s6 + $0xf0] sm:$0xff]  ;;  %v5318_v26 = vld [vmem:[%s7558_s6 + $0xe0] sm:$0xff] }
0x12c4   :  { %5847 = vmatprep.subr.mxu0 %v2558_v29  ;;  %v2549_v33 = vmul.f32 0.7978846, %v2547_v6  ;;  %6118 = vtanh.f32 %v2550_v30  ;;  %2773 = vmatpush1.msra.mxu1 %v5332_v7  ;;  %v5314_v6 = vld [vmem:[%s7558_s6 + $0xc0] sm:$0xff]  ;;  %v5337_v30 = vld [vmem:[%s7558_s6 + $0x178] sm:$0xff] }
0x12c5   :  { %5848 = vmatpush3.msra.mxu0 %v2558_v29  ;;  %2774 = vmatprep.subr.mxu1 %v5330_v36  ;;  %v5315_v29 = vld [vmem:[%s7558_s6 + $0xc8] sm:$0xff]  ;;  %v6166_v35 = vld [vmem:[#allocation2] sm:$0xff] }
0x12c6   :  { %5849 = vmatprep.subr.mxu0 %v2557_v31  ;;  %6120 = vtanh.f32 %v2549_v33  ;;  %2775 = vmatpush1.msra.mxu1 %v5329_v21 }
0x12c7   :  { %5850 = vmatpush3.msra.mxu0 %v2557_v31  ;;  %2776 = vmatprep.subr.mxu1 %v5327_v57 }
0x12c8   :  { %5873 = vmatprep.subr.mxu0 %v6244_v1  ;;  %2777 = vmatpush1.msra.mxu1 %v5326_v23 }
0x12c9   :  { %2778 = vmatprep.subr.mxu1 %v5324_v56 }
0x12ca   :  { %2779 = vmatpush1.msra.mxu1 %v5323_v24 }
0x12cb   :  { %2780 = vmatprep.subr.mxu1 %v5321_v45 }
0x12cc   :  { %2781 = vmatpush1.msra.mxu1 %v5320_v25 }
0x12cd   :  { %2782 = vmatprep.subr.mxu1 %v5318_v26 }
0x12ce   :  { %2783 = vmatpush1.msra.mxu1 %v5317_v28 }
0x12cf   :  { %2784 = vmatprep.subr.mxu1 %v5315_v29 }
0x12d0   :  { %2785 = vmatpush1.msra.mxu1 %v5314_v6 }
0x12d1   :  { %v6119_v34 = vpop.eup %6118  ;;  %5854 = vmatprep.subr.mxu1 %v5337_v30 }
0x12d2   :  { %v2554_v37 = vadd.f32 1.0, %v6119_v34 }
0x12d3   :  { %v6121_v8 = vpop.eup %6120 }
0x12d4   :  { %v2553_v55 = vadd.f32 1.0, %v6121_v8  ;;  %v2556_v60 = vmul.f32 %v2554_v37, %v2540_v58  ;;  %v5312_v58 = vld [vmem:[#allocation5 + $0x1] ss:$0 sm:$0xff] }
0x12d6   :  { %v2555_v59 = vmul.f32 %v2553_v55, %v2539_v39 }
0x12d8   :  { %5851 = vmatprep.mubr.f32.mxu0 %v2555_v59 }
0x12d9   :  { %5852 = vmatmul.mubr.f32.vlgmr.msra.gmra.mxu0 %v2556_v60  ;;  %v5313_v60 = vld [vmem:[%s7557_s5 + $0x1] ss:$0 sm:$0xff] }
0x12da   :  { %5875 = vmatprep.mubr.msk.f32.mxu0 %vm6246_vm5, %v6244_v1 }
0x1368   :  { %v2435_v62 = vpop.f32.mrf.mxu0 }
0x1369   :  { %v2439_v53 = vadd.f32 %v2435_v62, %v6899_v52 }
0x136a   :  { %v5799_v50 = vpop.f32.mrf.mxu0 }
0x136b   :  { %v2448_v46 = vadd.f32 %v5306_v51, %v2439_v53  ;;  %v5334_v51 = vld [vmem:[%s7558_s6 + $0x160] sm:$0xff] }
0x1399   :  { %v5853_v2 = vpop.f32.mrf.mxu0 }
0x139a   :  { %v2652_v27 = vadd.f32 %v5853_v2, %v5310_v63 }
0x139b   :  { %v2646_v5 = vpop.f32.mrf.mxu0 }
0x139c   :  { %v2647_v48 = vadd.f32 %v5310_v63, %v2646_v5  ;;  %v2656_v9 = vadd.f32 %v2652_v27, %v2448_v46  ;;  %v5331_v27 = vld [vmem:[%s7558_s6 + $0x148] sm:$0xff]  ;;  %v5325_v46 = vld [vmem:[%s7558_s6 + $0x118] sm:$0xff] }
0x139e   :  { %v2655_v10 = vadd.f32 %v2647_v48, %v2447_v3  ;;  %v6998_v12 = vadd.f32 %v6469_v47, %v2656_v9  ;;  %v5328_v3 = vld [vmem:[%s7558_s6 + $0x130] sm:$0xff]  ;;  %v5322_v48 = vld [vmem:[%s7558_s6 + $0x100] sm:$0xff]  ;;  %v5319_v9 = vld [vmem:[%s7558_s6 + $0xe8] sm:$0xff] }
0x13a0   :  { %v6995_v32 = vadd.f32 %v6465_v43, %v2655_v10  ;;  %v2666_v13 = vsel %vm223_vm4, %v6998_v12, 0.0  ;;  %v5316_v10 = vld [vmem:[%s7558_s6 + $0xd0] sm:$0xff] }
0x13a2   :  { %v2663_v52 = vsel %vm223_vm4, %v6995_v32, 0.0 }
0x13a3   :  { %2664 = vadd.xlane.f32.xlu1 %v2663_v52  ;;  %v5338_v52 = vld [vmem:[%s7559_s7 + $0x3] sm:$0x7] }
0x13a7   :  { %2667 = vadd.xlane.f32.xlu1 %v2666_v13 }
0x142c   :  { %v2665_v14 = vpop.xlane.xlu1 %2664 }
0x142d   :  { %v2669_v42 = vmul.f32 0.015625, %v2665_v14 }
0x142f   :  { %v2671_v15 = vsub.f32 %v6995_v32, %v2669_v42  ;;  %v2736_v42 = vrot.slane %v5338_v52, %v6594_v44 }
0x1430   :  { %v2668_v16 = vpop.xlane.xlu1 %2667 }
0x1431   :  { %v2670_v49 = vmul.f32 0.015625, %v2668_v16  ;;  %v2673_v22 = vmul.f32 %v2671_v15, %v2671_v15  ;;  %v2740_v16 = vrot.slane %v5338_v52, %v6588_v41 }
0x1433   :  { %v2672_v43 = vsub.f32 %v6998_v12, %v2670_v49  ;;  %v2675_v47 = vsel %vm223_vm4, %v2673_v22, 0.0 }
0x1434   :  { %2676 = vadd.xlane.f32.xlu1 %v2675_v47  ;;  %v2744_v47 = vrot.slane %v5338_v52, %v303_v54 }
0x1435   :  { %v2674_v17 = vmul.f32 %v2672_v43, %v2672_v43 }
0x1437   :  { %v2678_v4 = vsel %vm223_vm4, %v2674_v17, 0.0 }
0x1438   :  { %2679 = vadd.xlane.f32.xlu1 %v2678_v4 }
0x14bd   :  { %v2677_v31 = vpop.xlane.xlu1 %2676 }
0x14be   :  { %v2681_v33 = vmul.f32 0.015625, %v2677_v31 }
0x14c0   :  { %v2683_v34 = vadd.f32 1e-05, %v2681_v33 }
0x14c1   :  { %v2680_v8 = vpop.xlane.xlu1 %2679 }
0x14c2   :  { %6122 = vrsqrt.f32 %v2683_v34  ;;  %v2682_v37 = vmul.f32 0.015625, %v2680_v8 }
0x14c4   :  { %v2684_v39 = vadd.f32 1e-05, %v2682_v37 }
0x14c6   :  { %6124 = vrsqrt.f32 %v2684_v39 }
0x14cf   :  { %v6123_v55 = vpop.eup %6122 }
0x14d0   :  { %v2687_v59 = vmul.f32 %v6123_v55, %v2671_v15 }
0x14d2   :  { %v2695_v62 = vmul.f32 %v5312_v58, %v2687_v59 }
0x14d3   :  { %v6125_v50 = vpop.eup %6124 }
0x14d4   :  { %v7062_v63 = vadd.f32 %v5313_v60, %v2695_v62  ;;  %v2688_v53 = vmul.f32 %v6125_v50, %v2672_v43 }
0x14d6   :  { %5339 = vmatmul.mubr.msk.f32.vlgmr.msra.gmra.mxu1 %vm223_vm4, %v7062_v63  ;;  %v2696_v2 = vmul.f32 %v5312_v58, %v2688_v53 }
0x14d7   :  { %5855 = vmatpush3.msra.mxu1 %v5337_v30  ;;  %2824 = vmatprep.mubr.f32.mxu1 %v6244_v1 }
0x14d8   :  { %5856 = vmatprep.subr.mxu1 %v5334_v51  ;;  %v7073_v5 = vadd.f32 %v5313_v60, %v2696_v2 }
0x14d9   :  { %5857 = vmatpush3.msra.mxu1 %v5334_v51 }
0x14da   :  { %5858 = vmatprep.subr.mxu1 %v5331_v27  ;;  %5340 = vmatmul.mubr.msk.f32.gmra.mxu1 %vm223_vm4, %v7073_v5 }
0x14db   :  { %5859 = vmatpush3.msra.mxu1 %v5331_v27  ;;  %5870 = vmatprep.mubr.msk.f32.mxu1 %vm223_vm4, %v7062_v63 }
0x14dc   :  { %5860 = vmatprep.subr.mxu1 %v5328_v3 }
0x14dd   :  { %5861 = vmatpush3.msra.mxu1 %v5328_v3 }
0x14de   :  { %5862 = vmatprep.subr.mxu1 %v5325_v46 }
0x14df   :  { %5863 = vmatpush3.msra.mxu1 %v5325_v46 }
0x14e0   :  { %5864 = vmatprep.subr.mxu1 %v5322_v48 }
0x14e1   :  { %5865 = vmatpush3.msra.mxu1 %v5322_v48 }
0x14e2   :  { %5866 = vmatprep.subr.mxu1 %v5319_v9 }
0x14e3   :  { %5867 = vmatpush3.msra.mxu1 %v5319_v9 }
0x14e4   :  { %5868 = vmatprep.subr.mxu1 %v5316_v10 }
0x14e5   :  { %5869 = vmatpush3.msra.mxu1 %v5316_v10 }
0x14e6   :  { %5871 = vmatmul.mubr.msk.f32.vlgmr.msra.gmra.mxu1 %vm223_vm4, %v7073_v5  ;;  %5893 = vmatprep.subr.mxu1 %v6244_v1 }
0x14e7   :  { %5897 = vmatprep.mubr.msk.f32.mxu1 %vm6246_vm5, %v6244_v1 }
0x1596   :  { %v2820_v13 = vpop.f32.mrf.mxu1 }
0x1597   :  { %v2821_v36 = vadd.f32 %v2820_v13, %v2736_v42  ;;  %v7166_v13 = vld [vmem:[%s7560_s8 + $0x58] sm:$0xff] }
0x1598   :  { %v2822_v14 = vpop.f32.mrf.mxu1  ;;  %5894 = vmatpush3.msra.mxu1 %v7166_v13 }
0x1599   :  { %v2920_v21 = vmul.f32 %v2821_v36, %v6622_v0  ;;  %v7114_v23 = vadd.f32 %v2822_v14, %v2740_v16  ;;  %v6167_v0 = vld [vmem:[%s7581_s24] sm:$0xff]  ;;  %v7171_v14 = vld [vmem:[%s7560_s8 + $0x50] sm:$0xff]  ;;  %5895 = vmatprep.subr.mxu1 %v6244_v1 }
0x159a   :  { %v2826_v15 = vpop.f32.mrf.mxu1  ;;  %v2906_v24 = vmul.f32 %v6167_v0, %v2821_v36  ;;  %5896 = vmatpush3.msra.mxu1 %v7171_v14 }
0x159b   :  { %v7104_v49 = vadd.f32 %v2826_v15, %v2736_v42  ;;  %v2908_v40 = vmul.f32 %v7114_v23, %v6613_v61  ;;  %5907 = vmatprep.subr.mxu1 %v6244_v1 }
0x159c   :  { %v2828_v22 = vpop.f32.mrf.mxu1 }
0x159d   :  { %v7106_v43 = vadd.f32 %v2828_v22, %v2740_v16  ;;  %v7180_v22 = vld [vmem:[%s7560_s8 + $0x48] sm:$0xff] }
0x15a6   :  { %v5872_v17 = vpop.f32.mrf.mxu1 }
0x15a7   :  { %v7110_v4 = vadd.f32 %v5872_v17, %v2744_v47 }
0x15a8   :  { %v2897_v18 = vpop.f32.mrf.mxu1 }
0x15a9   :  { %v2898_v19 = vadd.f32 %v2897_v18, %v2744_v47  ;;  %v7186_v47 = vld [vmem:[%s7560_s8 + $0x40] sm:$0xff] }
0x15ab   :  { %v2922_v7 = vmul.f32 %v6166_v35, %v2898_v19 }
0x15ad   :  { %2926 = vrot.lane.b32.xlu1 %v2922_v7, %s6245_s21 }
0x161f   :  { %v2927_v57 = vpop.permute.xlu1 %2926 }
0x1620   :  { %v7116_v56 = vadd.f32 %v2927_v57, %v2920_v21 }
0x1622   :  { %2944 = vrot.lane.b32.xlu0 %v7116_v56, %s6245_s21 }
0x1626   :  { %2912 = vrot.lane.b32.xlu0 %v2908_v40, %s6245_s21 }
0x1694   :  { %v2945_v54 = vpop.permute.xlu0 %2944 }
0x1695   :  { %5874 = vmatpush3.xpose.msk.msra.mxu0 %vm521_vm6, %v2945_v54 }
0x1696   :  { %5878 = vmatprep.subr.mxu0 %v6244_v1 }
0x1698   :  { %v2913_v45 = vpop.permute.xlu0 %2912 }
0x1699   :  { %v7128_v25 = vadd.f32 %v2913_v45, %v2906_v24 }
0x169b   :  { %5876 = vmatmul.mubr.msk.f32.vlgmr.msra.gmra.mxu0 %vm521_vm6, %v7128_v25 }
0x169c   :  { %5879 = vmatpush3.msra.mxu0 %v7114_v23  ;;  %5880 = vmatprep.mubr.msk.f32.mxu0 %vm6246_vm5, %v6244_v1 }
0x169d   :  { %5883 = vmatprep.subr.mxu0 %v6244_v1 }
0x175b   :  { %v3017_v61 = vpop.f32.mrf.mxu0 }
0x175c   :  { %v3021_v26 = vmul.f32 0.25, %v3017_v61  ;;  %v6168_v61 = vld [vmem:[#allocation2 + $0x8] sm:$0xff] }
0x175d   :  { %v5877_v28 = vpop.f32.mrf.mxu0 }
0x175e   :  { %v3022_v29 = vsel %vm6649_vm7, %v3021_v26, -1e+30  ;;  %v2923_v26 = vmul.f32 %v6168_v61, %v7110_v4  ;;  %v2909_v28 = vmul.f32 %v7106_v43, %v6730_v20  ;;  %v7228_v20 = vld [vmem:[%s7560_s8 + $0x68] sm:$0xff] }
0x175f   :  { %v3023_v6 = vsel %vm599_vm8, %v3022_v29, -inf }
0x1760   :  { %3024 = vmax.xlane.f32.xlu0 %v3023_v6 }
0x1776   :  { %3109 = vrot.lane.b32.xlu0 %v7116_v56, %s6247_s29 }
0x17e9   :  { %v3025_v30 = vpop.xlane.xlu0 %3024 }
0x17ea   :  { %v3026_v31 = vsub.f32 %v3022_v29, %v3025_v30 }
0x17ec   :  { %v3027_v33 = vmul.f32 1.442695, %v3026_v31 }
0x17ed   :  { %v3110_v58 = vpop.permute.xlu0 %3109 }
0x17ee   :  { %6126 = vpow2.f32 %v3027_v33 }
0x17fb   :  { %v6127_v34 = vpop.eup %6126 }
0x17fc   :  { %v3029_v8 = vsel %vm599_vm8, %v6127_v34, 0.0 }
0x17fd   :  { %3030 = vadd.xlane.f32.xlu1 %v3029_v8 }
0x180e   :  { %3107 = vrot.lane.b32.xlu1 %v7128_v25, %s6248_s0 }
0x1886   :  { %v3031_v37 = vpop.xlane.xlu1 %3030 }
0x1887   :  { %6128 = vrcp.f32 %v3031_v37 }
0x188a   :  { %v3108_v59 = vpop.permute.xlu1 %3107 }
0x1894   :  { %v6129_v39 = vpop.eup %6128 }
0x1895   :  { %v3033_v55 = vmul.f32 %v6129_v39, %v6127_v34  ;;  %v7243_v39 = vld [vmem:[%s7560_s8 + $0x60] sm:$0xff] }
0x1897   :  { %5881 = vmatmul.mubr.msk.f32.vlgmr.msra.gmra.mxu0 %vm599_vm8, %v3033_v55 }
0x1898   :  { %5884 = vmatpush3.xpose.msk.msra.mxu0 %vm521_vm6, %v3110_v58  ;;  %5885 = vmatprep.mubr.msk.f32.mxu0 %vm6246_vm5, %v6244_v1 }
0x1899   :  { %5888 = vmatprep.subr.mxu0 %v6244_v1 }
0x189b   :  { %5886 = vmatmul.mubr.msk.f32.vlgmr.msra.gmra.mxu0 %vm521_vm6, %v3108_v59 }
0x189c   :  { %5890 = vmatprep.mubr.msk.f32.mxu0 %vm6246_vm5, %v6244_v1 }
0x1957   :  { %v3103_v60 = vpop.f32.mrf.mxu0 }
0x1959   :  { %v5882_v62 = vpop.f32.mrf.mxu0 }
0x195b   :  { %v3181_v50 = vpop.f32.mrf.mxu0 }
0x195c   :  { %v3185_v53 = vmul.f32 0.25, %v3181_v50 }
0x195d   :  { %v5887_v51 = vpop.f32.mrf.mxu0 }
0x195e   :  { %v3186_v2 = vsel %vm6649_vm7, %v3185_v53, -1e+30 }
0x195f   :  { %v3187_v27 = vsel %vm599_vm8, %v3186_v2, -inf }
0x1960   :  { %3188 = vmax.xlane.f32.xlu0 %v3187_v27 }
0x1976   :  { %3199 = vrot.lane.b32.xlu0 %v7114_v23, %s6248_s0 }
0x197a   :  { %3421 = vrot.lane.b32.xlu0 %v7128_v25, %s6250_s27 }
0x19e9   :  { %v3189_v3 = vpop.xlane.xlu0 %3188 }
0x19ea   :  { %v3190_v46 = vsub.f32 %v3186_v2, %v3189_v3  ;;  %v2921_v2 = vmul.f32 %v7104_v49, %v6766_v38 }
0x19ec   :  { %v3191_v48 = vmul.f32 1.442695, %v3190_v46  ;;  %v6169_v46 = vld [vmem:[%s7581_s24 + $0x8] sm:$0xff] }
0x19ed   :  { %v3200_v9 = vpop.permute.xlu0 %3199 }
0x19ee   :  { %6130 = vpow2.f32 %v3191_v48  ;;  %5889 = vmatpush3.msra.mxu0 %v3200_v9  ;;  %v2907_v48 = vmul.f32 %v6169_v46, %v7104_v49 }
0x19ef   :  { %5900 = vmatprep.subr.mxu0 %v6244_v1 }
0x19f1   :  { %v3422_v35 = vpop.permute.xlu0 %3421 }
0x19fb   :  { %v6131_v10 = vpop.eup %6130 }
0x19fc   :  { %v3193_v52 = vsel %vm599_vm8, %v6131_v10, 0.0 }
0x19fd   :  { %3194 = vadd.xlane.f32.xlu1 %v3193_v52 }
0x1a0e   :  { %3423 = vrot.lane.b32.xlu1 %v7116_v56, %s6249_s19 }
0x1a86   :  { %v3195_v42 = vpop.xlane.xlu1 %3194 }
0x1a87   :  { %6132 = vrcp.f32 %v3195_v42 }
0x1a8a   :  { %v3424_v18 = vpop.permute.xlu1 %3423 }
0x1a94   :  { %v6133_v15 = vpop.eup %6132 }
0x1a95   :  { %v3197_v16 = vmul.f32 %v6133_v15, %v6131_v10 }
0x1a97   :  { %5891 = vmatmul.mubr.msk.f32.vlgmr.msra.gmra.mxu0 %vm599_vm8, %v3197_v16 }
0x1a98   :  { %5901 = vmatpush3.msra.mxu0 %v7180_v22  ;;  %5904 = vmatprep.mubr.msk.f32.mxu0 %vm6246_vm5, %v6244_v1 }
0x1a99   :  { %5902 = vmatprep.subr.mxu0 %v6244_v1 }
0x1a9a   :  { %5903 = vmatpush3.msra.mxu0 %v7186_v47 }
0x1a9b   :  { %5905 = vmatmul.mubr.msk.f32.vlgmr.msra.gmra.mxu0 %vm521_vm6, %v3103_v60  ;;  %5912 = vmatprep.subr.mxu0 %v6244_v1 }
0x1a9c   :  { %5914 = vmatprep.mubr.msk.f32.mxu0 %vm6246_vm5, %v6244_v1 }
0x1b57   :  { %v3271_v17 = vpop.f32.mrf.mxu0 }
0x1b58   :  { %5898 = vmatmul.mubr.msk.f32.vlgmr.msra.gmra.mxu1 %vm521_vm6, %v3271_v17 }
0x1b59   :  { %5908 = vmatpush3.xpose.msk.msra.mxu1 %vm521_vm6, %v3424_v18  ;;  %v5892_v19 = vpop.f32.mrf.mxu0  ;;  %5909 = vmatprep.mubr.msk.f32.mxu1 %vm6246_vm5, %v6244_v1 }
0x1b5a   :  { %5917 = vmatprep.subr.mxu1 %v6244_v1  ;;  %v7280_v19 = vld [vmem:[%s7560_s8 + $0x78] sm:$0xff] }
0x1b5b   :  { %v7202_v7 = vpop.f32.mrf.mxu0 }
0x1b5c   :  { %5910 = vmatmul.mubr.msk.f32.vlgmr.msra.gmra.mxu1 %vm521_vm6, %v3422_v35  ;;  %v7285_v35 = vld [vmem:[%s7560_s8 + $0x70] sm:$0xff] }
0x1b5d   :  { %v5906_v36 = vpop.f32.mrf.mxu0  ;;  %5921 = vmatprep.mubr.msk.f32.mxu1 %vm6246_vm5, %v6244_v1  ;;  %5918 = vmatpush3.msra.mxu1 %v7228_v20 }
0x1b5e   :  { %5919 = vmatprep.subr.mxu1 %v6244_v1 }
0x1b5f   :  { %5920 = vmatpush3.msra.mxu1 %v7243_v39 }
0x1b60   :  { %5929 = vmatprep.subr.mxu1 %v6244_v1 }
0x1c18   :  { %v7207_v21 = vpop.f32.mrf.mxu1 }
0x1c19   :  { %v3418_v49 = vadd.f32 %v7202_v7, %v7207_v21 }
0x1c1a   :  { %v5899_v57 = vpop.f32.mrf.mxu1 }
0x1c1c   :  { %v3495_v40 = vpop.f32.mrf.mxu1 }
0x1c1d   :  { %v3499_v54 = vmul.f32 0.25, %v3495_v40 }
0x1c1e   :  { %v5911_v0 = vpop.f32.mrf.mxu1 }
0x1c1f   :  { %v3500_v24 = vsel %vm6649_vm7, %v3499_v54, -1e+30 }
0x1c20   :  { %v3501_v45 = vsel %vm599_vm8, %v3500_v24, -inf }
0x1c21   :  { %3502 = vmax.xlane.f32.xlu0 %v3501_v45 }
0x1c37   :  { %3512 = vrot.lane.b32.xlu0 %v7114_v23, %s6250_s27 }
0x1c3b   :  { %3662 = vrot.lane.b32.xlu0 %v7128_v25, %s6251_s26 }
0x1c3f   :  { %2928 = vrot.lane.b32.xlu0 %v2923_v26, %s6245_s21 }
0x1c43   :  { %2914 = vrot.lane.b32.xlu0 %v2909_v28, %s6245_s21 }
0x1caa   :  { %v3503_v29 = vpop.xlane.xlu0 %3502 }
0x1cab   :  { %v3504_v6 = vsub.f32 %v3500_v24, %v3503_v29 }
0x1cad   :  { %v3505_v30 = vmul.f32 1.442695, %v3504_v6 }
0x1cae   :  { %v3513_v31 = vpop.permute.xlu0 %3512 }
0x1caf   :  { %6134 = vpow2.f32 %v3505_v30  ;;  %5913 = vmatpush3.msra.mxu0 %v3513_v31 }
0x1cb0   :  { %5924 = vmatprep.subr.mxu0 %v6244_v1 }
0x1cbc   :  { %v6135_v33 = vpop.eup %6134 }
0x1cbd   :  { %v3507_v25 = vsel %vm599_vm8, %v6135_v33, 0.0 }
0x1cbe   :  { %3508 = vadd.xlane.f32.xlu1 %v3507_v25 }
0x1ccf   :  { %3664 = vrot.lane.b32.xlu1 %v7116_v56, %s7584_s2  ;;  %v3663_v56 = vpop.permute.xlu0 %3662 }
0x1cd3   :  { %v2929_v51 = vpop.permute.xlu0 %2928 }
0x1cd4   :  { %v7257_v27 = vadd.f32 %v2929_v51, %v2921_v2 }
0x1cd7   :  { %v2915_v3 = vpop.permute.xlu0 %2914 }
0x1cd8   :  { %v7265_v9 = vadd.f32 %v2915_v3, %v2907_v48 }
0x1d47   :  { %v3509_v4 = vpop.xlane.xlu1 %3508 }
0x1d48   :  { %6136 = vrcp.f32 %v3509_v4 }
0x1d4b   :  { %v3665_v37 = vpop.permute.xlu1 %3664 }
0x1d55   :  { %v6137_v34 = vpop.eup %6136 }
0x1d56   :  { %v3511_v8 = vmul.f32 %v6137_v34, %v6135_v33 }
0x1d58   :  { %5915 = vmatmul.mubr.msk.f32.vlgmr.msra.gmra.mxu0 %vm599_vm8, %v3511_v8 }
0x1d59   :  { %5925 = vmatpush3.xpose.msk.msra.mxu0 %vm521_vm6, %v3665_v37  ;;  %5926 = vmatprep.mubr.msk.f32.mxu0 %vm6246_vm5, %v6244_v1 }
0x1d5a   :  { %5934 = vmatprep.subr.mxu0 %v6244_v1 }
0x1d5c   :  { %5927 = vmatmul.mubr.msk.f32.vlgmr.msra.gmra.mxu0 %vm521_vm6, %v3663_v56 }
0x1d5d   :  { %5938 = vmatprep.mubr.msk.f32.mxu0 %vm6246_vm5, %v6244_v1  ;;  %5935 = vmatpush3.msra.mxu0 %v7280_v19 }
0x1d5e   :  { %5936 = vmatprep.subr.mxu0 %v6244_v1 }
0x1d5f   :  { %5937 = vmatpush3.msra.mxu0 %v7285_v35 }
0x1d60   :  { %5946 = vmatprep.subr.mxu0 %v6244_v1 }
0x1e18   :  { %v3584_v55 = vpop.f32.mrf.mxu0 }
0x1e19   :  { %5922 = vmatmul.mubr.msk.f32.vlgmr.msra.gmra.mxu1 %vm521_vm6, %v3584_v55 }
0x1e1a   :  { %v5916_v58 = vpop.f32.mrf.mxu0  ;;  %5931 = vmatprep.mubr.msk.f32.mxu1 %vm6246_vm5, %v6244_v1 }
0x1e1c   :  { %v3736_v59 = vpop.f32.mrf.mxu0 }
0x1e1d   :  { %v3740_v60 = vmul.f32 0.25, %v3736_v59 }
0x1e1e   :  { %v5928_v62 = vpop.f32.mrf.mxu0 }
0x1e1f   :  { %v3741_v50 = vsel %vm6649_vm7, %v3740_v60, -1e+30 }
0x1e20   :  { %v3742_v53 = vsel %vm599_vm8, %v3741_v50, -inf }
0x1e21   :  { %3743 = vmax.xlane.f32.xlu1 %v3742_v53 }
0x1e32   :  { %3753 = vrot.lane.b32.xlu1 %v7114_v23, %s6251_s26 }
0x1e36   :  { %4069 = vrot.lane.b32.xlu1 %v7257_v27, %s6247_s29 }
0x1e3a   :  { %4067 = vrot.lane.b32.xlu1 %v7265_v9, %s6248_s0 }
0x1eaa   :  { %v3744_v38 = vpop.xlane.xlu1 %3743 }
0x1eab   :  { %v3745_v10 = vsub.f32 %v3741_v50, %v3744_v38 }
0x1ead   :  { %v3746_v23 = vmul.f32 1.442695, %v3745_v10 }
0x1eae   :  { %v3754_v52 = vpop.permute.xlu1 %3753 }
0x1eaf   :  { %6138 = vpow2.f32 %v3746_v23  ;;  %5930 = vmatpush3.msra.mxu1 %v3754_v52 }
0x1eb0   :  { %5941 = vmatprep.subr.mxu1 %v6244_v1 }
0x1eb2   :  { %v4070_v40 = vpop.permute.xlu1 %4069 }
0x1eb6   :  { %v4068_v54 = vpop.permute.xlu1 %4067 }
0x1ebc   :  { %v6139_v42 = vpop.eup %6138 }
0x1ebd   :  { %v3748_v15 = vsel %vm599_vm8, %v6139_v42, 0.0 }
0x1ebe   :  { %3749 = vadd.xlane.f32.xlu0 %v3748_v15 }
0x1ed4   :  { %3904 = vrot.lane.b32.xlu0 %v7257_v27, %s6245_s21 }
0x1ed9   :  { %v3657_v16 = vpop.f32.mrf.mxu1 }
0x1eda   :  { %v7275_v17 = vadd.f32 %v3657_v16, %v3418_v49 }
0x1edb   :  { %v5923_v18 = vpop.f32.mrf.mxu1 }
0x1f47   :  { %v3750_v7 = vpop.xlane.xlu0 %3749 }
0x1f48   :  { %6140 = vrcp.f32 %v3750_v7 }
0x1f4b   :  { %v3905_v57 = vpop.permute.xlu0 %3904 }
0x1f55   :  { %v6141_v36 = vpop.eup %6140 }
0x1f56   :  { %v3752_v21 = vmul.f32 %v6141_v36, %v6139_v42 }
0x1f58   :  { %5932 = vmatmul.mubr.msk.f32.vlgmr.msra.gmra.mxu1 %vm599_vm8, %v3752_v21 }
0x1f59   :  { %5942 = vmatpush3.xpose.msk.msra.mxu1 %vm521_vm6, %v3905_v57  ;;  %5943 = vmatprep.mubr.msk.f32.mxu1 %vm6246_vm5, %v6244_v1 }
0x1f5a   :  { %5951 = vmatprep.subr.mxu1 %v6244_v1 }
0x1f5c   :  { %5944 = vmatmul.mubr.msk.f32.vlgmr.msra.gmra.mxu1 %vm521_vm6, %v7265_v9 }
0x1f5d   :  { %5952 = vmatpush3.xpose.msk.msra.mxu1 %vm521_vm6, %v4070_v40  ;;  %5953 = vmatprep.mubr.msk.f32.mxu1 %vm6246_vm5, %v6244_v1 }
0x1f5e   :  { %5961 = vmatprep.subr.mxu1 %v6244_v1 }
0x1f60   :  { %5954 = vmatmul.mubr.msk.f32.vlgmr.msra.gmra.mxu1 %vm521_vm6, %v4068_v54 }
0x1f61   :  { %5962 = vmatpush3.msra.mxu1 %v7166_v13  ;;  %5965 = vmatprep.mubr.msk.f32.mxu1 %vm6246_vm5, %v6244_v1 }
0x1f62   :  { %5963 = vmatprep.subr.mxu1 %v6244_v1 }
0x1f63   :  { %5964 = vmatpush3.msra.mxu1 %v7171_v14 }
0x1f64   :  { %5975 = vmatprep.subr.mxu1 %v6244_v1 }
0x2018   :  { %v3825_v0 = vpop.f32.mrf.mxu1 }
0x2019   :  { %5939 = vmatmul.mubr.msk.f32.vlgmr.msra.gmra.mxu0 %vm521_vm6, %v3825_v0 }
0x201a   :  { %5947 = vmatpush3.msra.mxu0 %v7106_v43  ;;  %v5933_v24 = vpop.f32.mrf.mxu1  ;;  %5948 = vmatprep.mubr.msk.f32.mxu0 %vm6246_vm5, %v6244_v1 }
0x201b   :  { %5956 = vmatprep.subr.mxu0 %v6244_v1 }
0x201c   :  { %v3977_v13 = vpop.f32.mrf.mxu1 }
0x201d   :  { %v3981_v45 = vmul.f32 0.25, %v3977_v13 }
0x201e   :  { %v5945_v61 = vpop.f32.mrf.mxu1 }
0x201f   :  { %v3982_v26 = vsel %vm6649_vm7, %v3981_v45, -1e+30 }
0x2020   :  { %v4141_v14 = vpop.f32.mrf.mxu1  ;;  %v3983_v28 = vsel %vm599_vm8, %v3982_v26, -inf }
0x2021   :  { %v4145_v29 = vmul.f32 0.25, %v4141_v14  ;;  %3984 = vmax.xlane.f32.xlu1 %v3983_v28 }
0x2022   :  { %v5955_v6 = vpop.f32.mrf.mxu1 }
0x2023   :  { %v4146_v30 = vsel %vm6649_vm7, %v4145_v29, -1e+30 }
0x2024   :  { %v4147_v31 = vsel %vm599_vm8, %v4146_v30, -inf }
0x2025   :  { %4148 = vmax.xlane.f32.xlu0 %v4147_v31 }
0x20aa   :  { %v3985_v33 = vpop.xlane.xlu1 %3984 }
0x20ab   :  { %v3986_v25 = vsub.f32 %v3982_v26, %v3985_v33 }
0x20ad   :  { %v3987_v4 = vmul.f32 1.442695, %v3986_v25 }
0x20ae   :  { %v4149_v34 = vpop.xlane.xlu0 %4148 }
0x20af   :  { %6142 = vpow2.f32 %v3987_v4  ;;  %v4150_v8 = vsub.f32 %v4146_v30, %v4149_v34 }
0x20b1   :  { %v4151_v37 = vmul.f32 1.442695, %v4150_v8 }
0x20b3   :  { %6144 = vpow2.f32 %v4151_v37 }
0x20bc   :  { %v6143_v56 = vpop.eup %6142 }
0x20bd   :  { %v3989_v55 = vsel %vm599_vm8, %v6143_v56, 0.0 }
0x20be   :  { %3990 = vadd.xlane.f32.xlu0 %v3989_v55  ;;  %v5392_v55 = vld [vmem:[%s7562_s10 + $0x78] sm:$0xff] }
0x20c0   :  { %v6145_v58 = vpop.eup %6144 }
0x20c1   :  { %v4153_v59 = vsel %vm599_vm8, %v6145_v58, 0.0 }
0x20c2   :  { %4154 = vadd.xlane.f32.xlu1 %v4153_v59 }
0x20d3   :  { %4383 = vrot.lane.b32.xlu1 %v7257_v27, %s6249_s19 }
0x20d4   :  { %4159 = vrot.lane.b32.xlu0 %v7106_v43, %s6248_s0 }
0x20d7   :  { %4381 = vrot.lane.b32.xlu1 %v7265_v9, %s6250_s27 }
0x20d9   :  { %v3898_v60 = vpop.f32.mrf.mxu0 }
0x20da   :  { %v7329_v62 = vadd.f32 %v3898_v60, %v7275_v17 }
0x20db   :  { %v5940_v50 = vpop.f32.mrf.mxu0 }
0x20dc   :  { %v5391_v50 = vld [vmem:[%s7562_s10 + $0x70] sm:$0xff] }
0x2147   :  { %v3991_v53 = vpop.xlane.xlu0 %3990 }
0x2148   :  { %6146 = vrcp.f32 %v3991_v53  ;;  %v5389_v53 = vld [vmem:[%s7562_s10 + $0x60] sm:$0xff] }
0x214b   :  { %v4155_v51 = vpop.xlane.xlu1 %4154  ;;  %v4160_v46 = vpop.permute.xlu0 %4159 }
0x214c   :  { %6148 = vrcp.f32 %v4155_v51  ;;  %v5388_v51 = vld [vmem:[%s7562_s10 + $0x58] sm:$0xff] }
0x214f   :  { %v4384_v23 = vpop.permute.xlu1 %4383 }
0x2155   :  { %v6147_v2 = vpop.eup %6146 }
0x2156   :  { %v3993_v3 = vmul.f32 %v6147_v2, %v6143_v56  ;;  %v5386_v2 = vld [vmem:[%s7562_s10 + $0x48] sm:$0xff] }
0x2158   :  { %5949 = vmatmul.mubr.msk.f32.vlgmr.msra.gmra.mxu0 %vm599_vm8, %v3993_v3  ;;  %v5385_v3 = vld [vmem:[%s7562_s10 + $0x40] sm:$0xff] }
0x2159   :  { %v6149_v48 = vpop.eup %6148  ;;  %5957 = vmatpush3.msra.mxu0 %v4160_v46  ;;  %5958 = vmatprep.mubr.msk.f32.mxu0 %vm6246_vm5, %v6244_v1  ;;  %v5412_v46 = vld [vmem:[%s7564_s12 + $0xf8] sm:$0xff] }
0x215a   :  { %v4157_v38 = vmul.f32 %v6149_v48, %v6145_v58  ;;  %5968 = vmatprep.subr.mxu0 %v6244_v1 }
0x215c   :  { %5959 = vmatmul.mubr.msk.f32.vlgmr.msra.gmra.mxu0 %vm599_vm8, %v4157_v38  ;;  %v5411_v38 = vld [vmem:[%s7564_s12 + $0xf0] sm:$0xff] }
0x215d   :  { %5969 = vmatpush3.msra.mxu0 %v7180_v22  ;;  %5972 = vmatprep.mubr.msk.f32.mxu0 %vm6246_vm5, %v6244_v1 }
0x215e   :  { %5970 = vmatprep.subr.mxu0 %v6244_v1 }
0x215f   :  { %5971 = vmatpush3.msra.mxu0 %v7186_v47  ;;  %v4382_v47 = vpop.permute.xlu1 %4381 }
0x2160   :  { %5980 = vmatprep.subr.mxu0 %v6244_v1 }
0x2218   :  { %v4063_v10 = vpop.f32.mrf.mxu0 }
0x2219   :  { %5973 = vmatmul.mubr.msk.f32.vlgmr.msra.gmra.mxu0 %vm521_vm6, %v4063_v10 }
0x221a   :  { %v5950_v52 = vpop.f32.mrf.mxu0  ;;  %5982 = vmatprep.mubr.msk.f32.mxu0 %vm6246_vm5, %v6244_v1 }
0x221b   :  { %v5408_v52 = vld [vmem:[%s7564_s12 + $0xd8] sm:$0xff] }
0x221c   :  { %v4231_v42 = vpop.f32.mrf.mxu0 }
0x221d   :  { %5966 = vmatmul.mubr.msk.f32.vlgmr.msra.gmra.mxu1 %vm521_vm6, %v4231_v42  ;;  %v5407_v42 = vld [vmem:[%s7564_s12 + $0xd0] sm:$0xff] }
0x221e   :  { %5976 = vmatpush3.xpose.msk.msra.mxu1 %vm521_vm6, %v4384_v23  ;;  %v5960_v22 = vpop.f32.mrf.mxu0  ;;  %5977 = vmatprep.mubr.msk.f32.mxu1 %vm6246_vm5, %v6244_v1  ;;  %v5409_v23 = vld [vmem:[%s7564_s12 + $0xe0] sm:$0xff] }
0x221f   :  { %5985 = vmatprep.subr.mxu1 %v6244_v1  ;;  %v5406_v22 = vld [vmem:[%s7564_s12 + $0xc8] sm:$0xff] }
0x2221   :  { %5978 = vmatmul.mubr.msk.f32.vlgmr.msra.gmra.mxu1 %vm521_vm6, %v4382_v47  ;;  %v5405_v47 = vld [vmem:[%s7564_s12 + $0xc0] sm:$0xff] }
0x2222   :  { %5986 = vmatpush3.msra.mxu1 %v7228_v20  ;;  %5989 = vmatprep.mubr.msk.f32.mxu1 %vm6246_vm5, %v6244_v1 }
0x2223   :  { %5987 = vmatprep.subr.mxu1 %v6244_v1 }
0x2224   :  { %5988 = vmatpush3.msra.mxu1 %v7243_v39 }
0x2225   :  { %5997 = vmatprep.subr.mxu1 %v6244_v1 }
0x22d9   :  { %v4377_v15 = vpop.f32.mrf.mxu0 }
0x22db   :  { %v5974_v49 = vpop.f32.mrf.mxu0 }
0x22dc   :  { %v5404_v49 = vld [vmem:[%s7564_s12 + $0xb8] sm:$0xff] }
0x22dd   :  { %v4304_v16 = vpop.f32.mrf.mxu1 }
0x22de   :  { %v4378_v17 = vadd.f32 %v4377_v15, %v4304_v16  ;;  %v5394_v15 = vld [vmem:[%s7563_s11 + $0x1] ss:$0 sm:$0xff] }
0x22df   :  { %v5967_v18 = vpop.f32.mrf.mxu1 }
0x22e1   :  { %v4455_v7 = vpop.f32.mrf.mxu1 }
0x22e2   :  { %v4459_v36 = vmul.f32 0.25, %v4455_v7 }
0x22e3   :  { %v5979_v21 = vpop.f32.mrf.mxu1 }
0x22e4   :  { %v4460_v20 = vsel %vm6649_vm7, %v4459_v36, -1e+30  ;;  %v5402_v36 = vld [vmem:[%s7564_s12 + $0xa8] sm:$0xff] }
0x22e5   :  { %v4461_v57 = vsel %vm599_vm8, %v4460_v20, -inf }
0x22e6   :  { %4462 = vmax.xlane.f32.xlu0 %v4461_v57  ;;  %v5401_v57 = vld [vmem:[%s7564_s12 + $0xa0] sm:$0xff] }
0x22fc   :  { %4472 = vrot.lane.b32.xlu0 %v7106_v43, %s6250_s27 }
0x2300   :  { %4622 = vrot.lane.b32.xlu0 %v7265_v9, %s6251_s26 }
0x236f   :  { %v4463_v39 = vpop.xlane.xlu0 %4462 }
0x2370   :  { %v4464_v40 = vsub.f32 %v4460_v20, %v4463_v39 }
0x2372   :  { %v4465_v54 = vmul.f32 1.442695, %v4464_v40 }
0x2373   :  { %v4473_v0 = vpop.permute.xlu0 %4472 }
0x2374   :  { %6150 = vpow2.f32 %v4465_v54  ;;  %5981 = vmatpush3.msra.mxu0 %v4473_v0  ;;  %v5400_v54 = vld [vmem:[%s7564_s12 + $0x98] sm:$0xff] }
0x2375   :  { %5992 = vmatprep.subr.mxu0 %v6244_v1 }
0x2377   :  { %v4623_v14 = vpop.permute.xlu0 %4622 }
0x2381   :  { %v6151_v24 = vpop.eup %6150 }
0x2382   :  { %v4467_v13 = vsel %vm599_vm8, %v6151_v24, 0.0 }
0x2383   :  { %4468 = vadd.xlane.f32.xlu1 %v4467_v13  ;;  %v5399_v13 = vld [vmem:[%s7564_s12 + $0x90] sm:$0xff] }
0x2394   :  { %4624 = vrot.lane.b32.xlu1 %v7257_v27, %s7584_s2 }
0x240c   :  { %v4469_v45 = vpop.xlane.xlu1 %4468 }
0x240d   :  { %6152 = vrcp.f32 %v4469_v45 }
0x2410   :  { %v4625_v9 = vpop.permute.xlu1 %4624 }
0x241a   :  { %v6153_v61 = vpop.eup %6152 }
0x241b   :  { %v4471_v26 = vmul.f32 %v6153_v61, %v6151_v24 }
0x241d   :  { %5983 = vmatmul.mubr.msk.f32.vlgmr.msra.gmra.mxu0 %vm599_vm8, %v4471_v26  ;;  %v5398_v26 = vld [vmem:[%s7564_s12 + $0x88] sm:$0xff] }
0x241e   :  { %5993 = vmatpush3.xpose.msk.msra.mxu0 %vm521_vm6, %v4625_v9  ;;  %5994 = vmatprep.mubr.msk.f32.mxu0 %vm6246_vm5, %v6244_v1 }
0x241f   :  { %6002 = vmatprep.subr.mxu0 %v6244_v1 }
0x2421   :  { %5995 = vmatmul.mubr.msk.f32.vlgmr.msra.gmra.mxu0 %vm521_vm6, %v4623_v14 }
0x2422   :  { %6003 = vmatpush3.msra.mxu0 %v7280_v19  ;;  %6006 = vmatprep.mubr.msk.f32.mxu0 %vm6246_vm5, %v6244_v1 }
0x2423   :  { %6004 = vmatprep.subr.mxu0 %v6244_v1 }
0x2424   :  { %6005 = vmatpush3.msra.mxu0 %v7285_v35 }
0x2425   :  { %6028 = vmatprep.subr.mxu0 %v5412_v46 }
0x24dd   :  { %v4544_v27 = vpop.f32.mrf.mxu0 }
0x24de   :  { %5990 = vmatmul.mubr.msk.f32.vlgmr.msra.gmra.mxu1 %vm521_vm6, %v4544_v27  ;;  %v5397_v27 = vld [vmem:[%s7564_s12 + $0x80] sm:$0xff] }
0x24df   :  { %v5984_v28 = vpop.f32.mrf.mxu0  ;;  %5999 = vmatprep.mubr.msk.f32.mxu1 %vm6246_vm5, %v6244_v1 }
0x24e1   :  { %v4696_v29 = vpop.f32.mrf.mxu0 }
0x24e2   :  { %v4700_v6 = vmul.f32 0.25, %v4696_v29 }
0x24e3   :  { %v5996_v30 = vpop.f32.mrf.mxu0 }
0x24e4   :  { %v4701_v19 = vsel %vm6649_vm7, %v4700_v6, -1e+30 }
0x24e5   :  { %v4702_v31 = vsel %vm599_vm8, %v4701_v19, -inf }
0x24e6   :  { %4703 = vmax.xlane.f32.xlu1 %v4702_v31 }
0x256f   :  { %v4704_v33 = vpop.xlane.xlu1 %4703 }
0x2570   :  { %v4705_v25 = vsub.f32 %v4701_v19, %v4704_v33 }
0x2572   :  { %v4706_v4 = vmul.f32 1.442695, %v4705_v25 }
0x2574   :  { %6154 = vpow2.f32 %v4706_v4 }
0x2581   :  { %v6155_v35 = vpop.eup %6154 }
0x2582   :  { %v4708_v34 = vsel %vm599_vm8, %v6155_v35, 0.0 }
0x2583   :  { %4709 = vadd.xlane.f32.xlu0 %v4708_v34 }
0x2599   :  { %4713 = vrot.lane.b32.xlu0 %v7106_v43, %s6251_s26  ;;  %v5390_v43 = vld [vmem:[%s7562_s10 + $0x68] sm:$0xff] }
0x259e   :  { %v4617_v8 = vpop.f32.mrf.mxu1 }
0x259f   :  { %v7388_v37 = vadd.f32 %v4617_v8, %v4378_v17  ;;  %v5403_v17 = vld [vmem:[%s7564_s12 + $0xb0] sm:$0xff]  ;;  %v5414_v8 = vld [vmem:[%s7565_s13 + $0x1] ss:$0 sm:$0xff] }
0x25a0   :  { %v5991_v56 = vpop.f32.mrf.mxu1 }
0x260c   :  { %v4710_v11 = vpop.xlane.xlu0 %4709 }
0x260d   :  { %6156 = vrcp.f32 %v4710_v11  ;;  %v5384_v11 = vld [vmem:[%s7561_s9 + $0x1] ss:$0 sm:$0xff] }
0x2610   :  { %v4714_v58 = vpop.permute.xlu0 %4713 }
0x2611   :  { %5998 = vmatpush3.msra.mxu1 %v4714_v58 }
0x2612   :  { %6009 = vmatprep.subr.mxu1 %v5392_v55 }
0x261a   :  { %v6157_v59 = vpop.eup %6156 }
0x261b   :  { %v4712_v60 = vmul.f32 %v6157_v59, %v6155_v35 }
0x261d   :  { %6000 = vmatmul.mubr.msk.f32.vlgmr.msra.gmra.mxu1 %vm599_vm8, %v4712_v60  ;;  %v4871_v60 = vadd.f32 %v5384_v11, %v7329_v62 }
0x261e   :  { %6010 = vmatpush3.msra.mxu1 %v5392_v55  ;;  %6025 = vmatprep.mubr.msk.f32.mxu1 %vm223_vm4, %v7062_v63  ;;  %v5387_v63 = vld [vmem:[%s7562_s10 + $0x50] sm:$0xff] }
0x261f   :  { %6011 = vmatprep.subr.mxu1 %v5391_v50 }
0x2620   :  { %6012 = vmatpush3.msra.mxu1 %v5391_v50 }
0x2621   :  { %6013 = vmatprep.subr.mxu1 %v5390_v43 }
0x2622   :  { %6014 = vmatpush3.msra.mxu1 %v5390_v43 }
0x2623   :  { %6015 = vmatprep.subr.mxu1 %v5389_v53 }
0x2624   :  { %6016 = vmatpush3.msra.mxu1 %v5389_v53 }
0x2625   :  { %6017 = vmatprep.subr.mxu1 %v5388_v51 }
0x2626   :  { %6018 = vmatpush3.msra.mxu1 %v5388_v51 }
0x2627   :  { %6019 = vmatprep.subr.mxu1 %v5387_v63 }
0x2628   :  { %6020 = vmatpush3.msra.mxu1 %v5387_v63 }
0x2629   :  { %6021 = vmatprep.subr.mxu1 %v5386_v2 }
0x262a   :  { %6022 = vmatpush3.msra.mxu1 %v5386_v2 }
0x262b   :  { %6023 = vmatprep.subr.mxu1 %v5385_v3 }
0x262c   :  { %6024 = vmatpush3.msra.mxu1 %v5385_v3 }
0x262d   :  { %6026 = vmatmul.mubr.msk.f32.vlgmr.msra.gmra.mxu1 %vm223_vm4, %v7073_v5  ;;  %v5410_v5 = vld [vmem:[%s7564_s12 + $0xe8] sm:$0xff] }
0x262e   :  { %5229 = vmatprep.mubr.f32.mxu1 %v6244_v1 }
0x26dd   :  { %v4785_v48 = vpop.f32.mrf.mxu1 }
0x26de   :  { %6007 = vmatmul.mubr.msk.f32.vlgmr.msra.gmra.mxu0 %vm521_vm6, %v4785_v48 }
0x26df   :  { %v6001_v10 = vpop.f32.mrf.mxu1  ;;  %6029 = vmatpush3.msra.mxu0 %v5412_v46 }
0x26e0   :  { %6030 = vmatprep.subr.mxu0 %v5411_v38 }
0x26e1   :  { %6031 = vmatpush3.msra.mxu0 %v5411_v38 }
0x26e2   :  { %6032 = vmatprep.subr.mxu0 %v5410_v5 }
0x26e3   :  { %6033 = vmatpush3.msra.mxu0 %v5410_v5 }
0x26e4   :  { %6034 = vmatprep.subr.mxu0 %v5409_v23 }
0x26e5   :  { %6035 = vmatpush3.msra.mxu0 %v5409_v23 }
0x26e6   :  { %6036 = vmatprep.subr.mxu0 %v5408_v52 }
0x26e7   :  { %6037 = vmatpush3.msra.mxu0 %v5408_v52 }
0x26e8   :  { %6038 = vmatprep.subr.mxu0 %v5407_v42 }
0x26e9   :  { %6039 = vmatpush3.msra.mxu0 %v5407_v42 }
0x26ea   :  { %6040 = vmatprep.subr.mxu0 %v5406_v22 }
0x26eb   :  { %6041 = vmatpush3.msra.mxu0 %v5406_v22  ;;  %v5145_v22 = vld [vmem:[%s7568_s16 + $0x70] sm:$0xff] }
0x26ec   :  { %6042 = vmatprep.subr.mxu0 %v5405_v47 }
0x26ed   :  { %v6027_v16 = vpop.f32.mrf.mxu1  ;;  %6043 = vmatpush3.msra.mxu0 %v5405_v47  ;;  %v5144_v47 = vld [vmem:[%s7568_s16 + $0x68] sm:$0xff] }
0x26ee   :  { %v4962_v18 = vadd.f32 %v6027_v16, %v5394_v15  ;;  %6044 = vmatprep.subr.mxu0 %v5404_v49  ;;  %v5141_v16 = vld [vmem:[%s7568_s16 + $0x50] sm:$0xff] }
0x26ef   :  { %v4956_v7 = vpop.f32.mrf.mxu1  ;;  %6045 = vmatpush3.msra.mxu0 %v5404_v49  ;;  %v5142_v49 = vld [vmem:[%s7568_s16 + $0x58] sm:$0xff] }
0x26f0   :  { %v4968_v21 = vmul.f32 0.044715, %v4962_v18  ;;  %v4957_v20 = vadd.f32 %v5394_v15, %v4956_v7  ;;  %6046 = vmatprep.subr.mxu0 %v5403_v17  ;;  %v4966_v33 = vmul.f32 0.5, %v4962_v18  ;;  %v5143_v15 = vld [vmem:[%s7568_s16 + $0x60] sm:$0xff]  ;;  %v5138_v7 = vld [vmem:[%s7568_s16 + $0x38] sm:$0xff] }
0x26f1   :  { %6047 = vmatpush3.msra.mxu0 %v5403_v17  ;;  %v5140_v17 = vld [vmem:[%s7568_s16 + $0x48] sm:$0xff] }
0x26f2   :  { %v4970_v39 = vmul.f32 %v4968_v21, %v4962_v18  ;;  %v4967_v40 = vmul.f32 0.044715, %v4957_v20  ;;  %6048 = vmatprep.subr.mxu0 %v5402_v36  ;;  %v4965_v19 = vmul.f32 0.5, %v4957_v20  ;;  %v5136_v21 = vld [vmem:[%s7568_s16 + $0x28] sm:$0xff] }
0x26f3   :  { %6049 = vmatpush3.msra.mxu0 %v5402_v36  ;;  %v5137_v36 = vld [vmem:[%s7568_s16 + $0x30] sm:$0xff] }
0x26f4   :  { %v4972_v0 = vmul.f32 %v4970_v39, %v4962_v18  ;;  %v4969_v24 = vmul.f32 %v4967_v40, %v4957_v20  ;;  %6050 = vmatprep.subr.mxu0 %v5401_v57  ;;  %v5133_v39 = vld [vmem:[%s7568_s16 + $0x10] sm:$0xff]  ;;  %v5132_v40 = vld [vmem:[%s7568_s16 + $0x8] sm:$0xff] }
0x26f5   :  { %6051 = vmatpush3.msra.mxu0 %v5401_v57  ;;  %v5134_v57 = vld [vmem:[%s7568_s16 + $0x18] sm:$0xff] }
0x26f6   :  { %v4974_v45 = vadd.f32 %v4972_v0, %v4962_v18  ;;  %6052 = vmatprep.subr.mxu0 %v5400_v54  ;;  %v4971_v61 = vmul.f32 %v4969_v24, %v4957_v20  ;;  %v5139_v18 = vld [vmem:[%s7568_s16 + $0x40] sm:$0xff] }
0x26f7   :  { %6053 = vmatpush3.msra.mxu0 %v5400_v54  ;;  %v5131_v54 = vld [vmem:[%s7568_s16] sm:$0xff] }
0x26f8   :  { %6054 = vmatprep.subr.mxu0 %v5399_v13  ;;  %v4973_v9 = vadd.f32 %v4971_v61, %v4957_v20  ;;  %v4976_v14 = vmul.f32 0.7978846, %v4974_v45  ;;  %v5135_v20 = vld [vmem:[%s7568_s16 + $0x20] sm:$0xff] }
0x26f9   :  { %6055 = vmatpush3.msra.mxu0 %v5399_v13 }
0x26fa   :  { %6056 = vmatprep.subr.mxu0 %v5398_v26  ;;  %v4975_v28 = vmul.f32 0.7978846, %v4973_v9  ;;  %6158 = vtanh.f32 %v4976_v14  ;;  %v5415_v14 = vld [vmem:[%s7566_s14] ss:$0 sm:$0xff]  ;;  %s6252_s14 = smov [#allocation7]  }
0x26fb   :  { %6057 = vmatpush3.msra.mxu0 %v5398_v26 }
0x26fc   :  { %6058 = vmatprep.subr.mxu0 %v5397_v27  ;;  %6160 = vtanh.f32 %v4975_v28  ;;  %v5416_v28 = vld [vmem:[%s7567_s15] ss:$0 sm:$0xff]  ;;  %s5251_s15 = sshll.u32 %s6252_s14, 4  ;;  %s5252_s15 = int_to_ptr.vmem [resolvable:$true] %s5251_s15 }
0x26fd   :  { %6059 = vmatpush3.msra.mxu0 %v5397_v27  ;;  %p6215_p11 = scmp.lt.s32.totalorder %s5252_s15, %s5252_s15 }
0x2707   :  { %v6159_v29 = vpop.eup %6158 }
0x2708   :  { %v4980_v30 = vadd.f32 1.0, %v6159_v29 }
0x2709   :  { %v6161_v6 = vpop.eup %6160 }
0x270a   :  { %v4979_v31 = vadd.f32 1.0, %v6161_v6  ;;  %v4982_v4 = vmul.f32 %v4980_v30, %v4966_v33 }
0x270c   :  { %v4981_v25 = vmul.f32 %v4979_v31, %v4965_v19 }
0x270e   :  { %6060 = vmatprep.mubr.f32.mxu0 %v4981_v25  ;;  %v5147_v25 = vld [vmem:[%s7569_s17] sm:$0x3]  ;;  %s6210_s17 = scalar_lea.vmem %s5252_s15, 512 }
0x270f   :  { %6061 = vmatmul.mubr.f32.vlgmr.msra.gmra.mxu0 %v4982_v4  ;;  %v5152_v4 = vrot.slane %v5147_v25, %v6594_v44  ;;  %p6211_p10 = scmp.ne.s32.totalorder %s5252_s15, %s6210_s17  ;;  %p6216_p12 = scmp.lt.s32.totalorder %s6210_s17, %s6210_s17 }
0x2711   :  { %p6217_p13 = por %p6216_p12, %p6215_p11 }
0x2713   :  { %p6218_p0 = pnand %p6217_p13, %p6211_p10 }
0x279e   :  { %v4858_v35 = vpop.f32.mrf.mxu0 }
0x279f   :  { %v4862_v56 = vadd.f32 %v4858_v35, %v7388_v37  ;;  %v5156_v35 = vrot.slane %v5147_v25, %v6588_v41 }
0x27a0   :  { %v6008_v34 = vpop.f32.mrf.mxu0 }
0x27a1   :  { %v4872_v50 = vadd.f32 %v5384_v11, %v4862_v56 }
0x27cf   :  { %v6062_v55 = vpop.f32.mrf.mxu0 }
0x27d0   :  { %v5080_v58 = vadd.f32 %v6062_v55, %v5414_v8 }
0x27d1   :  { %v5074_v59 = vpop.f32.mrf.mxu0 }
0x27d2   :  { %v5075_v43 = vadd.f32 %v5414_v8, %v5074_v59  ;;  %v5084_v53 = vadd.f32 %v5080_v58, %v4872_v50 }
0x27d4   :  { %v5083_v51 = vadd.f32 %v5075_v43, %v4871_v60  ;;  %v5086_v3 = vadd.f32 %v5084_v53, %v6998_v12  ;;  %v5146_v12 = vld [vmem:[%s7568_s16 + $0x78] sm:$0xff] }
0x27d5   :  { %5181 = vmatprep.subr.mxu1 %v5146_v12 }
0x27d6   :  { %v5085_v63 = vadd.f32 %v5083_v51, %v6995_v32  ;;  %v5092_v37 = vsel %vm223_vm4, %v5086_v3, 0.0  ;;  %5182 = vmatpush1.msra.mxu1 %v5145_v22 }
0x27d7   :  { %5183 = vmatprep.subr.mxu1 %v5144_v47 }
0x27d8   :  { %v5089_v2 = vsel %vm223_vm4, %v5085_v63, 0.0  ;;  %5184 = vmatpush1.msra.mxu1 %v5143_v15 }
0x27d9   :  { %5090 = vadd.xlane.f32.xlu1 %v5089_v2  ;;  %5185 = vmatprep.subr.mxu1 %v5142_v49 }
0x27da   :  { %5186 = vmatpush1.msra.mxu1 %v5141_v16 }
0x27db   :  { %5187 = vmatprep.subr.mxu1 %v5140_v17 }
0x27dc   :  { %5188 = vmatpush1.msra.mxu1 %v5139_v18 }
0x27dd   :  { %5093 = vadd.xlane.f32.xlu1 %v5092_v37  ;;  %5189 = vmatprep.subr.mxu1 %v5138_v7 }
0x27de   :  { %5190 = vmatpush1.msra.mxu1 %v5137_v36 }
0x27df   :  { %5191 = vmatprep.subr.mxu1 %v5136_v21 }
0x27e0   :  { %5192 = vmatpush1.msra.mxu1 %v5135_v20 }
0x27e1   :  { %5193 = vmatprep.subr.mxu1 %v5134_v57 }
0x27e2   :  { %5194 = vmatpush1.msra.mxu1 %v5133_v39 }
0x27e3   :  { %5195 = vmatprep.subr.mxu1 %v5132_v40 }
0x27e4   :  { %5196 = vmatpush1.msra.mxu1 %v5131_v54 }
0x2862   :  { %v5091_v46 = vpop.xlane.xlu1 %5090 }
0x2863   :  { %v5095_v48 = vmul.f32 0.015625, %v5091_v46 }
0x2865   :  { %v5097_v38 = vsub.f32 %v5085_v63, %v5095_v48 }
0x2866   :  { %v5094_v10 = vpop.xlane.xlu1 %5093 }
0x2867   :  { %v5096_v5 = vmul.f32 0.015625, %v5094_v10  ;;  %v5099_v62 = vmul.f32 %v5097_v38, %v5097_v38 }
0x2869   :  { %v5098_v23 = vsub.f32 %v5086_v3, %v5096_v5  ;;  %v5101_v52 = vsel %vm223_vm4, %v5099_v62, 0.0 }
0x286a   :  { %5102 = vadd.xlane.f32.xlu1 %v5101_v52 }
0x286b   :  { %v5100_v42 = vmul.f32 %v5098_v23, %v5098_v23 }
0x286d   :  { %v5104_v32 = vsel %vm223_vm4, %v5100_v42, 0.0 }
0x286e   :  { %5105 = vadd.xlane.f32.xlu1 %v5104_v32 }
0x28f3   :  { %v5103_v0 = vpop.xlane.xlu1 %5102 }
0x28f4   :  { %v5107_v24 = vmul.f32 0.015625, %v5103_v0 }
0x28f6   :  { %v5109_v13 = vadd.f32 1e-05, %v5107_v24 }
0x28f7   :  { %v5106_v45 = vpop.xlane.xlu1 %5105 }
0x28f8   :  { %6162 = vrsqrt.f32 %v5109_v13  ;;  %v5108_v61 = vmul.f32 0.015625, %v5106_v45 }
0x28fa   :  { %v5110_v26 = vadd.f32 1e-05, %v5108_v61 }
0x28fc   :  { %6164 = vrsqrt.f32 %v5110_v26 }
0x2905   :  { %v6163_v9 = vpop.eup %6162 }
0x2906   :  { %v5113_v27 = vmul.f32 %v6163_v9, %v5097_v38 }
0x2908   :  { %v5121_v29 = vmul.f32 %v5415_v14, %v5113_v27 }
0x2909   :  { %v6165_v6 = vpop.eup %6164 }
0x290a   :  { %v5129_v30 = vadd.f32 %v5416_v28, %v5121_v29  ;;  %v5114_v19 = vmul.f32 %v6165_v6, %v5098_v23 }
0x290c   :  { %5417 = vmatmul.mubr.msk.f32.vlgmr.msra.gmra.mxu1 %vm223_vm4, %v5129_v30  ;;  %v5122_v31 = vmul.f32 %v5415_v14, %v5114_v19 }
0x290d   :  { %5235 = vmatprep.mubr.f32.mxu1 %v6244_v1 }
0x290e   :  { %v5130_v33 = vadd.f32 %v5416_v28, %v5122_v31 }
0x2910   :  { %5418 = vmatmul.mubr.msk.f32.gmra.mxu1 %vm223_vm4, %v5130_v33 }
0x29cc   :  { %v5231_v34 = vpop.f32.mrf.mxu1 }
0x29cd   :  { %v5232_v8 = vadd.f32 %v5231_v34, %v5152_v4 }
0x29ce   :  { %v5233_v56 = vpop.f32.mrf.mxu1 }
0x29cf   :  { %5242 = vst [vmem:[#allocation7] sm:$0xff] %v5232_v8  ;;  %v5234_v11 = vadd.f32 %v5233_v56, %v5156_v35 }
0x29d0   :  { %v5237_v55 = vpop.f32.mrf.mxu1 }
0x29d1   :  { %5243 = vst [vmem:[#allocation7 + $0x8] sm:$0xff] %v5234_v11  ;;  %v5238_v1 = vadd.f32 %v5237_v55, %v5152_v4 }
0x29d2   :  { %v5239_v58 = vpop.f32.mrf.mxu1 }
0x29d3   :  { %5244 = vst [vmem:[#allocation7 + $0x10] sm:$0xff] %v5238_v1  ;;  %v5240_v59 = vadd.f32 %v5239_v58, %v5156_v35 }
0x29d5   :  { %5245 = vst [vmem:[#allocation7 + $0x18] sm:$0xff] %v5240_v59 }
0x29d6   :  { %6221 = shalt.err (!%p6218_p0)
}
0x29d7   :  { %s6253_s20 = smov 256  }
0x29d8   :  { %5257 = dma.vmem_to_hbm [thread:$0]  %s5252_s15, 512, %s7570_s18, [#allocation4], %s6253_s20, %s6253_s20, %s7584_s2  }
0x29d9   :  { %6234 = dma.done.wait [#allocation4], 512  }
0x29da   :  { %6235 = vsyncadd [#allocation4], 4294966784 }
0x29db   :  { %5261 = vsyncpa [#allocation3], 1 }
0x29dc   :  { %5262 = vsyncpa [#allocation6], 1 }
0x29dd   :  { %5263 = vsyncpa [#allocation4], 1 }

</bundles_post_ra>
